<compile_context>
chip_gen: v6e
topology: v6e:2x2x1
jax: 0.10.0
libtpu: 0.0.40
codegen_flags: <defaults>
</compile_context>

<pallas_src>
import jax
import jax.numpy as jnp
from jax import lax
from jax.experimental import pallas as pl
from jax.experimental.pallas import tpu as pltpu


def _round_up(x, m):
    return (x + m - 1) // m * m


def _gru_kernel(lenv_ref, x_ref, wih_ref, whh_ref, out_ref, *gi_refs):
    """Multi-layer GRU over the full sequence with fused length gather.

    lenv_ref : VMEM (Bt, 1)   int32 -- per-sample sequence lengths (this batch block)
    x_ref    : VMEM (S, Bt, P) bf16 -- time-major, batch/feature padded input
    wih_ref  : VMEM (L, P, 3P) bf16 -- input->gates weights (transposed, gate-padded)
    whh_ref  : VMEM (L, P, 3P) bf16 -- hidden->gates weights (transposed, gate-padded)
    out_ref  : VMEM (Bt, P)    f32  -- hidden state at each sample's last valid step
    gi_refs  : VMEM scratch (S, Bt, 3P) f32 -- next layer's input projection (ping/pong)
    """
    S, Bt, P = x_ref.shape
    L = wih_ref.shape[0]
    n_gi = len(gi_refs)

    # Fused-gather target step: t_last[i] = clamp(length[i] - 1, 0, S - 1).
    t_last = jnp.clip(lenv_ref[...] - 1, 0, S - 1)             # (Bt, 1) int32

    # Register-carried output accumulator (single out_ref store at the end).
    out_acc = jnp.zeros((Bt, P), jnp.float32)

    for layer in range(L):                                     # static unroll over layers
        is_last = layer == L - 1
        gi_cur = None if layer == 0 else gi_refs[(layer - 1) % n_gi]
        gi_next = gi_refs[layer % n_gi]

        # Register-carried hidden state: no VMEM round-trip on the critical path.
        h = jnp.zeros((Bt, P), jnp.float32)

        # Fully unrolled time loop (S static & small).
        # TODO(synk): for large S switch to lax.fori_loop carrying (h, out_acc)
        #             with a modest unroll and pl.ds(pl.multiple_of(t*Bt, 8), Bt).
        for t in range(S):
            if layer == 0:
                # Layer-0 projection depends only on x[t] (no dep on h), so the
                # scheduler can issue it ahead of the latency-bound recurrence.
                gi = jnp.dot(x_ref[t], wih_ref[0],
                             preferred_element_type=jnp.float32)
            else:
                gi = gi_cur[t]                                 # (Bt, 3P) f32

            # bf16 MXU operands; f32 accumulate.
            # TODO(synk): hold w_hh weight-stationary across the time loop via
            #             pltpu.matmul_push_rhs / matmul_acc_lhs / matmul_pop.
            gh = jnp.dot(h.astype(jnp.bfloat16), whh_ref[layer],
                         preferred_element_type=jnp.float32)

            # Gate arithmetic stays f32 (v5e has no bf16 VPU/EUP). PyTorch gate
            # order (r, z, n); biases are zero per reset_parameters.
            r = jax.nn.sigmoid(gi[:, 0:P] + gh[:, 0:P])
            z = jax.nn.sigmoid(gi[:, P:2 * P] + gh[:, P:2 * P])
            n = jnp.tanh(gi[:, 2 * P:3 * P] + r * gh[:, 2 * P:3 * P])
            h = (1.0 - z) * n + z * h

            if is_last:
                # Fused length gather, register-carried (no per-step out_ref RMW).
                out_acc = jnp.where(t_last == t, h, out_acc)
            else:
                # Next layer's input projection for step t, produced incrementally
                # so it overlaps with this layer's recurrence instead of forming a
                # serial per-layer matmul barrier (also removes the seq buffer).
                gi_next[t] = jnp.dot(h.astype(jnp.bfloat16), wih_ref[layer + 1],
                                     preferred_element_type=jnp.float32)

    out_ref[...] = out_acc


def rnn_wrapper_forward(x_bsd, length, w_ih_list, w_hh_list):
    """GRU forward matching RNN_wrapper.forward (eval mode).

    x_bsd    : (B, S, D) float  -- (batch, seq, word_dim)
    length   : (B,) int         -- per-sample valid lengths (>= 1)
    w_ih_list: L arrays in PyTorch layout (3H, in_dim), gate order (r, z, n)
    w_hh_list: L arrays in PyTorch layout (3H, H)
    returns  : (B, H) float32
    """
    B, S, D = x_bsd.shape
    L = len(w_ih_list)
    H = w_hh_list[0].shape[1]
    P = _round_up(max(D, H), 128)      # lane-aligned feature / per-gate width
    Bp = _round_up(B, 8)               # sublane-aligned batch

    # Batch grid blocks: split independent batch rows into 2 blocks so v7x's two
    # TensorCores each take half (dimension_semantics=("parallel",)); a single
    # block at small batch keeps the latency-bound recurrence maximally batched.
    if Bp >= 16 and (Bp // 2) % 8 == 0:
        Bt = Bp // 2
    else:
        Bt = Bp
    nb = Bp // Bt

    # Pack weights as bf16 MXU operands: transpose to (in, 3H), place each gate
    # at a 128-aligned column slot, zero-pad -> (P, 3P). Zero padding keeps
    # padded hidden lanes exactly zero through the recurrence (h0 = 0).
    # TODO(synk): when H << 128, pack the three gates into one 128-lane block to
    #             avoid ~16x padded MAC work (trade-off: unaligned gate slices).
    def pack(w, in_dim):
        wt = jnp.asarray(w, jnp.float32).T                    # (in_dim, 3H)
        wp = jnp.zeros((P, 3 * P), jnp.float32)
        for g in range(3):
            wp = wp.at[:in_dim, g * P:g * P + H].set(wt[:, g * H:(g + 1) * H])
        return wp.astype(jnp.bfloat16)

    w_ih_p = jnp.stack([pack(w_ih_list[l], D if l == 0 else H) for l in range(L)])
    w_hh_p = jnp.stack([pack(w_hh_list[l], H) for l in range(L)])

    # Time-major, batch/feature padded, bf16 (halves HBM->VMEM DMA bytes).
    # TODO(synk): for large S*B stream x in double-buffered time chunks
    #             (memory_space=pl.ANY + make_async_copy) instead of full residency.
    x = jnp.transpose(x_bsd, (1, 0, 2)).astype(jnp.float32)   # (S, B, D)
    x = jnp.pad(x, ((0, 0), (0, Bp - B), (0, P - D))).astype(jnp.bfloat16)

    lenv = jnp.pad(length.astype(jnp.int32), (0, Bp - B), constant_values=1)
    lenv = lenv.reshape(Bp, 1)

    n_gi = max(1, min(L - 1, 2))       # ping-pong inter-layer projection buffers

    # Scoped-VMEM budget sized to the resident buffers (+ headroom); v5e's scoped
    # default is only 16 MiB, v6e/v7x 32 MiB.
    resident = (x.size * 2 + lenv.size * 4
                + (w_ih_p.size + w_hh_p.size) * 2
                + Bp * P * 4
                + n_gi * S * Bt * 3 * P * 4)
    vmem_limit = int(min(max(2 * resident + (16 << 20), 32 << 20), 60 << 20))

    out = pl.pallas_call(
        _gru_kernel,
        out_shape=jax.ShapeDtypeStruct((Bp, P), jnp.float32),
        grid=(nb,),
        in_specs=[
            pl.BlockSpec((Bt, 1), lambda b: (b, 0)),            # lengths
            pl.BlockSpec((S, Bt, P), lambda b: (0, b, 0)),      # x (time-major)
            pl.BlockSpec((L, P, 3 * P), lambda b: (0, 0, 0)),   # w_ih (whole)
            pl.BlockSpec((L, P, 3 * P), lambda b: (0, 0, 0)),   # w_hh (whole)
        ],
        out_specs=pl.BlockSpec((Bt, P), lambda b: (b, 0)),
        scratch_shapes=[pltpu.VMEM((S, Bt, 3 * P), jnp.float32)
                        for _ in range(n_gi)],
        compiler_params=pltpu.CompilerParams(
            dimension_semantics=("parallel",),
            vmem_limit_bytes=vmem_limit),
    )(lenv, x, w_ih_p, w_hh_p)

    return out[:B, :H]


def _gru_reference(x_bsd, length, w_ih_list, w_hh_list):
    """Pure-JAX f32 reference matching PyTorch nn.GRU (biases = 0, eval mode)."""
    x = jnp.transpose(x_bsd, (1, 0, 2)).astype(jnp.float32)    # (S, B, D)
    S, B, _ = x.shape
    H = w_hh_list[0].shape[1]
    seq = x
    for l in range(len(w_ih_list)):
        w_ih = jnp.asarray(w_ih_list[l], jnp.float32).T
        w_hh = jnp.asarray(w_hh_list[l], jnp.float32).T

        def step(h, x_t, w_ih=w_ih, w_hh=w_hh):
            gi = x_t @ w_ih
            gh = h @ w_hh
            r = jax.nn.sigmoid(gi[:, :H] + gh[:, :H])
            z = jax.nn.sigmoid(gi[:, H:2 * H] + gh[:, H:2 * H])
            n = jnp.tanh(gi[:, 2 * H:] + r * gh[:, 2 * H:])
            h_new = (1.0 - z) * n + z * h
            return h_new, h_new

        _, seq = lax.scan(step, jnp.zeros((B, H), jnp.float32), seq)
    return jnp.stack([seq[length[i] - 1, i] for i in range(B)])


if __name__ == "__main__":
    # Small shapes consistent with the module's forward.
    B, S = 2, 8            # batch, seq
    D = H = 32             # word_dim, hidden_dim
    L = 2                  # num_layers

    key = jax.random.PRNGKey(0)
    kx, *kw = jax.random.split(key, 1 + 2 * L)

    # reset_parameters: weights ~ N(0, 0.01), biases = 0.
    # PyTorch layout: weight_ih_l{k}: (3H, in_dim), weight_hh_l{k}: (3H, H).
    w_ih_list = [0.01 * jax.random.normal(kw[2 * l], (3 * H, D if l == 0 else H),
                                          jnp.float32) for l in range(L)]
    w_hh_list = [0.01 * jax.random.normal(kw[2 * l + 1], (3 * H, H),
                                          jnp.float32) for l in range(L)]

    x = jax.random.normal(kx, (B, S, D), jnp.float32)   # (batch, seq, word_dim)
    length = jnp.array([S, 5], dtype=jnp.int32)         # per-sample valid lengths

    out = rnn_wrapper_forward(x, length, w_ih_list, w_hh_list)
    out = jax.block_until_ready(out)

    ref = _gru_reference(x, length, w_ih_list, w_hh_list)
    assert out.shape == (B, H)
    # Tolerance loosened for bf16 MXU operands (f32 reference).
    assert jnp.allclose(out, ref, atol=5e-3, rtol=5e-2), \
        "mismatch vs pure-JAX GRU reference"

    print("KERNEL_OK")
</pallas_src>

<mosaic_0001>
module attributes {stable_mosaic.version = 11 : i64} {
  func.func @_gru_kernel(%arg0: i32, %arg1: memref<8x1xi32, #tpu.memory_space<vmem>>, %arg2: memref<8x8x128xbf16, #tpu.memory_space<vmem>>, %arg3: memref<2x128x384xbf16, #tpu.memory_space<vmem>>, %arg4: memref<2x128x384xbf16, #tpu.memory_space<vmem>>, %arg5: memref<8x128xf32, #tpu.memory_space<vmem>>, %arg6: memref<8x8x384xf32, #tpu.memory_space<vmem>>) attributes {dimension_semantics = [#tpu.dimension_semantics<parallel>], iteration_bounds = array<i64: 1>, scalar_prefetch = 0 : i64, scratch_operands = 1 : i64, tpu.core_type = #tpu.core_type<tc>, window_params = [{transform_indices = @transform_0, window_bounds = array<i64: 8, 1>}, {transform_indices = @transform_1, window_bounds = array<i64: 8, 8, 128>}, {pipeline_mode = #tpu.pipeline_mode<synchronous>, transform_indices = @transform_2, window_bounds = array<i64: 2, 128, 384>}, {pipeline_mode = #tpu.pipeline_mode<synchronous>, transform_indices = @transform_3, window_bounds = array<i64: 2, 128, 384>}, {transform_indices = @transform_4, window_bounds = array<i64: 8, 128>}]} {
    %c0 = arith.constant 0 : index
    %c0_0 = arith.constant 0 : index
    %0 = vector.load %arg1[%c0, %c0_0] : memref<8x1xi32, #tpu.memory_space<vmem>>, vector<8x1xi32>
    %c1_i32 = arith.constant 1 : i32
    %1 = vector.broadcast %c1_i32 : i32 to vector<8x1xi32>
    %2 = arith.subi %0, %1 : vector<8x1xi32>
    %c0_i32 = arith.constant 0 : i32
    %c7_i32 = arith.constant 7 : i32
    %3 = vector.broadcast %c0_i32 : i32 to vector<8x1xi32>
    %4 = arith.maxsi %3, %2 : vector<8x1xi32>
    %5 = vector.broadcast %c7_i32 : i32 to vector<8x1xi32>
    %6 = arith.minsi %5, %4 : vector<8x1xi32>
    %cst = arith.constant 0.000000e+00 : f32
    %7 = vector.broadcast %cst : f32 to vector<8x128xf32>
    %cst_1 = arith.constant 0.000000e+00 : f32
    %8 = vector.broadcast %cst_1 : f32 to vector<8x128xf32>
    %c0_2 = arith.constant 0 : index
    %c0_3 = arith.constant 0 : index
    %c0_4 = arith.constant 0 : index
    %9 = vector.load %arg2[%c0_2, %c0_3, %c0_4] : memref<8x8x128xbf16, #tpu.memory_space<vmem>>, vector<1x8x128xbf16>
    %10 = vector.shape_cast %9 : vector<1x8x128xbf16> to vector<8x128xbf16>
    %c0_5 = arith.constant 0 : index
    %c0_6 = arith.constant 0 : index
    %c0_7 = arith.constant 0 : index
    %11 = vector.load %arg3[%c0_5, %c0_6, %c0_7] : memref<2x128x384xbf16, #tpu.memory_space<vmem>>, vector<1x128x384xbf16>
    %12 = vector.shape_cast %11 : vector<1x128x384xbf16> to vector<128x384xbf16>
    %cst_8 = arith.constant dense<0.000000e+00> : vector<8x384xf32>
    %13 = tpu.matmul %10, %12, %cst_8 {dimension_numbers = #tpu.dot_dimension_numbers<[1], [0], [0], [1], [0, 0, 1, 1], [], []>} : vector<8x128xbf16>, vector<128x384xbf16>, vector<8x384xf32> -> vector<8x384xf32>
    %14 = arith.truncf %8 : vector<8x128xf32> to vector<8x128xbf16>
    %c0_9 = arith.constant 0 : index
    %c0_10 = arith.constant 0 : index
    %c0_11 = arith.constant 0 : index
    %15 = vector.load %arg4[%c0_9, %c0_10, %c0_11] : memref<2x128x384xbf16, #tpu.memory_space<vmem>>, vector<1x128x384xbf16>
    %16 = vector.shape_cast %15 : vector<1x128x384xbf16> to vector<128x384xbf16>
    %cst_12 = arith.constant dense<0.000000e+00> : vector<8x384xf32>
    %17 = tpu.matmul %14, %16, %cst_12 {dimension_numbers = #tpu.dot_dimension_numbers<[1], [0], [0], [1], [0, 0, 1, 1], [], []>} : vector<8x128xbf16>, vector<128x384xbf16>, vector<8x384xf32> -> vector<8x384xf32>
    %18 = vector.extract_strided_slice %13 {offsets = [0, 0], sizes = [8, 128], strides = [1, 1]} : vector<8x384xf32> to vector<8x128xf32>
    %19 = vector.extract_strided_slice %17 {offsets = [0, 0], sizes = [8, 128], strides = [1, 1]} : vector<8x384xf32> to vector<8x128xf32>
    %20 = arith.addf %18, %19 : vector<8x128xf32>
    %21 = arith.negf %20 : vector<8x128xf32>
    %22 = math.exp %21 : vector<8x128xf32>
    %cst_13 = arith.constant 1.000000e+00 : f32
    %23 = vector.broadcast %cst_13 : f32 to vector<8x128xf32>
    %24 = arith.addf %23, %22 : vector<8x128xf32>
    %25 = arith.divf %23, %24 : vector<8x128xf32>
    %26 = vector.extract_strided_slice %13 {offsets = [0, 128], sizes = [8, 128], strides = [1, 1]} : vector<8x384xf32> to vector<8x128xf32>
    %27 = vector.extract_strided_slice %17 {offsets = [0, 128], sizes = [8, 128], strides = [1, 1]} : vector<8x384xf32> to vector<8x128xf32>
    %28 = arith.addf %26, %27 : vector<8x128xf32>
    %29 = arith.negf %28 : vector<8x128xf32>
    %30 = math.exp %29 : vector<8x128xf32>
    %cst_14 = arith.constant 1.000000e+00 : f32
    %31 = vector.broadcast %cst_14 : f32 to vector<8x128xf32>
    %32 = arith.addf %31, %30 : vector<8x128xf32>
    %33 = arith.divf %31, %32 : vector<8x128xf32>
    %34 = vector.extract_strided_slice %13 {offsets = [0, 256], sizes = [8, 128], strides = [1, 1]} : vector<8x384xf32> to vector<8x128xf32>
    %35 = vector.extract_strided_slice %17 {offsets = [0, 256], sizes = [8, 128], strides = [1, 1]} : vector<8x384xf32> to vector<8x128xf32>
    %36 = arith.mulf %25, %35 : vector<8x128xf32>
    %37 = arith.addf %34, %36 : vector<8x128xf32>
    %38 = math.tanh %37 : vector<8x128xf32>
    %cst_15 = arith.constant 1.000000e+00 : f32
    %39 = vector.broadcast %cst_15 : f32 to vector<8x128xf32>
    %40 = arith.subf %39, %33 : vector<8x128xf32>
    %41 = arith.mulf %40, %38 : vector<8x128xf32>
    %42 = arith.mulf %33, %8 : vector<8x128xf32>
    %43 = arith.addf %41, %42 : vector<8x128xf32>
    %44 = arith.truncf %43 : vector<8x128xf32> to vector<8x128xbf16>
    %c1 = arith.constant 1 : index
    %c0_16 = arith.constant 0 : index
    %c0_17 = arith.constant 0 : index
    %45 = vector.load %arg3[%c1, %c0_16, %c0_17] : memref<2x128x384xbf16, #tpu.memory_space<vmem>>, vector<1x128x384xbf16>
    %46 = vector.shape_cast %45 : vector<1x128x384xbf16> to vector<128x384xbf16>
    %cst_18 = arith.constant dense<0.000000e+00> : vector<8x384xf32>
    %47 = tpu.matmul %44, %46, %cst_18 {dimension_numbers = #tpu.dot_dimension_numbers<[1], [0], [0], [1], [0, 0, 1, 1], [], []>} : vector<8x128xbf16>, vector<128x384xbf16>, vector<8x384xf32> -> vector<8x384xf32>
    %c0_19 = arith.constant 0 : index
    %c0_20 = arith.constant 0 : index
    %c0_21 = arith.constant 0 : index
    %48 = vector.load %arg6[%c0_19, %c0_20, %c0_21] : memref<8x8x384xf32, #tpu.memory_space<vmem>>, vector<1x8x384xf32>
    %49 = vector.shape_cast %48 : vector<1x8x384xf32> to vector<8x384xf32>
    %50 = vector.shape_cast %47 : vector<8x384xf32> to vector<1x8x384xf32>
    tpu.vector_store %arg6[%c0_19, %c0_20, %c0_21], %50 {strides = array<i32>} : memref<8x8x384xf32, #tpu.memory_space<vmem>>, vector<1x8x384xf32>,
    %c1_22 = arith.constant 1 : index
    %c0_23 = arith.constant 0 : index
    %c0_24 = arith.constant 0 : index
    %51 = vector.load %arg2[%c1_22, %c0_23, %c0_24] : memref<8x8x128xbf16, #tpu.memory_space<vmem>>, vector<1x8x128xbf16>
    %52 = vector.shape_cast %51 : vector<1x8x128xbf16> to vector<8x128xbf16>
    %c0_25 = arith.constant 0 : index
    %c0_26 = arith.constant 0 : index
    %c0_27 = arith.constant 0 : index
    %53 = vector.load %arg3[%c0_25, %c0_26, %c0_27] : memref<2x128x384xbf16, #tpu.memory_space<vmem>>, vector<1x128x384xbf16>
    %54 = vector.shape_cast %53 : vector<1x128x384xbf16> to vector<128x384xbf16>
    %cst_28 = arith.constant dense<0.000000e+00> : vector<8x384xf32>
    %55 = tpu.matmul %52, %54, %cst_28 {dimension_numbers = #tpu.dot_dimension_numbers<[1], [0], [0], [1], [0, 0, 1, 1], [], []>} : vector<8x128xbf16>, vector<128x384xbf16>, vector<8x384xf32> -> vector<8x384xf32>
    %56 = arith.truncf %43 : vector<8x128xf32> to vector<8x128xbf16>
    %c0_29 = arith.constant 0 : index
    %c0_30 = arith.constant 0 : index
    %c0_31 = arith.constant 0 : index
    %57 = vector.load %arg4[%c0_29, %c0_30, %c0_31] : memref<2x128x384xbf16, #tpu.memory_space<vmem>>, vector<1x128x384xbf16>
    %58 = vector.shape_cast %57 : vector<1x128x384xbf16> to vector<128x384xbf16>
    %cst_32 = arith.constant dense<0.000000e+00> : vector<8x384xf32>
    %59 = tpu.matmul %56, %58, %cst_32 {dimension_numbers = #tpu.dot_dimension_numbers<[1], [0], [0], [1], [0, 0, 1, 1], [], []>} : vector<8x128xbf16>, vector<128x384xbf16>, vector<8x384xf32> -> vector<8x384xf32>
    %60 = vector.extract_strided_slice %55 {offsets = [0, 0], sizes = [8, 128], strides = [1, 1]} : vector<8x384xf32> to vector<8x128xf32>
    %61 = vector.extract_strided_slice %59 {offsets = [0, 0], sizes = [8, 128], strides = [1, 1]} : vector<8x384xf32> to vector<8x128xf32>
    %62 = arith.addf %60, %61 : vector<8x128xf32>
    %63 = arith.negf %62 : vector<8x128xf32>
    %64 = math.exp %63 : vector<8x128xf32>
    %cst_33 = arith.constant 1.000000e+00 : f32
    %65 = vector.broadcast %cst_33 : f32 to vector<8x128xf32>
    %66 = arith.addf %65, %64 : vector<8x128xf32>
    %67 = arith.divf %65, %66 : vector<8x128xf32>
    %68 = vector.extract_strided_slice %55 {offsets = [0, 128], sizes = [8, 128], strides = [1, 1]} : vector<8x384xf32> to vector<8x128xf32>
    %69 = vector.extract_strided_slice %59 {offsets = [0, 128], sizes = [8, 128], strides = [1, 1]} : vector<8x384xf32> to vector<8x128xf32>
    %70 = arith.addf %68, %69 : vector<8x128xf32>
    %71 = arith.negf %70 : vector<8x128xf32>
    %72 = math.exp %71 : vector<8x128xf32>
    %cst_34 = arith.constant 1.000000e+00 : f32
    %73 = vector.broadcast %cst_34 : f32 to vector<8x128xf32>
    %74 = arith.addf %73, %72 : vector<8x128xf32>
    %75 = arith.divf %73, %74 : vector<8x128xf32>
    %76 = vector.extract_strided_slice %55 {offsets = [0, 256], sizes = [8, 128], strides = [1, 1]} : vector<8x384xf32> to vector<8x128xf32>
    %77 = vector.extract_strided_slice %59 {offsets = [0, 256], sizes = [8, 128], strides = [1, 1]} : vector<8x384xf32> to vector<8x128xf32>
    %78 = arith.mulf %67, %77 : vector<8x128xf32>
    %79 = arith.addf %76, %78 : vector<8x128xf32>
    %80 = math.tanh %79 : vector<8x128xf32>
    %cst_35 = arith.constant 1.000000e+00 : f32
    %81 = vector.broadcast %cst_35 : f32 to vector<8x128xf32>
    %82 = arith.subf %81, %75 : vector<8x128xf32>
    %83 = arith.mulf %82, %80 : vector<8x128xf32>
    %84 = arith.mulf %75, %43 : vector<8x128xf32>
    %85 = arith.addf %83, %84 : vector<8x128xf32>
    %86 = arith.truncf %85 : vector<8x128xf32> to vector<8x128xbf16>
    %c1_36 = arith.constant 1 : index
    %c0_37 = arith.constant 0 : index
    %c0_38 = arith.constant 0 : index
    %87 = vector.load %arg3[%c1_36, %c0_37, %c0_38] : memref<2x128x384xbf16, #tpu.memory_space<vmem>>, vector<1x128x384xbf16>
    %88 = vector.shape_cast %87 : vector<1x128x384xbf16> to vector<128x384xbf16>
    %cst_39 = arith.constant dense<0.000000e+00> : vector<8x384xf32>
    %89 = tpu.matmul %86, %88, %cst_39 {dimension_numbers = #tpu.dot_dimension_numbers<[1], [0], [0], [1], [0, 0, 1, 1], [], []>} : vector<8x128xbf16>, vector<128x384xbf16>, vector<8x384xf32> -> vector<8x384xf32>
    %c1_40 = arith.constant 1 : index
    %c0_41 = arith.constant 0 : index
    %c0_42 = arith.constant 0 : index
    %90 = vector.load %arg6[%c1_40, %c0_41, %c0_42] : memref<8x8x384xf32, #tpu.memory_space<vmem>>, vector<1x8x384xf32>
    %91 = vector.shape_cast %90 : vector<1x8x384xf32> to vector<8x384xf32>
    %92 = vector.shape_cast %89 : vector<8x384xf32> to vector<1x8x384xf32>
    tpu.vector_store %arg6[%c1_40, %c0_41, %c0_42], %92 {strides = array<i32>} : memref<8x8x384xf32, #tpu.memory_space<vmem>>, vector<1x8x384xf32>,
    %c2 = arith.constant 2 : index
    %c0_43 = arith.constant 0 : index
    %c0_44 = arith.constant 0 : index
    %93 = vector.load %arg2[%c2, %c0_43, %c0_44] : memref<8x8x128xbf16, #tpu.memory_space<vmem>>, vector<1x8x128xbf16>
    %94 = vector.shape_cast %93 : vector<1x8x128xbf16> to vector<8x128xbf16>
    %c0_45 = arith.constant 0 : index
    %c0_46 = arith.constant 0 : index
    %c0_47 = arith.constant 0 : index
    %95 = vector.load %arg3[%c0_45, %c0_46, %c0_47] : memref<2x128x384xbf16, #tpu.memory_space<vmem>>, vector<1x128x384xbf16>
    %96 = vector.shape_cast %95 : vector<1x128x384xbf16> to vector<128x384xbf16>
    %cst_48 = arith.constant dense<0.000000e+00> : vector<8x384xf32>
    %97 = tpu.matmul %94, %96, %cst_48 {dimension_numbers = #tpu.dot_dimension_numbers<[1], [0], [0], [1], [0, 0, 1, 1], [], []>} : vector<8x128xbf16>, vector<128x384xbf16>, vector<8x384xf32> -> vector<8x384xf32>
    %98 = arith.truncf %85 : vector<8x128xf32> to vector<8x128xbf16>
    %c0_49 = arith.constant 0 : index
    %c0_50 = arith.constant 0 : index
    %c0_51 = arith.constant 0 : index
    %99 = vector.load %arg4[%c0_49, %c0_50, %c0_51] : memref<2x128x384xbf16, #tpu.memory_space<vmem>>, vector<1x128x384xbf16>
    %100 = vector.shape_cast %99 : vector<1x128x384xbf16> to vector<128x384xbf16>
    %cst_52 = arith.constant dense<0.000000e+00> : vector<8x384xf32>
    %101 = tpu.matmul %98, %100, %cst_52 {dimension_numbers = #tpu.dot_dimension_numbers<[1], [0], [0], [1], [0, 0, 1, 1], [], []>} : vector<8x128xbf16>, vector<128x384xbf16>, vector<8x384xf32> -> vector<8x384xf32>
    %102 = vector.extract_strided_slice %97 {offsets = [0, 0], sizes = [8, 128], strides = [1, 1]} : vector<8x384xf32> to vector<8x128xf32>
    %103 = vector.extract_strided_slice %101 {offsets = [0, 0], sizes = [8, 128], strides = [1, 1]} : vector<8x384xf32> to vector<8x128xf32>
    %104 = arith.addf %102, %103 : vector<8x128xf32>
    %105 = arith.negf %104 : vector<8x128xf32>
    %106 = math.exp %105 : vector<8x128xf32>
    %cst_53 = arith.constant 1.000000e+00 : f32
    %107 = vector.broadcast %cst_53 : f32 to vector<8x128xf32>
    %108 = arith.addf %107, %106 : vector<8x128xf32>
    %109 = arith.divf %107, %108 : vector<8x128xf32>
    %110 = vector.extract_strided_slice %97 {offsets = [0, 128], sizes = [8, 128], strides = [1, 1]} : vector<8x384xf32> to vector<8x128xf32>
    %111 = vector.extract_strided_slice %101 {offsets = [0, 128], sizes = [8, 128], strides = [1, 1]} : vector<8x384xf32> to vector<8x128xf32>
    %112 = arith.addf %110, %111 : vector<8x128xf32>
    %113 = arith.negf %112 : vector<8x128xf32>
    %114 = math.exp %113 : vector<8x128xf32>
    %cst_54 = arith.constant 1.000000e+00 : f32
    %115 = vector.broadcast %cst_54 : f32 to vector<8x128xf32>
    %116 = arith.addf %115, %114 : vector<8x128xf32>
    %117 = arith.divf %115, %116 : vector<8x128xf32>
    %118 = vector.extract_strided_slice %97 {offsets = [0, 256], sizes = [8, 128], strides = [1, 1]} : vector<8x384xf32> to vector<8x128xf32>
    %119 = vector.extract_strided_slice %101 {offsets = [0, 256], sizes = [8, 128], strides = [1, 1]} : vector<8x384xf32> to vector<8x128xf32>
    %120 = arith.mulf %109, %119 : vector<8x128xf32>
    %121 = arith.addf %118, %120 : vector<8x128xf32>
    %122 = math.tanh %121 : vector<8x128xf32>
    %cst_55 = arith.constant 1.000000e+00 : f32
    %123 = vector.broadcast %cst_55 : f32 to vector<8x128xf32>
    %124 = arith.subf %123, %117 : vector<8x128xf32>
    %125 = arith.mulf %124, %122 : vector<8x128xf32>
    %126 = arith.mulf %117, %85 : vector<8x128xf32>
    %127 = arith.addf %125, %126 : vector<8x128xf32>
    %128 = arith.truncf %127 : vector<8x128xf32> to vector<8x128xbf16>
    %c1_56 = arith.constant 1 : index
    %c0_57 = arith.constant 0 : index
    %c0_58 = arith.constant 0 : index
    %129 = vector.load %arg3[%c1_56, %c0_57, %c0_58] : memref<2x128x384xbf16, #tpu.memory_space<vmem>>, vector<1x128x384xbf16>
    %130 = vector.shape_cast %129 : vector<1x128x384xbf16> to vector<128x384xbf16>
    %cst_59 = arith.constant dense<0.000000e+00> : vector<8x384xf32>
    %131 = tpu.matmul %128, %130, %cst_59 {dimension_numbers = #tpu.dot_dimension_numbers<[1], [0], [0], [1], [0, 0, 1, 1], [], []>} : vector<8x128xbf16>, vector<128x384xbf16>, vector<8x384xf32> -> vector<8x384xf32>
    %c2_60 = arith.constant 2 : index
    %c0_61 = arith.constant 0 : index
    %c0_62 = arith.constant 0 : index
    %132 = vector.load %arg6[%c2_60, %c0_61, %c0_62] : memref<8x8x384xf32, #tpu.memory_space<vmem>>, vector<1x8x384xf32>
    %133 = vector.shape_cast %132 : vector<1x8x384xf32> to vector<8x384xf32>
    %134 = vector.shape_cast %131 : vector<8x384xf32> to vector<1x8x384xf32>
    tpu.vector_store %arg6[%c2_60, %c0_61, %c0_62], %134 {strides = array<i32>} : memref<8x8x384xf32, #tpu.memory_space<vmem>>, vector<1x8x384xf32>,
    %c3 = arith.constant 3 : index
    %c0_63 = arith.constant 0 : index
    %c0_64 = arith.constant 0 : index
    %135 = vector.load %arg2[%c3, %c0_63, %c0_64] : memref<8x8x128xbf16, #tpu.memory_space<vmem>>, vector<1x8x128xbf16>
    %136 = vector.shape_cast %135 : vector<1x8x128xbf16> to vector<8x128xbf16>
    %c0_65 = arith.constant 0 : index
    %c0_66 = arith.constant 0 : index
    %c0_67 = arith.constant 0 : index
    %137 = vector.load %arg3[%c0_65, %c0_66, %c0_67] : memref<2x128x384xbf16, #tpu.memory_space<vmem>>, vector<1x128x384xbf16>
    %138 = vector.shape_cast %137 : vector<1x128x384xbf16> to vector<128x384xbf16>
    %cst_68 = arith.constant dense<0.000000e+00> : vector<8x384xf32>
    %139 = tpu.matmul %136, %138, %cst_68 {dimension_numbers = #tpu.dot_dimension_numbers<[1], [0], [0], [1], [0, 0, 1, 1], [], []>} : vector<8x128xbf16>, vector<128x384xbf16>, vector<8x384xf32> -> vector<8x384xf32>
    %140 = arith.truncf %127 : vector<8x128xf32> to vector<8x128xbf16>
    %c0_69 = arith.constant 0 : index
    %c0_70 = arith.constant 0 : index
    %c0_71 = arith.constant 0 : index
    %141 = vector.load %arg4[%c0_69, %c0_70, %c0_71] : memref<2x128x384xbf16, #tpu.memory_space<vmem>>, vector<1x128x384xbf16>
    %142 = vector.shape_cast %141 : vector<1x128x384xbf16> to vector<128x384xbf16>
    %cst_72 = arith.constant dense<0.000000e+00> : vector<8x384xf32>
    %143 = tpu.matmul %140, %142, %cst_72 {dimension_numbers = #tpu.dot_dimension_numbers<[1], [0], [0], [1], [0, 0, 1, 1], [], []>} : vector<8x128xbf16>, vector<128x384xbf16>, vector<8x384xf32> -> vector<8x384xf32>
    %144 = vector.extract_strided_slice %139 {offsets = [0, 0], sizes = [8, 128], strides = [1, 1]} : vector<8x384xf32> to vector<8x128xf32>
    %145 = vector.extract_strided_slice %143 {offsets = [0, 0], sizes = [8, 128], strides = [1, 1]} : vector<8x384xf32> to vector<8x128xf32>
    %146 = arith.addf %144, %145 : vector<8x128xf32>
    %147 = arith.negf %146 : vector<8x128xf32>
    %148 = math.exp %147 : vector<8x128xf32>
    %cst_73 = arith.constant 1.000000e+00 : f32
    %149 = vector.broadcast %cst_73 : f32 to vector<8x128xf32>
    %150 = arith.addf %149, %148 : vector<8x128xf32>
    %151 = arith.divf %149, %150 : vector<8x128xf32>
    %152 = vector.extract_strided_slice %139 {offsets = [0, 128], sizes = [8, 128], strides = [1, 1]} : vector<8x384xf32> to vector<8x128xf32>
    %153 = vector.extract_strided_slice %143 {offsets = [0, 128], sizes = [8, 128], strides = [1, 1]} : vector<8x384xf32> to vector<8x128xf32>
    %154 = arith.addf %152, %153 : vector<8x128xf32>
    %155 = arith.negf %154 : vector<8x128xf32>
    %156 = math.exp %155 : vector<8x128xf32>
    %cst_74 = arith.constant 1.000000e+00 : f32
    %157 = vector.broadcast %cst_74 : f32 to vector<8x128xf32>
    %158 = arith.addf %157, %156 : vector<8x128xf32>
    %159 = arith.divf %157, %158 : vector<8x128xf32>
    %160 = vector.extract_strided_slice %139 {offsets = [0, 256], sizes = [8, 128], strides = [1, 1]} : vector<8x384xf32> to vector<8x128xf32>
    %161 = vector.extract_strided_slice %143 {offsets = [0, 256], sizes = [8, 128], strides = [1, 1]} : vector<8x384xf32> to vector<8x128xf32>
    %162 = arith.mulf %151, %161 : vector<8x128xf32>
    %163 = arith.addf %160, %162 : vector<8x128xf32>
    %164 = math.tanh %163 : vector<8x128xf32>
    %cst_75 = arith.constant 1.000000e+00 : f32
    %165 = vector.broadcast %cst_75 : f32 to vector<8x128xf32>
    %166 = arith.subf %165, %159 : vector<8x128xf32>
    %167 = arith.mulf %166, %164 : vector<8x128xf32>
    %168 = arith.mulf %159, %127 : vector<8x128xf32>
    %169 = arith.addf %167, %168 : vector<8x128xf32>
    %170 = arith.truncf %169 : vector<8x128xf32> to vector<8x128xbf16>
    %c1_76 = arith.constant 1 : index
    %c0_77 = arith.constant 0 : index
    %c0_78 = arith.constant 0 : index
    %171 = vector.load %arg3[%c1_76, %c0_77, %c0_78] : memref<2x128x384xbf16, #tpu.memory_space<vmem>>, vector<1x128x384xbf16>
    %172 = vector.shape_cast %171 : vector<1x128x384xbf16> to vector<128x384xbf16>
    %cst_79 = arith.constant dense<0.000000e+00> : vector<8x384xf32>
    %173 = tpu.matmul %170, %172, %cst_79 {dimension_numbers = #tpu.dot_dimension_numbers<[1], [0], [0], [1], [0, 0, 1, 1], [], []>} : vector<8x128xbf16>, vector<128x384xbf16>, vector<8x384xf32> -> vector<8x384xf32>
    %c3_80 = arith.constant 3 : index
    %c0_81 = arith.constant 0 : index
    %c0_82 = arith.constant 0 : index
    %174 = vector.load %arg6[%c3_80, %c0_81, %c0_82] : memref<8x8x384xf32, #tpu.memory_space<vmem>>, vector<1x8x384xf32>
    %175 = vector.shape_cast %174 : vector<1x8x384xf32> to vector<8x384xf32>
    %176 = vector.shape_cast %173 : vector<8x384xf32> to vector<1x8x384xf32>
    tpu.vector_store %arg6[%c3_80, %c0_81, %c0_82], %176 {strides = array<i32>} : memref<8x8x384xf32, #tpu.memory_space<vmem>>, vector<1x8x384xf32>,
    %c4 = arith.constant 4 : index
    %c0_83 = arith.constant 0 : index
    %c0_84 = arith.constant 0 : index
    %177 = vector.load %arg2[%c4, %c0_83, %c0_84] : memref<8x8x128xbf16, #tpu.memory_space<vmem>>, vector<1x8x128xbf16>
    %178 = vector.shape_cast %177 : vector<1x8x128xbf16> to vector<8x128xbf16>
    %c0_85 = arith.constant 0 : index
    %c0_86 = arith.constant 0 : index
    %c0_87 = arith.constant 0 : index
    %179 = vector.load %arg3[%c0_85, %c0_86, %c0_87] : memref<2x128x384xbf16, #tpu.memory_space<vmem>>, vector<1x128x384xbf16>
    %180 = vector.shape_cast %179 : vector<1x128x384xbf16> to vector<128x384xbf16>
    %cst_88 = arith.constant dense<0.000000e+00> : vector<8x384xf32>
    %181 = tpu.matmul %178, %180, %cst_88 {dimension_numbers = #tpu.dot_dimension_numbers<[1], [0], [0], [1], [0, 0, 1, 1], [], []>} : vector<8x128xbf16>, vector<128x384xbf16>, vector<8x384xf32> -> vector<8x384xf32>
    %182 = arith.truncf %169 : vector<8x128xf32> to vector<8x128xbf16>
    %c0_89 = arith.constant 0 : index
    %c0_90 = arith.constant 0 : index
    %c0_91 = arith.constant 0 : index
    %183 = vector.load %arg4[%c0_89, %c0_90, %c0_91] : memref<2x128x384xbf16, #tpu.memory_space<vmem>>, vector<1x128x384xbf16>
    %184 = vector.shape_cast %183 : vector<1x128x384xbf16> to vector<128x384xbf16>
    %cst_92 = arith.constant dense<0.000000e+00> : vector<8x384xf32>
    %185 = tpu.matmul %182, %184, %cst_92 {dimension_numbers = #tpu.dot_dimension_numbers<[1], [0], [0], [1], [0, 0, 1, 1], [], []>} : vector<8x128xbf16>, vector<128x384xbf16>, vector<8x384xf32> -> vector<8x384xf32>
    %186 = vector.extract_strided_slice %181 {offsets = [0, 0], sizes = [8, 128], strides = [1, 1]} : vector<8x384xf32> to vector<8x128xf32>
    %187 = vector.extract_strided_slice %185 {offsets = [0, 0], sizes = [8, 128], strides = [1, 1]} : vector<8x384xf32> to vector<8x128xf32>
    %188 = arith.addf %186, %187 : vector<8x128xf32>
    %189 = arith.negf %188 : vector<8x128xf32>
    %190 = math.exp %189 : vector<8x128xf32>
    %cst_93 = arith.constant 1.000000e+00 : f32
    %191 = vector.broadcast %cst_93 : f32 to vector<8x128xf32>
    %192 = arith.addf %191, %190 : vector<8x128xf32>
    %193 = arith.divf %191, %192 : vector<8x128xf32>
    %194 = vector.extract_strided_slice %181 {offsets = [0, 128], sizes = [8, 128], strides = [1, 1]} : vector<8x384xf32> to vector<8x128xf32>
    %195 = vector.extract_strided_slice %185 {offsets = [0, 128], sizes = [8, 128], strides = [1, 1]} : vector<8x384xf32> to vector<8x128xf32>
    %196 = arith.addf %194, %195 : vector<8x128xf32>
    %197 = arith.negf %196 : vector<8x128xf32>
    %198 = math.exp %197 : vector<8x128xf32>
    %cst_94 = arith.constant 1.000000e+00 : f32
    %199 = vector.broadcast %cst_94 : f32 to vector<8x128xf32>
    %200 = arith.addf %199, %198 : vector<8x128xf32>
    %201 = arith.divf %199, %200 : vector<8x128xf32>
    %202 = vector.extract_strided_slice %181 {offsets = [0, 256], sizes = [8, 128], strides = [1, 1]} : vector<8x384xf32> to vector<8x128xf32>
    %203 = vector.extract_strided_slice %185 {offsets = [0, 256], sizes = [8, 128], strides = [1, 1]} : vector<8x384xf32> to vector<8x128xf32>
    %204 = arith.mulf %193, %203 : vector<8x128xf32>
    %205 = arith.addf %202, %204 : vector<8x128xf32>
    %206 = math.tanh %205 : vector<8x128xf32>
    %cst_95 = arith.constant 1.000000e+00 : f32
    %207 = vector.broadcast %cst_95 : f32 to vector<8x128xf32>
    %208 = arith.subf %207, %201 : vector<8x128xf32>
    %209 = arith.mulf %208, %206 : vector<8x128xf32>
    %210 = arith.mulf %201, %169 : vector<8x128xf32>
    %211 = arith.addf %209, %210 : vector<8x128xf32>
    %212 = arith.truncf %211 : vector<8x128xf32> to vector<8x128xbf16>
    %c1_96 = arith.constant 1 : index
    %c0_97 = arith.constant 0 : index
    %c0_98 = arith.constant 0 : index
    %213 = vector.load %arg3[%c1_96, %c0_97, %c0_98] : memref<2x128x384xbf16, #tpu.memory_space<vmem>>, vector<1x128x384xbf16>
    %214 = vector.shape_cast %213 : vector<1x128x384xbf16> to vector<128x384xbf16>
    %cst_99 = arith.constant dense<0.000000e+00> : vector<8x384xf32>
    %215 = tpu.matmul %212, %214, %cst_99 {dimension_numbers = #tpu.dot_dimension_numbers<[1], [0], [0], [1], [0, 0, 1, 1], [], []>} : vector<8x128xbf16>, vector<128x384xbf16>, vector<8x384xf32> -> vector<8x384xf32>
    %c4_100 = arith.constant 4 : index
    %c0_101 = arith.constant 0 : index
    %c0_102 = arith.constant 0 : index
    %216 = vector.load %arg6[%c4_100, %c0_101, %c0_102] : memref<8x8x384xf32, #tpu.memory_space<vmem>>, vector<1x8x384xf32>
    %217 = vector.shape_cast %216 : vector<1x8x384xf32> to vector<8x384xf32>
    %218 = vector.shape_cast %215 : vector<8x384xf32> to vector<1x8x384xf32>
    tpu.vector_store %arg6[%c4_100, %c0_101, %c0_102], %218 {strides = array<i32>} : memref<8x8x384xf32, #tpu.memory_space<vmem>>, vector<1x8x384xf32>,
    %c5 = arith.constant 5 : index
    %c0_103 = arith.constant 0 : index
    %c0_104 = arith.constant 0 : index
    %219 = vector.load %arg2[%c5, %c0_103, %c0_104] : memref<8x8x128xbf16, #tpu.memory_space<vmem>>, vector<1x8x128xbf16>
    %220 = vector.shape_cast %219 : vector<1x8x128xbf16> to vector<8x128xbf16>
    %c0_105 = arith.constant 0 : index
    %c0_106 = arith.constant 0 : index
    %c0_107 = arith.constant 0 : index
    %221 = vector.load %arg3[%c0_105, %c0_106, %c0_107] : memref<2x128x384xbf16, #tpu.memory_space<vmem>>, vector<1x128x384xbf16>
    %222 = vector.shape_cast %221 : vector<1x128x384xbf16> to vector<128x384xbf16>
    %cst_108 = arith.constant dense<0.000000e+00> : vector<8x384xf32>
    %223 = tpu.matmul %220, %222, %cst_108 {dimension_numbers = #tpu.dot_dimension_numbers<[1], [0], [0], [1], [0, 0, 1, 1], [], []>} : vector<8x128xbf16>, vector<128x384xbf16>, vector<8x384xf32> -> vector<8x384xf32>
    %224 = arith.truncf %211 : vector<8x128xf32> to vector<8x128xbf16>
    %c0_109 = arith.constant 0 : index
    %c0_110 = arith.constant 0 : index
    %c0_111 = arith.constant 0 : index
    %225 = vector.load %arg4[%c0_109, %c0_110, %c0_111] : memref<2x128x384xbf16, #tpu.memory_space<vmem>>, vector<1x128x384xbf16>
    %226 = vector.shape_cast %225 : vector<1x128x384xbf16> to vector<128x384xbf16>
    %cst_112 = arith.constant dense<0.000000e+00> : vector<8x384xf32>
    %227 = tpu.matmul %224, %226, %cst_112 {dimension_numbers = #tpu.dot_dimension_numbers<[1], [0], [0], [1], [0, 0, 1, 1], [], []>} : vector<8x128xbf16>, vector<128x384xbf16>, vector<8x384xf32> -> vector<8x384xf32>
    %228 = vector.extract_strided_slice %223 {offsets = [0, 0], sizes = [8, 128], strides = [1, 1]} : vector<8x384xf32> to vector<8x128xf32>
    %229 = vector.extract_strided_slice %227 {offsets = [0, 0], sizes = [8, 128], strides = [1, 1]} : vector<8x384xf32> to vector<8x128xf32>
    %230 = arith.addf %228, %229 : vector<8x128xf32>
    %231 = arith.negf %230 : vector<8x128xf32>
    %232 = math.exp %231 : vector<8x128xf32>
    %cst_113 = arith.constant 1.000000e+00 : f32
    %233 = vector.broadcast %cst_113 : f32 to vector<8x128xf32>
    %234 = arith.addf %233, %232 : vector<8x128xf32>
    %235 = arith.divf %233, %234 : vector<8x128xf32>
    %236 = vector.extract_strided_slice %223 {offsets = [0, 128], sizes = [8, 128], strides = [1, 1]} : vector<8x384xf32> to vector<8x128xf32>
    %237 = vector.extract_strided_slice %227 {offsets = [0, 128], sizes = [8, 128], strides = [1, 1]} : vector<8x384xf32> to vector<8x128xf32>
    %238 = arith.addf %236, %237 : vector<8x128xf32>
    %239 = arith.negf %238 : vector<8x128xf32>
    %240 = math.exp %239 : vector<8x128xf32>
    %cst_114 = arith.constant 1.000000e+00 : f32
    %241 = vector.broadcast %cst_114 : f32 to vector<8x128xf32>
    %242 = arith.addf %241, %240 : vector<8x128xf32>
    %243 = arith.divf %241, %242 : vector<8x128xf32>
    %244 = vector.extract_strided_slice %223 {offsets = [0, 256], sizes = [8, 128], strides = [1, 1]} : vector<8x384xf32> to vector<8x128xf32>
    %245 = vector.extract_strided_slice %227 {offsets = [0, 256], sizes = [8, 128], strides = [1, 1]} : vector<8x384xf32> to vector<8x128xf32>
    %246 = arith.mulf %235, %245 : vector<8x128xf32>
    %247 = arith.addf %244, %246 : vector<8x128xf32>
    %248 = math.tanh %247 : vector<8x128xf32>
    %cst_115 = arith.constant 1.000000e+00 : f32
    %249 = vector.broadcast %cst_115 : f32 to vector<8x128xf32>
    %250 = arith.subf %249, %243 : vector<8x128xf32>
    %251 = arith.mulf %250, %248 : vector<8x128xf32>
    %252 = arith.mulf %243, %211 : vector<8x128xf32>
    %253 = arith.addf %251, %252 : vector<8x128xf32>
    %254 = arith.truncf %253 : vector<8x128xf32> to vector<8x128xbf16>
    %c1_116 = arith.constant 1 : index
    %c0_117 = arith.constant 0 : index
    %c0_118 = arith.constant 0 : index
    %255 = vector.load %arg3[%c1_116, %c0_117, %c0_118] : memref<2x128x384xbf16, #tpu.memory_space<vmem>>, vector<1x128x384xbf16>
    %256 = vector.shape_cast %255 : vector<1x128x384xbf16> to vector<128x384xbf16>
    %cst_119 = arith.constant dense<0.000000e+00> : vector<8x384xf32>
    %257 = tpu.matmul %254, %256, %cst_119 {dimension_numbers = #tpu.dot_dimension_numbers<[1], [0], [0], [1], [0, 0, 1, 1], [], []>} : vector<8x128xbf16>, vector<128x384xbf16>, vector<8x384xf32> -> vector<8x384xf32>
    %c5_120 = arith.constant 5 : index
    %c0_121 = arith.constant 0 : index
    %c0_122 = arith.constant 0 : index
    %258 = vector.load %arg6[%c5_120, %c0_121, %c0_122] : memref<8x8x384xf32, #tpu.memory_space<vmem>>, vector<1x8x384xf32>
    %259 = vector.shape_cast %258 : vector<1x8x384xf32> to vector<8x384xf32>
    %260 = vector.shape_cast %257 : vector<8x384xf32> to vector<1x8x384xf32>
    tpu.vector_store %arg6[%c5_120, %c0_121, %c0_122], %260 {strides = array<i32>} : memref<8x8x384xf32, #tpu.memory_space<vmem>>, vector<1x8x384xf32>,
    %c6 = arith.constant 6 : index
    %c0_123 = arith.constant 0 : index
    %c0_124 = arith.constant 0 : index
    %261 = vector.load %arg2[%c6, %c0_123, %c0_124] : memref<8x8x128xbf16, #tpu.memory_space<vmem>>, vector<1x8x128xbf16>
    %262 = vector.shape_cast %261 : vector<1x8x128xbf16> to vector<8x128xbf16>
    %c0_125 = arith.constant 0 : index
    %c0_126 = arith.constant 0 : index
    %c0_127 = arith.constant 0 : index
    %263 = vector.load %arg3[%c0_125, %c0_126, %c0_127] : memref<2x128x384xbf16, #tpu.memory_space<vmem>>, vector<1x128x384xbf16>
    %264 = vector.shape_cast %263 : vector<1x128x384xbf16> to vector<128x384xbf16>
    %cst_128 = arith.constant dense<0.000000e+00> : vector<8x384xf32>
    %265 = tpu.matmul %262, %264, %cst_128 {dimension_numbers = #tpu.dot_dimension_numbers<[1], [0], [0], [1], [0, 0, 1, 1], [], []>} : vector<8x128xbf16>, vector<128x384xbf16>, vector<8x384xf32> -> vector<8x384xf32>
    %266 = arith.truncf %253 : vector<8x128xf32> to vector<8x128xbf16>
    %c0_129 = arith.constant 0 : index
    %c0_130 = arith.constant 0 : index
    %c0_131 = arith.constant 0 : index
    %267 = vector.load %arg4[%c0_129, %c0_130, %c0_131] : memref<2x128x384xbf16, #tpu.memory_space<vmem>>, vector<1x128x384xbf16>
    %268 = vector.shape_cast %267 : vector<1x128x384xbf16> to vector<128x384xbf16>
    %cst_132 = arith.constant dense<0.000000e+00> : vector<8x384xf32>
    %269 = tpu.matmul %266, %268, %cst_132 {dimension_numbers = #tpu.dot_dimension_numbers<[1], [0], [0], [1], [0, 0, 1, 1], [], []>} : vector<8x128xbf16>, vector<128x384xbf16>, vector<8x384xf32> -> vector<8x384xf32>
    %270 = vector.extract_strided_slice %265 {offsets = [0, 0], sizes = [8, 128], strides = [1, 1]} : vector<8x384xf32> to vector<8x128xf32>
    %271 = vector.extract_strided_slice %269 {offsets = [0, 0], sizes = [8, 128], strides = [1, 1]} : vector<8x384xf32> to vector<8x128xf32>
    %272 = arith.addf %270, %271 : vector<8x128xf32>
    %273 = arith.negf %272 : vector<8x128xf32>
    %274 = math.exp %273 : vector<8x128xf32>
    %cst_133 = arith.constant 1.000000e+00 : f32
    %275 = vector.broadcast %cst_133 : f32 to vector<8x128xf32>
    %276 = arith.addf %275, %274 : vector<8x128xf32>
    %277 = arith.divf %275, %276 : vector<8x128xf32>
    %278 = vector.extract_strided_slice %265 {offsets = [0, 128], sizes = [8, 128], strides = [1, 1]} : vector<8x384xf32> to vector<8x128xf32>
    %279 = vector.extract_strided_slice %269 {offsets = [0, 128], sizes = [8, 128], strides = [1, 1]} : vector<8x384xf32> to vector<8x128xf32>
    %280 = arith.addf %278, %279 : vector<8x128xf32>
    %281 = arith.negf %280 : vector<8x128xf32>
    %282 = math.exp %281 : vector<8x128xf32>
    %cst_134 = arith.constant 1.000000e+00 : f32
    %283 = vector.broadcast %cst_134 : f32 to vector<8x128xf32>
    %284 = arith.addf %283, %282 : vector<8x128xf32>
    %285 = arith.divf %283, %284 : vector<8x128xf32>
    %286 = vector.extract_strided_slice %265 {offsets = [0, 256], sizes = [8, 128], strides = [1, 1]} : vector<8x384xf32> to vector<8x128xf32>
    %287 = vector.extract_strided_slice %269 {offsets = [0, 256], sizes = [8, 128], strides = [1, 1]} : vector<8x384xf32> to vector<8x128xf32>
    %288 = arith.mulf %277, %287 : vector<8x128xf32>
    %289 = arith.addf %286, %288 : vector<8x128xf32>
    %290 = math.tanh %289 : vector<8x128xf32>
    %cst_135 = arith.constant 1.000000e+00 : f32
    %291 = vector.broadcast %cst_135 : f32 to vector<8x128xf32>
    %292 = arith.subf %291, %285 : vector<8x128xf32>
    %293 = arith.mulf %292, %290 : vector<8x128xf32>
    %294 = arith.mulf %285, %253 : vector<8x128xf32>
    %295 = arith.addf %293, %294 : vector<8x128xf32>
    %296 = arith.truncf %295 : vector<8x128xf32> to vector<8x128xbf16>
    %c1_136 = arith.constant 1 : index
    %c0_137 = arith.constant 0 : index
    %c0_138 = arith.constant 0 : index
    %297 = vector.load %arg3[%c1_136, %c0_137, %c0_138] : memref<2x128x384xbf16, #tpu.memory_space<vmem>>, vector<1x128x384xbf16>
    %298 = vector.shape_cast %297 : vector<1x128x384xbf16> to vector<128x384xbf16>
    %cst_139 = arith.constant dense<0.000000e+00> : vector<8x384xf32>
    %299 = tpu.matmul %296, %298, %cst_139 {dimension_numbers = #tpu.dot_dimension_numbers<[1], [0], [0], [1], [0, 0, 1, 1], [], []>} : vector<8x128xbf16>, vector<128x384xbf16>, vector<8x384xf32> -> vector<8x384xf32>
    %c6_140 = arith.constant 6 : index
    %c0_141 = arith.constant 0 : index
    %c0_142 = arith.constant 0 : index
    %300 = vector.load %arg6[%c6_140, %c0_141, %c0_142] : memref<8x8x384xf32, #tpu.memory_space<vmem>>, vector<1x8x384xf32>
    %301 = vector.shape_cast %300 : vector<1x8x384xf32> to vector<8x384xf32>
    %302 = vector.shape_cast %299 : vector<8x384xf32> to vector<1x8x384xf32>
    tpu.vector_store %arg6[%c6_140, %c0_141, %c0_142], %302 {strides = array<i32>} : memref<8x8x384xf32, #tpu.memory_space<vmem>>, vector<1x8x384xf32>,
    %c7 = arith.constant 7 : index
    %c0_143 = arith.constant 0 : index
    %c0_144 = arith.constant 0 : index
    %303 = vector.load %arg2[%c7, %c0_143, %c0_144] : memref<8x8x128xbf16, #tpu.memory_space<vmem>>, vector<1x8x128xbf16>
    %304 = vector.shape_cast %303 : vector<1x8x128xbf16> to vector<8x128xbf16>
    %c0_145 = arith.constant 0 : index
    %c0_146 = arith.constant 0 : index
    %c0_147 = arith.constant 0 : index
    %305 = vector.load %arg3[%c0_145, %c0_146, %c0_147] : memref<2x128x384xbf16, #tpu.memory_space<vmem>>, vector<1x128x384xbf16>
    %306 = vector.shape_cast %305 : vector<1x128x384xbf16> to vector<128x384xbf16>
    %cst_148 = arith.constant dense<0.000000e+00> : vector<8x384xf32>
    %307 = tpu.matmul %304, %306, %cst_148 {dimension_numbers = #tpu.dot_dimension_numbers<[1], [0], [0], [1], [0, 0, 1, 1], [], []>} : vector<8x128xbf16>, vector<128x384xbf16>, vector<8x384xf32> -> vector<8x384xf32>
    %308 = arith.truncf %295 : vector<8x128xf32> to vector<8x128xbf16>
    %c0_149 = arith.constant 0 : index
    %c0_150 = arith.constant 0 : index
    %c0_151 = arith.constant 0 : index
    %309 = vector.load %arg4[%c0_149, %c0_150, %c0_151] : memref<2x128x384xbf16, #tpu.memory_space<vmem>>, vector<1x128x384xbf16>
    %310 = vector.shape_cast %309 : vector<1x128x384xbf16> to vector<128x384xbf16>
    %cst_152 = arith.constant dense<0.000000e+00> : vector<8x384xf32>
    %311 = tpu.matmul %308, %310, %cst_152 {dimension_numbers = #tpu.dot_dimension_numbers<[1], [0], [0], [1], [0, 0, 1, 1], [], []>} : vector<8x128xbf16>, vector<128x384xbf16>, vector<8x384xf32> -> vector<8x384xf32>
    %312 = vector.extract_strided_slice %307 {offsets = [0, 0], sizes = [8, 128], strides = [1, 1]} : vector<8x384xf32> to vector<8x128xf32>
    %313 = vector.extract_strided_slice %311 {offsets = [0, 0], sizes = [8, 128], strides = [1, 1]} : vector<8x384xf32> to vector<8x128xf32>
    %314 = arith.addf %312, %313 : vector<8x128xf32>
    %315 = arith.negf %314 : vector<8x128xf32>
    %316 = math.exp %315 : vector<8x128xf32>
    %cst_153 = arith.constant 1.000000e+00 : f32
    %317 = vector.broadcast %cst_153 : f32 to vector<8x128xf32>
    %318 = arith.addf %317, %316 : vector<8x128xf32>
    %319 = arith.divf %317, %318 : vector<8x128xf32>
    %320 = vector.extract_strided_slice %307 {offsets = [0, 128], sizes = [8, 128], strides = [1, 1]} : vector<8x384xf32> to vector<8x128xf32>
    %321 = vector.extract_strided_slice %311 {offsets = [0, 128], sizes = [8, 128], strides = [1, 1]} : vector<8x384xf32> to vector<8x128xf32>
    %322 = arith.addf %320, %321 : vector<8x128xf32>
    %323 = arith.negf %322 : vector<8x128xf32>
    %324 = math.exp %323 : vector<8x128xf32>
    %cst_154 = arith.constant 1.000000e+00 : f32
    %325 = vector.broadcast %cst_154 : f32 to vector<8x128xf32>
    %326 = arith.addf %325, %324 : vector<8x128xf32>
    %327 = arith.divf %325, %326 : vector<8x128xf32>
    %328 = vector.extract_strided_slice %307 {offsets = [0, 256], sizes = [8, 128], strides = [1, 1]} : vector<8x384xf32> to vector<8x128xf32>
    %329 = vector.extract_strided_slice %311 {offsets = [0, 256], sizes = [8, 128], strides = [1, 1]} : vector<8x384xf32> to vector<8x128xf32>
    %330 = arith.mulf %319, %329 : vector<8x128xf32>
    %331 = arith.addf %328, %330 : vector<8x128xf32>
    %332 = math.tanh %331 : vector<8x128xf32>
    %cst_155 = arith.constant 1.000000e+00 : f32
    %333 = vector.broadcast %cst_155 : f32 to vector<8x128xf32>
    %334 = arith.subf %333, %327 : vector<8x128xf32>
    %335 = arith.mulf %334, %332 : vector<8x128xf32>
    %336 = arith.mulf %327, %295 : vector<8x128xf32>
    %337 = arith.addf %335, %336 : vector<8x128xf32>
    %338 = arith.truncf %337 : vector<8x128xf32> to vector<8x128xbf16>
    %c1_156 = arith.constant 1 : index
    %c0_157 = arith.constant 0 : index
    %c0_158 = arith.constant 0 : index
    %339 = vector.load %arg3[%c1_156, %c0_157, %c0_158] : memref<2x128x384xbf16, #tpu.memory_space<vmem>>, vector<1x128x384xbf16>
    %340 = vector.shape_cast %339 : vector<1x128x384xbf16> to vector<128x384xbf16>
    %cst_159 = arith.constant dense<0.000000e+00> : vector<8x384xf32>
    %341 = tpu.matmul %338, %340, %cst_159 {dimension_numbers = #tpu.dot_dimension_numbers<[1], [0], [0], [1], [0, 0, 1, 1], [], []>} : vector<8x128xbf16>, vector<128x384xbf16>, vector<8x384xf32> -> vector<8x384xf32>
    %c7_160 = arith.constant 7 : index
    %c0_161 = arith.constant 0 : index
    %c0_162 = arith.constant 0 : index
    %342 = vector.load %arg6[%c7_160, %c0_161, %c0_162] : memref<8x8x384xf32, #tpu.memory_space<vmem>>, vector<1x8x384xf32>
    %343 = vector.shape_cast %342 : vector<1x8x384xf32> to vector<8x384xf32>
    %344 = vector.shape_cast %341 : vector<8x384xf32> to vector<1x8x384xf32>
    tpu.vector_store %arg6[%c7_160, %c0_161, %c0_162], %344 {strides = array<i32>} : memref<8x8x384xf32, #tpu.memory_space<vmem>>, vector<1x8x384xf32>,
    %cst_163 = arith.constant 0.000000e+00 : f32
    %345 = vector.broadcast %cst_163 : f32 to vector<8x128xf32>
    %c0_164 = arith.constant 0 : index
    %c0_165 = arith.constant 0 : index
    %c0_166 = arith.constant 0 : index
    %346 = vector.load %arg6[%c0_164, %c0_165, %c0_166] : memref<8x8x384xf32, #tpu.memory_space<vmem>>, vector<1x8x384xf32>
    %347 = vector.shape_cast %346 : vector<1x8x384xf32> to vector<8x384xf32>
    %348 = arith.truncf %345 : vector<8x128xf32> to vector<8x128xbf16>
    %c1_167 = arith.constant 1 : index
    %c0_168 = arith.constant 0 : index
    %c0_169 = arith.constant 0 : index
    %349 = vector.load %arg4[%c1_167, %c0_168, %c0_169] : memref<2x128x384xbf16, #tpu.memory_space<vmem>>, vector<1x128x384xbf16>
    %350 = vector.shape_cast %349 : vector<1x128x384xbf16> to vector<128x384xbf16>
    %cst_170 = arith.constant dense<0.000000e+00> : vector<8x384xf32>
    %351 = tpu.matmul %348, %350, %cst_170 {dimension_numbers = #tpu.dot_dimension_numbers<[1], [0], [0], [1], [0, 0, 1, 1], [], []>} : vector<8x128xbf16>, vector<128x384xbf16>, vector<8x384xf32> -> vector<8x384xf32>
    %352 = vector.extract_strided_slice %347 {offsets = [0, 0], sizes = [8, 128], strides = [1, 1]} : vector<8x384xf32> to vector<8x128xf32>
    %353 = vector.extract_strided_slice %351 {offsets = [0, 0], sizes = [8, 128], strides = [1, 1]} : vector<8x384xf32> to vector<8x128xf32>
    %354 = arith.addf %352, %353 : vector<8x128xf32>
    %355 = arith.negf %354 : vector<8x128xf32>
    %356 = math.exp %355 : vector<8x128xf32>
    %cst_171 = arith.constant 1.000000e+00 : f32
    %357 = vector.broadcast %cst_171 : f32 to vector<8x128xf32>
    %358 = arith.addf %357, %356 : vector<8x128xf32>
    %359 = arith.divf %357, %358 : vector<8x128xf32>
    %360 = vector.extract_strided_slice %347 {offsets = [0, 128], sizes = [8, 128], strides = [1, 1]} : vector<8x384xf32> to vector<8x128xf32>
    %361 = vector.extract_strided_slice %351 {offsets = [0, 128], sizes = [8, 128], strides = [1, 1]} : vector<8x384xf32> to vector<8x128xf32>
    %362 = arith.addf %360, %361 : vector<8x128xf32>
    %363 = arith.negf %362 : vector<8x128xf32>
    %364 = math.exp %363 : vector<8x128xf32>
    %cst_172 = arith.constant 1.000000e+00 : f32
    %365 = vector.broadcast %cst_172 : f32 to vector<8x128xf32>
    %366 = arith.addf %365, %364 : vector<8x128xf32>
    %367 = arith.divf %365, %366 : vector<8x128xf32>
    %368 = vector.extract_strided_slice %347 {offsets = [0, 256], sizes = [8, 128], strides = [1, 1]} : vector<8x384xf32> to vector<8x128xf32>
    %369 = vector.extract_strided_slice %351 {offsets = [0, 256], sizes = [8, 128], strides = [1, 1]} : vector<8x384xf32> to vector<8x128xf32>
    %370 = arith.mulf %359, %369 : vector<8x128xf32>
    %371 = arith.addf %368, %370 : vector<8x128xf32>
    %372 = math.tanh %371 : vector<8x128xf32>
    %cst_173 = arith.constant 1.000000e+00 : f32
    %373 = vector.broadcast %cst_173 : f32 to vector<8x128xf32>
    %374 = arith.subf %373, %367 : vector<8x128xf32>
    %375 = arith.mulf %374, %372 : vector<8x128xf32>
    %376 = arith.mulf %367, %345 : vector<8x128xf32>
    %377 = arith.addf %375, %376 : vector<8x128xf32>
    %c0_i32_174 = arith.constant 0 : i32
    %378 = vector.broadcast %c0_i32_174 : i32 to vector<8x1xi32>
    %379 = arith.cmpi eq, %6, %378 : vector<8x1xi32>
    %380 = vector.shape_cast %379 : vector<8x1xi1> to vector<8x1xi1>
    %381 = vector.broadcast %380 : vector<8x1xi1> to vector<8x128xi1>
    %382 = arith.select %381, %377, %7 : vector<8x128xi1>, vector<8x128xf32>
    %c1_175 = arith.constant 1 : index
    %c0_176 = arith.constant 0 : index
    %c0_177 = arith.constant 0 : index
    %383 = vector.load %arg6[%c1_175, %c0_176, %c0_177] : memref<8x8x384xf32, #tpu.memory_space<vmem>>, vector<1x8x384xf32>
    %384 = vector.shape_cast %383 : vector<1x8x384xf32> to vector<8x384xf32>
    %385 = arith.truncf %377 : vector<8x128xf32> to vector<8x128xbf16>
    %c1_178 = arith.constant 1 : index
    %c0_179 = arith.constant 0 : index
    %c0_180 = arith.constant 0 : index
    %386 = vector.load %arg4[%c1_178, %c0_179, %c0_180] : memref<2x128x384xbf16, #tpu.memory_space<vmem>>, vector<1x128x384xbf16>
    %387 = vector.shape_cast %386 : vector<1x128x384xbf16> to vector<128x384xbf16>
    %cst_181 = arith.constant dense<0.000000e+00> : vector<8x384xf32>
    %388 = tpu.matmul %385, %387, %cst_181 {dimension_numbers = #tpu.dot_dimension_numbers<[1], [0], [0], [1], [0, 0, 1, 1], [], []>} : vector<8x128xbf16>, vector<128x384xbf16>, vector<8x384xf32> -> vector<8x384xf32>
    %389 = vector.extract_strided_slice %384 {offsets = [0, 0], sizes = [8, 128], strides = [1, 1]} : vector<8x384xf32> to vector<8x128xf32>
    %390 = vector.extract_strided_slice %388 {offsets = [0, 0], sizes = [8, 128], strides = [1, 1]} : vector<8x384xf32> to vector<8x128xf32>
    %391 = arith.addf %389, %390 : vector<8x128xf32>
    %392 = arith.negf %391 : vector<8x128xf32>
    %393 = math.exp %392 : vector<8x128xf32>
    %cst_182 = arith.constant 1.000000e+00 : f32
    %394 = vector.broadcast %cst_182 : f32 to vector<8x128xf32>
    %395 = arith.addf %394, %393 : vector<8x128xf32>
    %396 = arith.divf %394, %395 : vector<8x128xf32>
    %397 = vector.extract_strided_slice %384 {offsets = [0, 128], sizes = [8, 128], strides = [1, 1]} : vector<8x384xf32> to vector<8x128xf32>
    %398 = vector.extract_strided_slice %388 {offsets = [0, 128], sizes = [8, 128], strides = [1, 1]} : vector<8x384xf32> to vector<8x128xf32>
    %399 = arith.addf %397, %398 : vector<8x128xf32>
    %400 = arith.negf %399 : vector<8x128xf32>
    %401 = math.exp %400 : vector<8x128xf32>
    %cst_183 = arith.constant 1.000000e+00 : f32
    %402 = vector.broadcast %cst_183 : f32 to vector<8x128xf32>
    %403 = arith.addf %402, %401 : vector<8x128xf32>
    %404 = arith.divf %402, %403 : vector<8x128xf32>
    %405 = vector.extract_strided_slice %384 {offsets = [0, 256], sizes = [8, 128], strides = [1, 1]} : vector<8x384xf32> to vector<8x128xf32>
    %406 = vector.extract_strided_slice %388 {offsets = [0, 256], sizes = [8, 128], strides = [1, 1]} : vector<8x384xf32> to vector<8x128xf32>
    %407 = arith.mulf %396, %406 : vector<8x128xf32>
    %408 = arith.addf %405, %407 : vector<8x128xf32>
    %409 = math.tanh %408 : vector<8x128xf32>
    %cst_184 = arith.constant 1.000000e+00 : f32
    %410 = vector.broadcast %cst_184 : f32 to vector<8x128xf32>
    %411 = arith.subf %410, %404 : vector<8x128xf32>
    %412 = arith.mulf %411, %409 : vector<8x128xf32>
    %413 = arith.mulf %404, %377 : vector<8x128xf32>
    %414 = arith.addf %412, %413 : vector<8x128xf32>
    %c1_i32_185 = arith.constant 1 : i32
    %415 = vector.broadcast %c1_i32_185 : i32 to vector<8x1xi32>
    %416 = arith.cmpi eq, %6, %415 : vector<8x1xi32>
    %417 = vector.shape_cast %416 : vector<8x1xi1> to vector<8x1xi1>
    %418 = vector.broadcast %417 : vector<8x1xi1> to vector<8x128xi1>
    %419 = arith.select %418, %414, %382 : vector<8x128xi1>, vector<8x128xf32>
    %c2_186 = arith.constant 2 : index
    %c0_187 = arith.constant 0 : index
    %c0_188 = arith.constant 0 : index
    %420 = vector.load %arg6[%c2_186, %c0_187, %c0_188] : memref<8x8x384xf32, #tpu.memory_space<vmem>>, vector<1x8x384xf32>
    %421 = vector.shape_cast %420 : vector<1x8x384xf32> to vector<8x384xf32>
    %422 = arith.truncf %414 : vector<8x128xf32> to vector<8x128xbf16>
    %c1_189 = arith.constant 1 : index
    %c0_190 = arith.constant 0 : index
    %c0_191 = arith.constant 0 : index
    %423 = vector.load %arg4[%c1_189, %c0_190, %c0_191] : memref<2x128x384xbf16, #tpu.memory_space<vmem>>, vector<1x128x384xbf16>
    %424 = vector.shape_cast %423 : vector<1x128x384xbf16> to vector<128x384xbf16>
    %cst_192 = arith.constant dense<0.000000e+00> : vector<8x384xf32>
    %425 = tpu.matmul %422, %424, %cst_192 {dimension_numbers = #tpu.dot_dimension_numbers<[1], [0], [0], [1], [0, 0, 1, 1], [], []>} : vector<8x128xbf16>, vector<128x384xbf16>, vector<8x384xf32> -> vector<8x384xf32>
    %426 = vector.extract_strided_slice %421 {offsets = [0, 0], sizes = [8, 128], strides = [1, 1]} : vector<8x384xf32> to vector<8x128xf32>
    %427 = vector.extract_strided_slice %425 {offsets = [0, 0], sizes = [8, 128], strides = [1, 1]} : vector<8x384xf32> to vector<8x128xf32>
    %428 = arith.addf %426, %427 : vector<8x128xf32>
    %429 = arith.negf %428 : vector<8x128xf32>
    %430 = math.exp %429 : vector<8x128xf32>
    %cst_193 = arith.constant 1.000000e+00 : f32
    %431 = vector.broadcast %cst_193 : f32 to vector<8x128xf32>
    %432 = arith.addf %431, %430 : vector<8x128xf32>
    %433 = arith.divf %431, %432 : vector<8x128xf32>
    %434 = vector.extract_strided_slice %421 {offsets = [0, 128], sizes = [8, 128], strides = [1, 1]} : vector<8x384xf32> to vector<8x128xf32>
    %435 = vector.extract_strided_slice %425 {offsets = [0, 128], sizes = [8, 128], strides = [1, 1]} : vector<8x384xf32> to vector<8x128xf32>
    %436 = arith.addf %434, %435 : vector<8x128xf32>
    %437 = arith.negf %436 : vector<8x128xf32>
    %438 = math.exp %437 : vector<8x128xf32>
    %cst_194 = arith.constant 1.000000e+00 : f32
    %439 = vector.broadcast %cst_194 : f32 to vector<8x128xf32>
    %440 = arith.addf %439, %438 : vector<8x128xf32>
    %441 = arith.divf %439, %440 : vector<8x128xf32>
    %442 = vector.extract_strided_slice %421 {offsets = [0, 256], sizes = [8, 128], strides = [1, 1]} : vector<8x384xf32> to vector<8x128xf32>
    %443 = vector.extract_strided_slice %425 {offsets = [0, 256], sizes = [8, 128], strides = [1, 1]} : vector<8x384xf32> to vector<8x128xf32>
    %444 = arith.mulf %433, %443 : vector<8x128xf32>
    %445 = arith.addf %442, %444 : vector<8x128xf32>
    %446 = math.tanh %445 : vector<8x128xf32>
    %cst_195 = arith.constant 1.000000e+00 : f32
    %447 = vector.broadcast %cst_195 : f32 to vector<8x128xf32>
    %448 = arith.subf %447, %441 : vector<8x128xf32>
    %449 = arith.mulf %448, %446 : vector<8x128xf32>
    %450 = arith.mulf %441, %414 : vector<8x128xf32>
    %451 = arith.addf %449, %450 : vector<8x128xf32>
    %c2_i32 = arith.constant 2 : i32
    %452 = vector.broadcast %c2_i32 : i32 to vector<8x1xi32>
    %453 = arith.cmpi eq, %6, %452 : vector<8x1xi32>
    %454 = vector.shape_cast %453 : vector<8x1xi1> to vector<8x1xi1>
    %455 = vector.broadcast %454 : vector<8x1xi1> to vector<8x128xi1>
    %456 = arith.select %455, %451, %419 : vector<8x128xi1>, vector<8x128xf32>
    %c3_196 = arith.constant 3 : index
    %c0_197 = arith.constant 0 : index
    %c0_198 = arith.constant 0 : index
    %457 = vector.load %arg6[%c3_196, %c0_197, %c0_198] : memref<8x8x384xf32, #tpu.memory_space<vmem>>, vector<1x8x384xf32>
    %458 = vector.shape_cast %457 : vector<1x8x384xf32> to vector<8x384xf32>
    %459 = arith.truncf %451 : vector<8x128xf32> to vector<8x128xbf16>
    %c1_199 = arith.constant 1 : index
    %c0_200 = arith.constant 0 : index
    %c0_201 = arith.constant 0 : index
    %460 = vector.load %arg4[%c1_199, %c0_200, %c0_201] : memref<2x128x384xbf16, #tpu.memory_space<vmem>>, vector<1x128x384xbf16>
    %461 = vector.shape_cast %460 : vector<1x128x384xbf16> to vector<128x384xbf16>
    %cst_202 = arith.constant dense<0.000000e+00> : vector<8x384xf32>
    %462 = tpu.matmul %459, %461, %cst_202 {dimension_numbers = #tpu.dot_dimension_numbers<[1], [0], [0], [1], [0, 0, 1, 1], [], []>} : vector<8x128xbf16>, vector<128x384xbf16>, vector<8x384xf32> -> vector<8x384xf32>
    %463 = vector.extract_strided_slice %458 {offsets = [0, 0], sizes = [8, 128], strides = [1, 1]} : vector<8x384xf32> to vector<8x128xf32>
    %464 = vector.extract_strided_slice %462 {offsets = [0, 0], sizes = [8, 128], strides = [1, 1]} : vector<8x384xf32> to vector<8x128xf32>
    %465 = arith.addf %463, %464 : vector<8x128xf32>
    %466 = arith.negf %465 : vector<8x128xf32>
    %467 = math.exp %466 : vector<8x128xf32>
    %cst_203 = arith.constant 1.000000e+00 : f32
    %468 = vector.broadcast %cst_203 : f32 to vector<8x128xf32>
    %469 = arith.addf %468, %467 : vector<8x128xf32>
    %470 = arith.divf %468, %469 : vector<8x128xf32>
    %471 = vector.extract_strided_slice %458 {offsets = [0, 128], sizes = [8, 128], strides = [1, 1]} : vector<8x384xf32> to vector<8x128xf32>
    %472 = vector.extract_strided_slice %462 {offsets = [0, 128], sizes = [8, 128], strides = [1, 1]} : vector<8x384xf32> to vector<8x128xf32>
    %473 = arith.addf %471, %472 : vector<8x128xf32>
    %474 = arith.negf %473 : vector<8x128xf32>
    %475 = math.exp %474 : vector<8x128xf32>
    %cst_204 = arith.constant 1.000000e+00 : f32
    %476 = vector.broadcast %cst_204 : f32 to vector<8x128xf32>
    %477 = arith.addf %476, %475 : vector<8x128xf32>
    %478 = arith.divf %476, %477 : vector<8x128xf32>
    %479 = vector.extract_strided_slice %458 {offsets = [0, 256], sizes = [8, 128], strides = [1, 1]} : vector<8x384xf32> to vector<8x128xf32>
    %480 = vector.extract_strided_slice %462 {offsets = [0, 256], sizes = [8, 128], strides = [1, 1]} : vector<8x384xf32> to vector<8x128xf32>
    %481 = arith.mulf %470, %480 : vector<8x128xf32>
    %482 = arith.addf %479, %481 : vector<8x128xf32>
    %483 = math.tanh %482 : vector<8x128xf32>
    %cst_205 = arith.constant 1.000000e+00 : f32
    %484 = vector.broadcast %cst_205 : f32 to vector<8x128xf32>
    %485 = arith.subf %484, %478 : vector<8x128xf32>
    %486 = arith.mulf %485, %483 : vector<8x128xf32>
    %487 = arith.mulf %478, %451 : vector<8x128xf32>
    %488 = arith.addf %486, %487 : vector<8x128xf32>
    %c3_i32 = arith.constant 3 : i32
    %489 = vector.broadcast %c3_i32 : i32 to vector<8x1xi32>
    %490 = arith.cmpi eq, %6, %489 : vector<8x1xi32>
    %491 = vector.shape_cast %490 : vector<8x1xi1> to vector<8x1xi1>
    %492 = vector.broadcast %491 : vector<8x1xi1> to vector<8x128xi1>
    %493 = arith.select %492, %488, %456 : vector<8x128xi1>, vector<8x128xf32>
    %c4_206 = arith.constant 4 : index
    %c0_207 = arith.constant 0 : index
    %c0_208 = arith.constant 0 : index
    %494 = vector.load %arg6[%c4_206, %c0_207, %c0_208] : memref<8x8x384xf32, #tpu.memory_space<vmem>>, vector<1x8x384xf32>
    %495 = vector.shape_cast %494 : vector<1x8x384xf32> to vector<8x384xf32>
    %496 = arith.truncf %488 : vector<8x128xf32> to vector<8x128xbf16>
    %c1_209 = arith.constant 1 : index
    %c0_210 = arith.constant 0 : index
    %c0_211 = arith.constant 0 : index
    %497 = vector.load %arg4[%c1_209, %c0_210, %c0_211] : memref<2x128x384xbf16, #tpu.memory_space<vmem>>, vector<1x128x384xbf16>
    %498 = vector.shape_cast %497 : vector<1x128x384xbf16> to vector<128x384xbf16>
    %cst_212 = arith.constant dense<0.000000e+00> : vector<8x384xf32>
    %499 = tpu.matmul %496, %498, %cst_212 {dimension_numbers = #tpu.dot_dimension_numbers<[1], [0], [0], [1], [0, 0, 1, 1], [], []>} : vector<8x128xbf16>, vector<128x384xbf16>, vector<8x384xf32> -> vector<8x384xf32>
    %500 = vector.extract_strided_slice %495 {offsets = [0, 0], sizes = [8, 128], strides = [1, 1]} : vector<8x384xf32> to vector<8x128xf32>
    %501 = vector.extract_strided_slice %499 {offsets = [0, 0], sizes = [8, 128], strides = [1, 1]} : vector<8x384xf32> to vector<8x128xf32>
    %502 = arith.addf %500, %501 : vector<8x128xf32>
    %503 = arith.negf %502 : vector<8x128xf32>
    %504 = math.exp %503 : vector<8x128xf32>
    %cst_213 = arith.constant 1.000000e+00 : f32
    %505 = vector.broadcast %cst_213 : f32 to vector<8x128xf32>
    %506 = arith.addf %505, %504 : vector<8x128xf32>
    %507 = arith.divf %505, %506 : vector<8x128xf32>
    %508 = vector.extract_strided_slice %495 {offsets = [0, 128], sizes = [8, 128], strides = [1, 1]} : vector<8x384xf32> to vector<8x128xf32>
    %509 = vector.extract_strided_slice %499 {offsets = [0, 128], sizes = [8, 128], strides = [1, 1]} : vector<8x384xf32> to vector<8x128xf32>
    %510 = arith.addf %508, %509 : vector<8x128xf32>
    %511 = arith.negf %510 : vector<8x128xf32>
    %512 = math.exp %511 : vector<8x128xf32>
    %cst_214 = arith.constant 1.000000e+00 : f32
    %513 = vector.broadcast %cst_214 : f32 to vector<8x128xf32>
    %514 = arith.addf %513, %512 : vector<8x128xf32>
    %515 = arith.divf %513, %514 : vector<8x128xf32>
    %516 = vector.extract_strided_slice %495 {offsets = [0, 256], sizes = [8, 128], strides = [1, 1]} : vector<8x384xf32> to vector<8x128xf32>
    %517 = vector.extract_strided_slice %499 {offsets = [0, 256], sizes = [8, 128], strides = [1, 1]} : vector<8x384xf32> to vector<8x128xf32>
    %518 = arith.mulf %507, %517 : vector<8x128xf32>
    %519 = arith.addf %516, %518 : vector<8x128xf32>
    %520 = math.tanh %519 : vector<8x128xf32>
    %cst_215 = arith.constant 1.000000e+00 : f32
    %521 = vector.broadcast %cst_215 : f32 to vector<8x128xf32>
    %522 = arith.subf %521, %515 : vector<8x128xf32>
    %523 = arith.mulf %522, %520 : vector<8x128xf32>
    %524 = arith.mulf %515, %488 : vector<8x128xf32>
    %525 = arith.addf %523, %524 : vector<8x128xf32>
    %c4_i32 = arith.constant 4 : i32
    %526 = vector.broadcast %c4_i32 : i32 to vector<8x1xi32>
    %527 = arith.cmpi eq, %6, %526 : vector<8x1xi32>
    %528 = vector.shape_cast %527 : vector<8x1xi1> to vector<8x1xi1>
    %529 = vector.broadcast %528 : vector<8x1xi1> to vector<8x128xi1>
    %530 = arith.select %529, %525, %493 : vector<8x128xi1>, vector<8x128xf32>
    %c5_216 = arith.constant 5 : index
    %c0_217 = arith.constant 0 : index
    %c0_218 = arith.constant 0 : index
    %531 = vector.load %arg6[%c5_216, %c0_217, %c0_218] : memref<8x8x384xf32, #tpu.memory_space<vmem>>, vector<1x8x384xf32>
    %532 = vector.shape_cast %531 : vector<1x8x384xf32> to vector<8x384xf32>
    %533 = arith.truncf %525 : vector<8x128xf32> to vector<8x128xbf16>
    %c1_219 = arith.constant 1 : index
    %c0_220 = arith.constant 0 : index
    %c0_221 = arith.constant 0 : index
    %534 = vector.load %arg4[%c1_219, %c0_220, %c0_221] : memref<2x128x384xbf16, #tpu.memory_space<vmem>>, vector<1x128x384xbf16>
    %535 = vector.shape_cast %534 : vector<1x128x384xbf16> to vector<128x384xbf16>
    %cst_222 = arith.constant dense<0.000000e+00> : vector<8x384xf32>
    %536 = tpu.matmul %533, %535, %cst_222 {dimension_numbers = #tpu.dot_dimension_numbers<[1], [0], [0], [1], [0, 0, 1, 1], [], []>} : vector<8x128xbf16>, vector<128x384xbf16>, vector<8x384xf32> -> vector<8x384xf32>
    %537 = vector.extract_strided_slice %532 {offsets = [0, 0], sizes = [8, 128], strides = [1, 1]} : vector<8x384xf32> to vector<8x128xf32>
    %538 = vector.extract_strided_slice %536 {offsets = [0, 0], sizes = [8, 128], strides = [1, 1]} : vector<8x384xf32> to vector<8x128xf32>
    %539 = arith.addf %537, %538 : vector<8x128xf32>
    %540 = arith.negf %539 : vector<8x128xf32>
    %541 = math.exp %540 : vector<8x128xf32>
    %cst_223 = arith.constant 1.000000e+00 : f32
    %542 = vector.broadcast %cst_223 : f32 to vector<8x128xf32>
    %543 = arith.addf %542, %541 : vector<8x128xf32>
    %544 = arith.divf %542, %543 : vector<8x128xf32>
    %545 = vector.extract_strided_slice %532 {offsets = [0, 128], sizes = [8, 128], strides = [1, 1]} : vector<8x384xf32> to vector<8x128xf32>
    %546 = vector.extract_strided_slice %536 {offsets = [0, 128], sizes = [8, 128], strides = [1, 1]} : vector<8x384xf32> to vector<8x128xf32>
    %547 = arith.addf %545, %546 : vector<8x128xf32>
    %548 = arith.negf %547 : vector<8x128xf32>
    %549 = math.exp %548 : vector<8x128xf32>
    %cst_224 = arith.constant 1.000000e+00 : f32
    %550 = vector.broadcast %cst_224 : f32 to vector<8x128xf32>
    %551 = arith.addf %550, %549 : vector<8x128xf32>
    %552 = arith.divf %550, %551 : vector<8x128xf32>
    %553 = vector.extract_strided_slice %532 {offsets = [0, 256], sizes = [8, 128], strides = [1, 1]} : vector<8x384xf32> to vector<8x128xf32>
    %554 = vector.extract_strided_slice %536 {offsets = [0, 256], sizes = [8, 128], strides = [1, 1]} : vector<8x384xf32> to vector<8x128xf32>
    %555 = arith.mulf %544, %554 : vector<8x128xf32>
    %556 = arith.addf %553, %555 : vector<8x128xf32>
    %557 = math.tanh %556 : vector<8x128xf32>
    %cst_225 = arith.constant 1.000000e+00 : f32
    %558 = vector.broadcast %cst_225 : f32 to vector<8x128xf32>
    %559 = arith.subf %558, %552 : vector<8x128xf32>
    %560 = arith.mulf %559, %557 : vector<8x128xf32>
    %561 = arith.mulf %552, %525 : vector<8x128xf32>
    %562 = arith.addf %560, %561 : vector<8x128xf32>
    %c5_i32 = arith.constant 5 : i32
    %563 = vector.broadcast %c5_i32 : i32 to vector<8x1xi32>
    %564 = arith.cmpi eq, %6, %563 : vector<8x1xi32>
    %565 = vector.shape_cast %564 : vector<8x1xi1> to vector<8x1xi1>
    %566 = vector.broadcast %565 : vector<8x1xi1> to vector<8x128xi1>
    %567 = arith.select %566, %562, %530 : vector<8x128xi1>, vector<8x128xf32>
    %c6_226 = arith.constant 6 : index
    %c0_227 = arith.constant 0 : index
    %c0_228 = arith.constant 0 : index
    %568 = vector.load %arg6[%c6_226, %c0_227, %c0_228] : memref<8x8x384xf32, #tpu.memory_space<vmem>>, vector<1x8x384xf32>
    %569 = vector.shape_cast %568 : vector<1x8x384xf32> to vector<8x384xf32>
    %570 = arith.truncf %562 : vector<8x128xf32> to vector<8x128xbf16>
    %c1_229 = arith.constant 1 : index
    %c0_230 = arith.constant 0 : index
    %c0_231 = arith.constant 0 : index
    %571 = vector.load %arg4[%c1_229, %c0_230, %c0_231] : memref<2x128x384xbf16, #tpu.memory_space<vmem>>, vector<1x128x384xbf16>
    %572 = vector.shape_cast %571 : vector<1x128x384xbf16> to vector<128x384xbf16>
    %cst_232 = arith.constant dense<0.000000e+00> : vector<8x384xf32>
    %573 = tpu.matmul %570, %572, %cst_232 {dimension_numbers = #tpu.dot_dimension_numbers<[1], [0], [0], [1], [0, 0, 1, 1], [], []>} : vector<8x128xbf16>, vector<128x384xbf16>, vector<8x384xf32> -> vector<8x384xf32>
    %574 = vector.extract_strided_slice %569 {offsets = [0, 0], sizes = [8, 128], strides = [1, 1]} : vector<8x384xf32> to vector<8x128xf32>
    %575 = vector.extract_strided_slice %573 {offsets = [0, 0], sizes = [8, 128], strides = [1, 1]} : vector<8x384xf32> to vector<8x128xf32>
    %576 = arith.addf %574, %575 : vector<8x128xf32>
    %577 = arith.negf %576 : vector<8x128xf32>
    %578 = math.exp %577 : vector<8x128xf32>
    %cst_233 = arith.constant 1.000000e+00 : f32
    %579 = vector.broadcast %cst_233 : f32 to vector<8x128xf32>
    %580 = arith.addf %579, %578 : vector<8x128xf32>
    %581 = arith.divf %579, %580 : vector<8x128xf32>
    %582 = vector.extract_strided_slice %569 {offsets = [0, 128], sizes = [8, 128], strides = [1, 1]} : vector<8x384xf32> to vector<8x128xf32>
    %583 = vector.extract_strided_slice %573 {offsets = [0, 128], sizes = [8, 128], strides = [1, 1]} : vector<8x384xf32> to vector<8x128xf32>
    %584 = arith.addf %582, %583 : vector<8x128xf32>
    %585 = arith.negf %584 : vector<8x128xf32>
    %586 = math.exp %585 : vector<8x128xf32>
    %cst_234 = arith.constant 1.000000e+00 : f32
    %587 = vector.broadcast %cst_234 : f32 to vector<8x128xf32>
    %588 = arith.addf %587, %586 : vector<8x128xf32>
    %589 = arith.divf %587, %588 : vector<8x128xf32>
    %590 = vector.extract_strided_slice %569 {offsets = [0, 256], sizes = [8, 128], strides = [1, 1]} : vector<8x384xf32> to vector<8x128xf32>
    %591 = vector.extract_strided_slice %573 {offsets = [0, 256], sizes = [8, 128], strides = [1, 1]} : vector<8x384xf32> to vector<8x128xf32>
    %592 = arith.mulf %581, %591 : vector<8x128xf32>
    %593 = arith.addf %590, %592 : vector<8x128xf32>
    %594 = math.tanh %593 : vector<8x128xf32>
    %cst_235 = arith.constant 1.000000e+00 : f32
    %595 = vector.broadcast %cst_235 : f32 to vector<8x128xf32>
    %596 = arith.subf %595, %589 : vector<8x128xf32>
    %597 = arith.mulf %596, %594 : vector<8x128xf32>
    %598 = arith.mulf %589, %562 : vector<8x128xf32>
    %599 = arith.addf %597, %598 : vector<8x128xf32>
    %c6_i32 = arith.constant 6 : i32
    %600 = vector.broadcast %c6_i32 : i32 to vector<8x1xi32>
    %601 = arith.cmpi eq, %6, %600 : vector<8x1xi32>
    %602 = vector.shape_cast %601 : vector<8x1xi1> to vector<8x1xi1>
    %603 = vector.broadcast %602 : vector<8x1xi1> to vector<8x128xi1>
    %604 = arith.select %603, %599, %567 : vector<8x128xi1>, vector<8x128xf32>
    %c7_236 = arith.constant 7 : index
    %c0_237 = arith.constant 0 : index
    %c0_238 = arith.constant 0 : index
    %605 = vector.load %arg6[%c7_236, %c0_237, %c0_238] : memref<8x8x384xf32, #tpu.memory_space<vmem>>, vector<1x8x384xf32>
    %606 = vector.shape_cast %605 : vector<1x8x384xf32> to vector<8x384xf32>
    %607 = arith.truncf %599 : vector<8x128xf32> to vector<8x128xbf16>
    %c1_239 = arith.constant 1 : index
    %c0_240 = arith.constant 0 : index
    %c0_241 = arith.constant 0 : index
    %608 = vector.load %arg4[%c1_239, %c0_240, %c0_241] : memref<2x128x384xbf16, #tpu.memory_space<vmem>>, vector<1x128x384xbf16>
    %609 = vector.shape_cast %608 : vector<1x128x384xbf16> to vector<128x384xbf16>
    %cst_242 = arith.constant dense<0.000000e+00> : vector<8x384xf32>
    %610 = tpu.matmul %607, %609, %cst_242 {dimension_numbers = #tpu.dot_dimension_numbers<[1], [0], [0], [1], [0, 0, 1, 1], [], []>} : vector<8x128xbf16>, vector<128x384xbf16>, vector<8x384xf32> -> vector<8x384xf32>
    %611 = vector.extract_strided_slice %606 {offsets = [0, 0], sizes = [8, 128], strides = [1, 1]} : vector<8x384xf32> to vector<8x128xf32>
    %612 = vector.extract_strided_slice %610 {offsets = [0, 0], sizes = [8, 128], strides = [1, 1]} : vector<8x384xf32> to vector<8x128xf32>
    %613 = arith.addf %611, %612 : vector<8x128xf32>
    %614 = arith.negf %613 : vector<8x128xf32>
    %615 = math.exp %614 : vector<8x128xf32>
    %cst_243 = arith.constant 1.000000e+00 : f32
    %616 = vector.broadcast %cst_243 : f32 to vector<8x128xf32>
    %617 = arith.addf %616, %615 : vector<8x128xf32>
    %618 = arith.divf %616, %617 : vector<8x128xf32>
    %619 = vector.extract_strided_slice %606 {offsets = [0, 128], sizes = [8, 128], strides = [1, 1]} : vector<8x384xf32> to vector<8x128xf32>
    %620 = vector.extract_strided_slice %610 {offsets = [0, 128], sizes = [8, 128], strides = [1, 1]} : vector<8x384xf32> to vector<8x128xf32>
    %621 = arith.addf %619, %620 : vector<8x128xf32>
    %622 = arith.negf %621 : vector<8x128xf32>
    %623 = math.exp %622 : vector<8x128xf32>
    %cst_244 = arith.constant 1.000000e+00 : f32
    %624 = vector.broadcast %cst_244 : f32 to vector<8x128xf32>
    %625 = arith.addf %624, %623 : vector<8x128xf32>
    %626 = arith.divf %624, %625 : vector<8x128xf32>
    %627 = vector.extract_strided_slice %606 {offsets = [0, 256], sizes = [8, 128], strides = [1, 1]} : vector<8x384xf32> to vector<8x128xf32>
    %628 = vector.extract_strided_slice %610 {offsets = [0, 256], sizes = [8, 128], strides = [1, 1]} : vector<8x384xf32> to vector<8x128xf32>
    %629 = arith.mulf %618, %628 : vector<8x128xf32>
    %630 = arith.addf %627, %629 : vector<8x128xf32>
    %631 = math.tanh %630 : vector<8x128xf32>
    %cst_245 = arith.constant 1.000000e+00 : f32
    %632 = vector.broadcast %cst_245 : f32 to vector<8x128xf32>
    %633 = arith.subf %632, %626 : vector<8x128xf32>
    %634 = arith.mulf %633, %631 : vector<8x128xf32>
    %635 = arith.mulf %626, %599 : vector<8x128xf32>
    %636 = arith.addf %634, %635 : vector<8x128xf32>
    %c7_i32_246 = arith.constant 7 : i32
    %637 = vector.broadcast %c7_i32_246 : i32 to vector<8x1xi32>
    %638 = arith.cmpi eq, %6, %637 : vector<8x1xi32>
    %639 = vector.shape_cast %638 : vector<8x1xi1> to vector<8x1xi1>
    %640 = vector.broadcast %639 : vector<8x1xi1> to vector<8x128xi1>
    %641 = arith.select %640, %636, %604 : vector<8x128xi1>, vector<8x128xf32>
    %c0_247 = arith.constant 0 : index
    %c0_248 = arith.constant 0 : index
    %642 = vector.load %arg5[%c0_247, %c0_248] : memref<8x128xf32, #tpu.memory_space<vmem>>, vector<8x128xf32>
    tpu.vector_store %arg5[%c0_247, %c0_248], %641 {strides = array<i32>} : memref<8x128xf32, #tpu.memory_space<vmem>>, vector<8x128xf32>,
    return
  }
  func.func @transform_0(%arg0: i32) -> (i32, i32) {
    %c0_i32 = arith.constant 0 : i32
    %c0_i32_0 = arith.constant 0 : i32
    return %arg0, %c0_i32 : i32, i32
  }
  func.func @transform_1(%arg0: i32) -> (i32, i32, i32) {
    %c0_i32 = arith.constant 0 : i32
    %c0_i32_0 = arith.constant 0 : i32
    %c0_i32_1 = arith.constant 0 : i32
    return %c0_i32, %arg0, %c0_i32_0 : i32, i32, i32
  }
  func.func @transform_2(%arg0: i32) -> (i32, i32, i32) {
    %c0_i32 = arith.constant 0 : i32
    %c0_i32_0 = arith.constant 0 : i32
    %c0_i32_1 = arith.constant 0 : i32
    %c0_i32_2 = arith.constant 0 : i32
    return %c0_i32, %c0_i32_0, %c0_i32_1 : i32, i32, i32
  }
  func.func @transform_3(%arg0: i32) -> (i32, i32, i32) {
    %c0_i32 = arith.constant 0 : i32
    %c0_i32_0 = arith.constant 0 : i32
    %c0_i32_1 = arith.constant 0 : i32
    %c0_i32_2 = arith.constant 0 : i32
    return %c0_i32, %c0_i32_0, %c0_i32_1 : i32, i32, i32
  }
  func.func @transform_4(%arg0: i32) -> (i32, i32) {
    %c0_i32 = arith.constant 0 : i32
    %c0_i32_0 = arith.constant 0 : i32
    return %arg0, %c0_i32 : i32, i32
  }
}

</mosaic_0001>

<bundles_post_ra>
// kernel: tpu_custom_call.1
= control target key start
LH: loop header
LB: loop body
LE: loop exit
PB: predicated region body
PF: predicated region fallthrough
CT: control target
= control target key end

     0   :  { %9 = vsyncpa [#allocation4], 0  ;;  %s11010_s0 = inlined_call_operand.vmem [shape: s32[8,1], index: 0, kind: input, shape index: {}]   ;;  %s11011_s1 = inlined_call_operand.hbm [shape: bf16[8,8,128], index: 1, kind: input, shape index: {}]   ;;  %s11012_s2 = inlined_call_operand.hbm [shape: bf16[2,128,384], index: 2, kind: input, shape index: {}]   ;;  %s11013_s3 = inlined_call_operand.hbm [shape: bf16[2,128,384], index: 3, kind: input, shape index: {}]   ;;  %s11014_s4 = inlined_call_operand.hbm [shape: f32[8,128], index: 4, kind: output, shape index: {}]  }
   0x1   :  { %10 = vsyncpa [#allocation7], 0 }
   0x2   :  { %11 = vsyncpa [#allocation5], 0  ;;  %s9519_s15 = smov [#allocation6]  }
   0x3   :  { %s31_s16 = sshll.u32 %s9519_s15, 4  ;;  %s32_s16 = int_to_ptr.vmem [resolvable:$true] %s31_s16 }
   0x4   :  { %s9441_s17 = scalar_lea.vmem %s32_s16, 6144  ;;  %p9446_p1 = scmp.lt.s32.totalorder %s32_s16, %s32_s16 }
   0x5   :  { %p9442_p0 = scmp.ne.s32.totalorder %s32_s16, %s9441_s17  ;;  %p9447_p2 = scmp.lt.s32.totalorder %s9441_s17, %s9441_s17 }
   0x7   :  { %p9448_p3 = por %p9447_p2, %p9446_p1 }
   0x9   :  { %p9449_p4 = pnand %p9448_p3, %p9442_p0 }
   0xb   :  { %9452 = shalt.err (!%p9449_p4)
}
   0xc   :  { %s9520_s18 = smov 192   ;;  %s9521_s19 = smov 12  }
   0xd   :  { %37 = dma.hbm_to_vmem [thread:$0]  %s11012_s2, 6144, %s32_s16, [#allocation7], %s9520_s18, %s9520_s18, %s9521_s19  }
   0xe   :  { %s9522_s22 = smov [#allocation3]  }
   0xf   :  { %s19_s23 = sshll.u32 %s9522_s22, 4  ;;  %s20_s23 = int_to_ptr.vmem [resolvable:$true] %s19_s23 }
  0x10   :  { %s9461_s24 = scalar_lea.vmem %s20_s23, 512  ;;  %p9466_p6 = scmp.lt.s32.totalorder %s20_s23, %s20_s23 }
  0x11   :  { %p9462_p5 = scmp.ne.s32.totalorder %s20_s23, %s9461_s24  ;;  %p9467_p7 = scmp.lt.s32.totalorder %s9461_s24, %s9461_s24 }
  0x13   :  { %p9468_p8 = por %p9467_p7, %p9466_p6 }
  0x15   :  { %p9469_p9 = pnand %p9468_p8, %p9462_p5 }
  0x17   :  { %9472 = shalt.err (!%p9469_p9)
}
  0x18   :  { %s9523_s25 = smov 64   ;;  %s9524_s26 = smov 4  }
  0x19   :  { %25 = dma.hbm_to_vmem [thread:$0]  %s11011_s1, 512, %s20_s23, [#allocation4], %s9523_s25, %s9523_s25, %s9524_s26  }
  0x1a   :  { %s9525_s29 = smov [#allocation8]  }
  0x1b   :  { %s43_s30 = sshll.u32 %s9525_s29, 4  ;;  %s44_s30 = int_to_ptr.vmem [resolvable:$true] %s43_s30 }
  0x1c   :  { %s9481_s2 = scalar_lea.vmem %s44_s30, 6144  ;;  %p9486_p11 = scmp.lt.s32.totalorder %s44_s30, %s44_s30 }
  0x1d   :  { %p9482_p10 = scmp.ne.s32.totalorder %s44_s30, %s9481_s2  ;;  %p9487_p12 = scmp.lt.s32.totalorder %s9481_s2, %s9481_s2 }
  0x1f   :  { %p9488_p13 = por %p9487_p12, %p9486_p11 }
  0x21   :  { %p9489_p0 = pnand %p9488_p13, %p9482_p10 }
  0x23   :  { %9492 = shalt.err (!%p9489_p0)
}
  0x24   :  { %49 = dma.hbm_to_vmem [thread:$0]  %s11013_s3, 6144, %s44_s30, [#allocation7], %s9520_s18, %s9520_s18, %s9521_s19  }
  0x25   :  { %9513 = dma.done.wait [#allocation4], 512  }
  0x26   :  { %9514 = vsyncadd [#allocation4], 4294966784 }
  0x27   :  { %9515 = dma.done.wait [#allocation7], 12288  }
  0x28   :  { %9516 = vsyncadd [#allocation7], 4294955008  ;;  %v11018_v0 = vmov 0.0   ;;  %v11015_v1 = vmov 0   ;;  %vm9528_vm0 = vmmov 0  }
  0x29   :  { %8075 = vmatprep.subr.bf16.mxu1 %v11018_v0  ;;  %259 = vmatprep.mubr.bf16.mxu0 %v11015_v1  ;;  %v8728_v2 = vld [vmem:[#allocation6 + $0xac] ss:$12 sps:$4 sm:$0xff]   ;;  %v8730_v3 = vld [vmem:[#allocation6 + $0xa8] ss:$12 sps:$4 sm:$0xff]   ;;  %v8733_v5 = vld [vmem:[#allocation6 + $0x90] ss:$12 sps:$4 sm:$0xff]  }
  0x2a   :  { %8091 = vmatprep.mubr.msk.bf16.mxu1 %vm9528_vm0, %v11018_v0  ;;  %8726 = vset.pattern.permute.xlu0 %v11015_v1  ;;  %v8731_v4 = vld [vmem:[#allocation6 + $0x94] ss:$12 sps:$4 sm:$0xff]   ;;  %v8734_v6 = vld [vmem:[#allocation6 + $0x7c] ss:$12 sps:$4 sm:$0xff]   ;;  %v8736_v7 = vld [vmem:[#allocation6 + $0x78] ss:$12 sps:$4 sm:$0xff]  }
  0x2b   :  { %8727 = vset.pattern.permute.xlu1 %v11015_v1  ;;  %227 = vmatprep.subr.bf16.mxu0 %v8728_v2  ;;  %v8737_v8 = vld [vmem:[#allocation6 + $0x64] ss:$12 sps:$4 sm:$0xff]   ;;  %v8739_v9 = vld [vmem:[#allocation6 + $0x60] ss:$12 sps:$4 sm:$0xff]   ;;  %v8742_v13 = vld [vmem:[#allocation6 + $0x48] ss:$12 sps:$4 sm:$0xff]  }
  0x2c   :  { %228 = vmatpush1.bf16.msra.mxu0 %v8730_v3  ;;  %v8752_v10 = vld [vmem:[#allocation6 + $0xb0] ss:$12 sps:$4 sm:$0xff]   ;;  %v8740_v11 = vld [vmem:[#allocation6 + $0x4c] ss:$12 sps:$4 sm:$0xff]   ;;  %v8743_v14 = vld [vmem:[#allocation6 + $0x34] ss:$12 sps:$4 sm:$0xff]  }
  0x2d   :  { %229 = vmatprep.subr.bf16.mxu0 %v8731_v4  ;;  %8076 = vmatpush3.bf16.msra.mxu1 %v8752_v10  ;;  %v8756_v12 = vld [vmem:[#allocation6 + $0x98] ss:$12 sps:$4 sm:$0xff]   ;;  %v8760_v15 = vld [vmem:[#allocation6 + $0x80] ss:$12 sps:$4 sm:$0xff]   ;;  %v8745_v16 = vld [vmem:[#allocation6 + $0x30] ss:$12 sps:$4 sm:$0xff]  }
  0x2e   :  { %8077 = vmatprep.subr.bf16.mxu1 %v11018_v0  ;;  %v8746_v17 = vld [vmem:[#allocation6 + $0x1c] ss:$12 sps:$4 sm:$0xff]   ;;  %v8748_v19 = vld [vmem:[#allocation6 + $0x18] ss:$12 sps:$4 sm:$0xff]   ;;  %v8751_v22 = vld [vmem:[#allocation6] ss:$12 sps:$4 sm:$0xff]  }
  0x2f   :  { %v8764_v18 = vld [vmem:[#allocation6 + $0x68] ss:$12 sps:$4 sm:$0xff]   ;;  %v8749_v20 = vld [vmem:[#allocation6 + $0x4] ss:$12 sps:$4 sm:$0xff]   ;;  %v8755_v23 = vld [vmem:[#allocation8 + $0xac] ss:$12 sps:$4 sm:$0xff]  }
  0x30   :  { %230 = vmatpush1.bf16.msra.mxu0 %v8733_v5  ;;  %v8768_v21 = vld [vmem:[#allocation6 + $0x50] ss:$12 sps:$4 sm:$0xff]   ;;  %v8772_v24 = vld [vmem:[#allocation6 + $0x38] ss:$12 sps:$4 sm:$0xff]   ;;  %v66_v25 = vld [vmem:[#allocation3] sm:$0xf] }
  0x31   :  { %231 = vmatprep.subr.bf16.mxu0 %v8734_v6  ;;  %8078 = vmatpush3.bf16.msra.mxu1 %v8756_v12  ;;  %v8753_v26 = vld [vmem:[#allocation8 + $0xa8] ss:$12 sps:$4 sm:$0xff]   ;;  %v8776_v28 = vld [vmem:[#allocation6 + $0x20] ss:$12 sps:$4 sm:$0xff]   ;;  %v8757_v29 = vld [vmem:[#allocation8 + $0x90] ss:$12 sps:$4 sm:$0xff]  }
  0x32   :  { %8079 = vmatprep.subr.bf16.mxu1 %v11018_v0  ;;  %v8759_v27 = vld [vmem:[#allocation8 + $0x94] ss:$12 sps:$4 sm:$0xff]   ;;  %v8763_v30 = vld [vmem:[#allocation8 + $0x7c] ss:$12 sps:$4 sm:$0xff]   ;;  %v8761_v31 = vld [vmem:[#allocation8 + $0x78] ss:$12 sps:$4 sm:$0xff]  }
  0x33   :  { %v8780_v32 = vld [vmem:[#allocation6 + $0x8] ss:$12 sps:$4 sm:$0xff]   ;;  %v8767_v33 = vld [vmem:[#allocation8 + $0x64] ss:$12 sps:$4 sm:$0xff]   ;;  %v8765_v35 = vld [vmem:[#allocation8 + $0x60] ss:$12 sps:$4 sm:$0xff]  }
  0x34   :  { %232 = vmatpush1.bf16.msra.mxu0 %v8736_v7  ;;  %v8784_v34 = vld [vmem:[#allocation8 + $0xb0] ss:$12 sps:$4 sm:$0xff]   ;;  %v8771_v36 = vld [vmem:[#allocation8 + $0x4c] ss:$12 sps:$4 sm:$0xff]   ;;  %v8769_v38 = vld [vmem:[#allocation8 + $0x48] ss:$12 sps:$4 sm:$0xff]  }
  0x35   :  { %233 = vmatprep.subr.bf16.mxu0 %v8737_v8  ;;  %8080 = vmatpush3.bf16.msra.mxu1 %v8760_v15  ;;  %v8785_v37 = vld [vmem:[#allocation8 + $0x98] ss:$12 sps:$4 sm:$0xff]   ;;  %v8775_v39 = vld [vmem:[#allocation8 + $0x34] ss:$12 sps:$4 sm:$0xff]   ;;  %v8773_v41 = vld [vmem:[#allocation8 + $0x30] ss:$12 sps:$4 sm:$0xff]  }
  0x36   :  { %8081 = vmatprep.subr.bf16.mxu1 %v11018_v0  ;;  %v8786_v40 = vld [vmem:[#allocation8 + $0x80] ss:$12 sps:$4 sm:$0xff]   ;;  %v8779_v42 = vld [vmem:[#allocation8 + $0x1c] ss:$12 sps:$4 sm:$0xff]   ;;  %v8777_v44 = vld [vmem:[#allocation8 + $0x18] ss:$12 sps:$4 sm:$0xff]  }
  0x37   :  { %v8787_v43 = vld [vmem:[#allocation8 + $0x68] ss:$12 sps:$4 sm:$0xff]   ;;  %v8783_v45 = vld [vmem:[#allocation8 + $0x4] ss:$12 sps:$4 sm:$0xff]   ;;  %v8781_v47 = vld [vmem:[#allocation8] ss:$12 sps:$4 sm:$0xff]  }
  0x38   :  { %234 = vmatpush1.bf16.msra.mxu0 %v8739_v9  ;;  %v8788_v46 = vld [vmem:[#allocation8 + $0x50] ss:$12 sps:$4 sm:$0xff]   ;;  %v8789_v48 = vld [vmem:[#allocation8 + $0x38] ss:$12 sps:$4 sm:$0xff]   ;;  %v8790_v49 = vld [vmem:[#allocation8 + $0x20] ss:$12 sps:$4 sm:$0xff]  }
  0x39   :  { %235 = vmatprep.subr.bf16.mxu0 %v8740_v11  ;;  %8082 = vmatpush3.bf16.msra.mxu1 %v8764_v18  ;;  %v8791_v50 = vld [vmem:[#allocation8 + $0x8] ss:$12 sps:$4 sm:$0xff]   ;;  %v9596_v52 = vld [vmem:[#allocation6 + $0x16c] ss:$12 sps:$4 sm:$0xff]   ;;  %v8795_v53 = vld [vmem:[#allocation6 + $0x170] ss:$12 sps:$4 sm:$0xff]  }
  0x3a   :  { %8083 = vmatprep.subr.bf16.mxu1 %v11018_v0  ;;  %v9594_v51 = vld [vmem:[#allocation6 + $0x168] ss:$12 sps:$4 sm:$0xff]   ;;  %v9603_v55 = vld [vmem:[#allocation6 + $0x150] ss:$12 sps:$4 sm:$0xff]   ;;  %v8799_v56 = vld [vmem:[#allocation6 + $0x158] ss:$12 sps:$4 sm:$0xff]  }
  0x3b   :  { %v9601_v54 = vld [vmem:[#allocation6 + $0x154] ss:$12 sps:$4 sm:$0xff]   ;;  %v9607_v57 = vld [vmem:[#allocation6 + $0x13c] ss:$12 sps:$4 sm:$0xff]   ;;  %v9610_v58 = vld [vmem:[#allocation6 + $0x138] ss:$12 sps:$4 sm:$0xff]  }
  0x3c   :  { %236 = vmatpush1.bf16.msra.mxu0 %v8742_v13  ;;  %v8803_v59 = vld [vmem:[#allocation6 + $0x140] ss:$12 sps:$4 sm:$0xff]   ;;  %v9614_v60 = vld [vmem:[#allocation6 + $0x124] ss:$12 sps:$4 sm:$0xff]   ;;  %v8807_v62 = vld [vmem:[#allocation6 + $0x128] ss:$12 sps:$4 sm:$0xff]  }
  0x3d   :  { %237 = vmatprep.subr.bf16.mxu0 %v8743_v14  ;;  %8084 = vmatpush3.bf16.msra.mxu1 %v8768_v21  ;;  %v9617_v61 = vld [vmem:[#allocation6 + $0x120] ss:$12 sps:$4 sm:$0xff]   ;;  %v9621_v63 = vld [vmem:[#allocation6 + $0x108] ss:$12 sps:$4 sm:$0xff]   ;;  %v8811_v3 = vld [vmem:[#allocation6 + $0x110] ss:$12 sps:$4 sm:$0xff]  }
  0x3e   :  { %8085 = vmatprep.subr.bf16.mxu1 %v11018_v0  ;;  %v9623_v2 = vld [vmem:[#allocation6 + $0x10c] ss:$12 sps:$4 sm:$0xff]   ;;  %v9626_v4 = vld [vmem:[#allocation6 + $0xf4] ss:$12 sps:$4 sm:$0xff]   ;;  %v9629_v5 = vld [vmem:[#allocation6 + $0xf0] ss:$12 sps:$4 sm:$0xff]  }
  0x3f   :  { %v8815_v6 = vld [vmem:[#allocation6 + $0xf8] ss:$12 sps:$4 sm:$0xff]   ;;  %v9631_v7 = vld [vmem:[#allocation6 + $0xdc] ss:$12 sps:$4 sm:$0xff]   ;;  %v8819_v9 = vld [vmem:[#allocation6 + $0xe0] ss:$12 sps:$4 sm:$0xff]  }
  0x40   :  { %238 = vmatpush1.bf16.msra.mxu0 %v8745_v16  ;;  %v9636_v8 = vld [vmem:[#allocation6 + $0xd8] ss:$12 sps:$4 sm:$0xff]   ;;  %v9643_v11 = vld [vmem:[#allocation6 + $0xc0] ss:$12 sps:$4 sm:$0xff]   ;;  %v8823_v12 = vld [vmem:[#allocation6 + $0xc8] ss:$12 sps:$4 sm:$0xff]  }
  0x41   :  { %239 = vmatprep.subr.bf16.mxu0 %v8746_v17  ;;  %8086 = vmatpush3.bf16.msra.mxu1 %v8772_v24  ;;  %v9638_v10 = vld [vmem:[#allocation6 + $0xc4] ss:$12 sps:$4 sm:$0xff]   ;;  %v9400_v13 = vld [vmem:[#allocation6 + $0xac] ss:$12 sps:$4 sm:$0xff]  }
  0x42   :  { %8087 = vmatprep.subr.bf16.mxu1 %v11018_v0 }
  0x44   :  { %240 = vmatpush1.bf16.msra.mxu0 %v8748_v19 }
  0x45   :  { %241 = vmatprep.subr.bf16.mxu0 %v8749_v20  ;;  %8088 = vmatpush3.bf16.msra.mxu1 %v8776_v28 }
  0x46   :  { %8089 = vmatprep.subr.bf16.mxu1 %v11018_v0 }
  0x48   :  { %242 = vmatpush1.bf16.msra.mxu0 %v8751_v22 }
  0x49   :  { %468 = vmatprep.subr.bf16.mxu0 %v8755_v23  ;;  %8090 = vmatpush3.bf16.msra.mxu1 %v8780_v32 }
  0x4a   :  { %8095 = vmatprep.subr.bf16.mxu1 %v11018_v0 }
  0x4b   :  { %260 = vmatmul.mubr.bf16.vlgmr.msra.gmra.mxu0 %v66_v25 }
  0x4c   :  { %469 = vmatpush1.bf16.msra.mxu0 %v8753_v26  ;;  %500 = vmatprep.mubr.bf16.mxu0 %v11015_v1 }
  0x4d   :  { %470 = vmatprep.subr.bf16.mxu0 %v8759_v27  ;;  %8092 = vmatmul.mubr.bf16.vlgmr.msra.gmra.mxu1 %v66_v25 }
  0x4e   :  { %8096 = vmatpush3.bf16.msra.mxu1 %v8784_v34  ;;  %8111 = vmatprep.mubr.msk.bf16.mxu1 %vm9528_vm0, %v11018_v0 }
  0x4f   :  { %8097 = vmatprep.subr.bf16.mxu1 %v11018_v0 }
  0x50   :  { %471 = vmatpush1.bf16.msra.mxu0 %v8757_v29 }
  0x51   :  { %472 = vmatprep.subr.bf16.mxu0 %v8763_v30 }
  0x52   :  { %8098 = vmatpush3.bf16.msra.mxu1 %v8785_v37 }
  0x53   :  { %8099 = vmatprep.subr.bf16.mxu1 %v11018_v0 }
  0x54   :  { %473 = vmatpush1.bf16.msra.mxu0 %v8761_v31 }
  0x55   :  { %474 = vmatprep.subr.bf16.mxu0 %v8767_v33 }
  0x56   :  { %8100 = vmatpush3.bf16.msra.mxu1 %v8786_v40 }
  0x57   :  { %8101 = vmatprep.subr.bf16.mxu1 %v11018_v0 }
  0x58   :  { %475 = vmatpush1.bf16.msra.mxu0 %v8765_v35 }
  0x59   :  { %476 = vmatprep.subr.bf16.mxu0 %v8771_v36 }
  0x5a   :  { %8102 = vmatpush3.bf16.msra.mxu1 %v8787_v43 }
  0x5b   :  { %8103 = vmatprep.subr.bf16.mxu1 %v11018_v0 }
  0x5c   :  { %477 = vmatpush1.bf16.msra.mxu0 %v8769_v38 }
  0x5d   :  { %478 = vmatprep.subr.bf16.mxu0 %v8775_v39 }
  0x5e   :  { %8104 = vmatpush3.bf16.msra.mxu1 %v8788_v46 }
  0x5f   :  { %8105 = vmatprep.subr.bf16.mxu1 %v11018_v0 }
  0x60   :  { %479 = vmatpush1.bf16.msra.mxu0 %v8773_v41 }
  0x61   :  { %480 = vmatprep.subr.bf16.mxu0 %v8779_v42 }
  0x62   :  { %8106 = vmatpush3.bf16.msra.mxu1 %v8789_v48 }
  0x63   :  { %8107 = vmatprep.subr.bf16.mxu1 %v11018_v0 }
  0x64   :  { %481 = vmatpush1.bf16.msra.mxu0 %v8777_v44 }
  0x65   :  { %482 = vmatprep.subr.bf16.mxu0 %v8783_v45 }
  0x66   :  { %8108 = vmatpush3.bf16.msra.mxu1 %v8790_v49  ;;  %v9401_v49 = vld [vmem:[#allocation6 + $0xa8] ss:$12 sps:$4 sm:$0xff]  }
  0x67   :  { %8109 = vmatprep.subr.bf16.mxu1 %v11018_v0 }
  0x68   :  { %483 = vmatpush1.bf16.msra.mxu0 %v8781_v47  ;;  %v8824_v47 = vld [vmem:[#allocation6 + $0xb0] ss:$12 sps:$4 sm:$0xff]  }
  0x69   :  { %732 = vmatprep.subr.bf16.mxu0 %v9596_v52 }
  0x6a   :  { %8110 = vmatpush3.bf16.msra.mxu1 %v8791_v50  ;;  %v8825_v50 = vld [vmem:[#allocation6 + $0x98] ss:$12 sps:$4 sm:$0xff]  }
  0x6b   :  { %501 = vmatmul.mubr.bf16.vlgmr.msra.gmra.mxu0 %v11015_v1  ;;  %8115 = vmatprep.subr.bf16.mxu1 %v11018_v0 }
  0x6c   :  { %764 = vmatprep.mubr.bf16.mxu0 %v11015_v1  ;;  %733 = vmatpush1.bf16.msra.mxu0 %v9594_v51 }
  0x6d   :  { %8112 = vmatmul.mubr.bf16.vlgmr.msra.gmra.mxu1 %v11015_v1  ;;  %734 = vmatprep.subr.bf16.mxu0 %v9601_v54 }
  0x6e   :  { %8131 = vmatprep.mubr.msk.bf16.mxu1 %vm9528_vm0, %v11018_v0  ;;  %8116 = vmatpush3.bf16.msra.mxu1 %v8795_v53  ;;  %v9402_v53 = vld [vmem:[#allocation6 + $0x94] ss:$12 sps:$4 sm:$0xff]  }
  0x6f   :  { %8117 = vmatprep.subr.bf16.mxu1 %v11018_v0 }
  0x70   :  { %735 = vmatpush1.bf16.msra.mxu0 %v9603_v55 }
  0x71   :  { %736 = vmatprep.subr.bf16.mxu0 %v9607_v57 }
  0x72   :  { %8118 = vmatpush3.bf16.msra.mxu1 %v8799_v56  ;;  %v9403_v56 = vld [vmem:[#allocation6 + $0x90] ss:$12 sps:$4 sm:$0xff]  }
  0x73   :  { %8119 = vmatprep.subr.bf16.mxu1 %v11018_v0 }
  0x74   :  { %737 = vmatpush1.bf16.msra.mxu0 %v9610_v58 }
  0x75   :  { %738 = vmatprep.subr.bf16.mxu0 %v9614_v60 }
  0x76   :  { %8120 = vmatpush3.bf16.msra.mxu1 %v8803_v59  ;;  %v8826_v59 = vld [vmem:[#allocation6 + $0x80] ss:$12 sps:$4 sm:$0xff]  }
  0x77   :  { %8121 = vmatprep.subr.bf16.mxu1 %v11018_v0 }
  0x78   :  { %739 = vmatpush1.bf16.msra.mxu0 %v9617_v61 }
  0x79   :  { %740 = vmatprep.subr.bf16.mxu0 %v9623_v2 }
  0x7a   :  { %8122 = vmatpush3.bf16.msra.mxu1 %v8807_v62  ;;  %v9404_v62 = vld [vmem:[#allocation6 + $0x7c] ss:$12 sps:$4 sm:$0xff]  }
  0x7b   :  { %8123 = vmatprep.subr.bf16.mxu1 %v11018_v0 }
  0x7c   :  { %741 = vmatpush1.bf16.msra.mxu0 %v9621_v63 }
  0x7d   :  { %742 = vmatprep.subr.bf16.mxu0 %v9626_v4 }
  0x7e   :  { %8124 = vmatpush3.bf16.msra.mxu1 %v8811_v3  ;;  %v9405_v3 = vld [vmem:[#allocation6 + $0x78] ss:$12 sps:$4 sm:$0xff]  }
  0x7f   :  { %8125 = vmatprep.subr.bf16.mxu1 %v11018_v0 }
  0x80   :  { %743 = vmatpush1.bf16.msra.mxu0 %v9629_v5 }
  0x81   :  { %744 = vmatprep.subr.bf16.mxu0 %v9631_v7 }
  0x82   :  { %8126 = vmatpush3.bf16.msra.mxu1 %v8815_v6  ;;  %v8827_v6 = vld [vmem:[#allocation6 + $0x68] ss:$12 sps:$4 sm:$0xff]  }
  0x83   :  { %8127 = vmatprep.subr.bf16.mxu1 %v11018_v0 }
  0x84   :  { %745 = vmatpush1.bf16.msra.mxu0 %v9636_v8 }
  0x85   :  { %746 = vmatprep.subr.bf16.mxu0 %v9638_v10 }
  0x86   :  { %8128 = vmatpush3.bf16.msra.mxu1 %v8819_v9  ;;  %v9406_v9 = vld [vmem:[#allocation6 + $0x64] ss:$12 sps:$4 sm:$0xff]  }
  0x87   :  { %8129 = vmatprep.subr.bf16.mxu1 %v11018_v0 }
  0x88   :  { %747 = vmatpush1.bf16.msra.mxu0 %v9643_v11 }
  0x89   :  { %978 = vmatprep.subr.bf16.mxu0 %v9400_v13  ;;  %v8828_v13 = vld [vmem:[#allocation6 + $0x50] ss:$12 sps:$4 sm:$0xff]  }
  0x8a   :  { %8130 = vmatpush3.bf16.msra.mxu1 %v8823_v12  ;;  %v9407_v12 = vld [vmem:[#allocation6 + $0x60] ss:$12 sps:$4 sm:$0xff]  }
  0x8b   :  { %8135 = vmatprep.subr.bf16.mxu1 %v11018_v0 }
 0x10b   :  { %v261_v14 = vpop.f32.mrf.mxu0 }
 0x10d   :  { %v263_v15 = vpop.f32.mrf.mxu0  ;;  %v302_v18 = vpop.f32.mrf.mxu1 }
 0x10f   :  { %v265_v16 = vpop.f32.mrf.mxu0  ;;  %v8093_v19 = vpop.f32.mrf.mxu1 }
 0x110   :  { %v8829_v16 = vld [vmem:[#allocation6 + $0x38] ss:$12 sps:$4 sm:$0xff]   ;;  %v8830_v19 = vld [vmem:[#allocation6 + $0x20] ss:$12 sps:$4 sm:$0xff]  }
 0x111   :  { %v266_v17 = vpop.f32.mrf.mxu0  ;;  %v305_v20 = vpop.f32.mrf.mxu1 }
 0x112   :  { %v9410_v17 = vld [vmem:[#allocation6 + $0x34] ss:$12 sps:$4 sm:$0xff]   ;;  %v9412_v20 = vld [vmem:[#allocation6 + $0x1c] ss:$12 sps:$4 sm:$0xff]  }
 0x113   :  { %v8094_v21 = vpop.f32.mrf.mxu1 }
 0x114   :  { %v9413_v21 = vld [vmem:[#allocation6 + $0x18] ss:$12 sps:$4 sm:$0xff]  }
 0x12b   :  { %v502_v22 = vpop.f32.mrf.mxu0 }
 0x12c   :  { %v549_v23 = vadd.f32 %v502_v22, %v261_v14  ;;  %v9408_v14 = vld [vmem:[#allocation6 + $0x4c] ss:$12 sps:$4 sm:$0xff]   ;;  %v8831_v22 = vld [vmem:[#allocation6 + $0x8] ss:$12 sps:$4 sm:$0xff]  }
 0x12d   :  { %v504_v24 = vpop.f32.mrf.mxu0  ;;  %v543_v29 = vpop.f32.mrf.mxu1 }
 0x12e   :  { %v7203_v25 = vmul.f32 -1.442695, %v549_v23  ;;  %v556_v28 = vadd.f32 %v504_v24, %v263_v15  ;;  %v9409_v15 = vld [vmem:[#allocation6 + $0x48] ss:$12 sps:$4 sm:$0xff]   ;;  %v9414_v23 = vld [vmem:[#allocation6 + $0x4] ss:$12 sps:$4 sm:$0xff]  }
 0x12f   :  { %v506_v26 = vpop.f32.mrf.mxu0  ;;  %v8113_v31 = vpop.f32.mrf.mxu1  ;;  %v9415_v24 = vld [vmem:[#allocation6] ss:$12 sps:$4 sm:$0xff]  }
 0x130   :  { %9240 = vpow2.f32 %v7203_v25  ;;  %v7204_v30 = vmul.f32 -1.442695, %v556_v28  ;;  %v817_v25 = vld [vmem:[#allocation3 + $0x4] sm:$0xf]  ;;  %v8832_v26 = vld [vmem:[#allocation8 + $0xb0] ss:$12 sps:$4 sm:$0xff]  }
 0x131   :  { %v507_v27 = vpop.f32.mrf.mxu0  ;;  %v546_v32 = vpop.f32.mrf.mxu1  ;;  %v9417_v28 = vld [vmem:[#allocation8 + $0xa8] ss:$12 sps:$4 sm:$0xff]   ;;  %v9419_v31 = vld [vmem:[#allocation8 + $0x90] ss:$12 sps:$4 sm:$0xff]  }
 0x132   :  { %9242 = vpow2.f32 %v7204_v30  ;;  %v9416_v27 = vld [vmem:[#allocation8 + $0xac] ss:$12 sps:$4 sm:$0xff]   ;;  %v9418_v30 = vld [vmem:[#allocation8 + $0x94] ss:$12 sps:$4 sm:$0xff]  }
 0x133   :  { %v8114_v33 = vpop.f32.mrf.mxu1  ;;  %v8834_v32 = vld [vmem:[#allocation8 + $0x80] ss:$12 sps:$4 sm:$0xff]  }
 0x134   :  { %v9420_v33 = vld [vmem:[#allocation8 + $0x7c] ss:$12 sps:$4 sm:$0xff]  }
 0x13d   :  { %v9241_v34 = vpop.eup %9240 }
 0x13e   :  { %v553_v35 = vadd.f32 1.0, %v9241_v34  ;;  %v9421_v34 = vld [vmem:[#allocation8 + $0x78] ss:$12 sps:$4 sm:$0xff]  }
 0x13f   :  { %v9243_v36 = vpop.eup %9242 }
 0x140   :  { %9244 = vrcp.f32 %v553_v35  ;;  %v560_v37 = vadd.f32 1.0, %v9243_v36  ;;  %v8835_v35 = vld [vmem:[#allocation8 + $0x68] ss:$12 sps:$4 sm:$0xff]   ;;  %v9422_v36 = vld [vmem:[#allocation8 + $0x64] ss:$12 sps:$4 sm:$0xff]  }
 0x142   :  { %9246 = vrcp.f32 %v560_v37  ;;  %v9423_v37 = vld [vmem:[#allocation8 + $0x60] ss:$12 sps:$4 sm:$0xff]  }
 0x14d   :  { %v9245_v38 = vpop.eup %9244 }
 0x14e   :  { %v563_v39 = vmul.f32 %v9245_v38, %v543_v29  ;;  %v8833_v29 = vld [vmem:[#allocation8 + $0x98] ss:$12 sps:$4 sm:$0xff]   ;;  %v8836_v38 = vld [vmem:[#allocation8 + $0x50] ss:$12 sps:$4 sm:$0xff]  }
 0x14f   :  { %v9247_v41 = vpop.eup %9246 }
 0x150   :  { %v564_v40 = vadd.f32 %v563_v39, %v302_v18  ;;  %v566_v42 = vsub.f32 1.0, %v9247_v41  ;;  %v568_v45 = vmul.f32 0.0, %v9247_v41  ;;  %v9411_v18 = vld [vmem:[#allocation6 + $0x30] ss:$12 sps:$4 sm:$0xff]   ;;  %v9424_v39 = vld [vmem:[#allocation8 + $0x4c] ss:$12 sps:$4 sm:$0xff]  }
 0x151   :  { %v8837_v41 = vld [vmem:[#allocation8 + $0x38] ss:$12 sps:$4 sm:$0xff]  }
 0x152   :  { %9248 = vtanh.f32 %v564_v40  ;;  %v9425_v40 = vld [vmem:[#allocation8 + $0x48] ss:$12 sps:$4 sm:$0xff]  }
 0x15f   :  { %v9249_v43 = vpop.eup %9248 }
 0x160   :  { %v567_v44 = vmul.f32 %v9249_v43, %v566_v42  ;;  %v9426_v42 = vld [vmem:[#allocation8 + $0x34] ss:$12 sps:$4 sm:$0xff]   ;;  %v9427_v43 = vld [vmem:[#allocation8 + $0x30] ss:$12 sps:$4 sm:$0xff]  }
 0x162   :  { %v9650_v46 = vadd.f32 %v568_v45, %v567_v44  ;;  %v8838_v44 = vld [vmem:[#allocation8 + $0x20] ss:$12 sps:$4 sm:$0xff]   ;;  %v9428_v45 = vld [vmem:[#allocation8 + $0x1c] ss:$12 sps:$4 sm:$0xff]  }
 0x164   :  { %v9654_v48 = vpack.c.bf16 %v9650_v46, %v9650_v46 }
 0x166   :  { %765 = vmatmul.mubr.bf16.vlgmr.msra.gmra.mxu0 %v9654_v48  ;;  %8132 = vmatmul.mubr.bf16.vlgmr.msra.gmra.mxu1 %v9654_v48 }
 0x167   :  { %979 = vmatpush1.bf16.msra.mxu0 %v9401_v49  ;;  %8136 = vmatpush3.bf16.msra.mxu1 %v8824_v47  ;;  %v9429_v47 = vld [vmem:[#allocation8 + $0x18] ss:$12 sps:$4 sm:$0xff]   ;;  %v8839_v49 = vld [vmem:[#allocation8 + $0x8] ss:$12 sps:$4 sm:$0xff]  }
 0x168   :  { %980 = vmatprep.subr.bf16.mxu0 %v9402_v53  ;;  %8137 = vmatprep.subr.bf16.mxu1 %v11018_v0  ;;  %v9431_v53 = vld [vmem:[#allocation8] ss:$12 sps:$4 sm:$0xff]  }
 0x169   :  { %1010 = vmatprep.mubr.bf16.mxu0 %v11015_v1  ;;  %8151 = vmatprep.mubr.msk.bf16.mxu1 %vm9528_vm0, %v11018_v0 }
 0x16b   :  { %981 = vmatpush1.bf16.msra.mxu0 %v9403_v56  ;;  %8138 = vmatpush3.bf16.msra.mxu1 %v8825_v50  ;;  %v9430_v50 = vld [vmem:[#allocation8 + $0x4] ss:$12 sps:$4 sm:$0xff]  }
 0x16c   :  { %982 = vmatprep.subr.bf16.mxu0 %v9404_v62  ;;  %8139 = vmatprep.subr.bf16.mxu1 %v11018_v0 }
 0x16f   :  { %983 = vmatpush1.bf16.msra.mxu0 %v9405_v3  ;;  %8140 = vmatpush3.bf16.msra.mxu1 %v8826_v59 }
 0x170   :  { %984 = vmatprep.subr.bf16.mxu0 %v9406_v9  ;;  %8141 = vmatprep.subr.bf16.mxu1 %v11018_v0 }
 0x173   :  { %985 = vmatpush1.bf16.msra.mxu0 %v9407_v12  ;;  %8142 = vmatpush3.bf16.msra.mxu1 %v8827_v6 }
 0x174   :  { %986 = vmatprep.subr.bf16.mxu0 %v9408_v14  ;;  %8143 = vmatprep.subr.bf16.mxu1 %v11018_v0 }
 0x177   :  { %987 = vmatpush1.bf16.msra.mxu0 %v9409_v15  ;;  %8144 = vmatpush3.bf16.msra.mxu1 %v8828_v13 }
 0x178   :  { %988 = vmatprep.subr.bf16.mxu0 %v9410_v17  ;;  %8145 = vmatprep.subr.bf16.mxu1 %v11018_v0 }
 0x17b   :  { %989 = vmatpush1.bf16.msra.mxu0 %v9411_v18  ;;  %8146 = vmatpush3.bf16.msra.mxu1 %v8829_v16 }
 0x17c   :  { %990 = vmatprep.subr.bf16.mxu0 %v9412_v20  ;;  %8147 = vmatprep.subr.bf16.mxu1 %v11018_v0 }
 0x17f   :  { %991 = vmatpush1.bf16.msra.mxu0 %v9413_v21  ;;  %8148 = vmatpush3.bf16.msra.mxu1 %v8830_v19 }
 0x180   :  { %992 = vmatprep.subr.bf16.mxu0 %v9414_v23  ;;  %8149 = vmatprep.subr.bf16.mxu1 %v11018_v0 }
 0x183   :  { %993 = vmatpush1.bf16.msra.mxu0 %v9415_v24  ;;  %8150 = vmatpush3.bf16.msra.mxu1 %v8831_v22 }
 0x184   :  { %1219 = vmatprep.subr.bf16.mxu0 %v9416_v27  ;;  %8155 = vmatprep.subr.bf16.mxu1 %v11018_v0 }
 0x186   :  { %1011 = vmatmul.mubr.bf16.vlgmr.msra.gmra.mxu0 %v817_v25  ;;  %8152 = vmatmul.mubr.bf16.vlgmr.msra.gmra.mxu1 %v817_v25 }
 0x187   :  { %1220 = vmatpush1.bf16.msra.mxu0 %v9417_v28  ;;  %8156 = vmatpush3.bf16.msra.mxu1 %v8832_v26 }
 0x188   :  { %1221 = vmatprep.subr.bf16.mxu0 %v9418_v30  ;;  %8157 = vmatprep.subr.bf16.mxu1 %v11018_v0 }
 0x189   :  { %1251 = vmatprep.mubr.bf16.mxu0 %v11015_v1  ;;  %8171 = vmatprep.mubr.msk.bf16.mxu1 %vm9528_vm0, %v11018_v0 }
 0x18b   :  { %1222 = vmatpush1.bf16.msra.mxu0 %v9419_v31  ;;  %8158 = vmatpush3.bf16.msra.mxu1 %v8833_v29 }
 0x18c   :  { %1223 = vmatprep.subr.bf16.mxu0 %v9420_v33  ;;  %8159 = vmatprep.subr.bf16.mxu1 %v11018_v0 }
 0x18f   :  { %1224 = vmatpush1.bf16.msra.mxu0 %v9421_v34  ;;  %8160 = vmatpush3.bf16.msra.mxu1 %v8834_v32 }
 0x190   :  { %1225 = vmatprep.subr.bf16.mxu0 %v9422_v36  ;;  %8161 = vmatprep.subr.bf16.mxu1 %v11018_v0 }
 0x193   :  { %1226 = vmatpush1.bf16.msra.mxu0 %v9423_v37  ;;  %8162 = vmatpush3.bf16.msra.mxu1 %v8835_v35 }
 0x194   :  { %1227 = vmatprep.subr.bf16.mxu0 %v9424_v39  ;;  %8163 = vmatprep.subr.bf16.mxu1 %v11018_v0  ;;  %v9721_v39 = vld [vmem:[#allocation6 + $0xa8] ss:$12 sps:$4 sm:$0xff]  }
 0x197   :  { %1228 = vmatpush1.bf16.msra.mxu0 %v9425_v40  ;;  %8164 = vmatpush3.bf16.msra.mxu1 %v8836_v38  ;;  %v8851_v40 = vld [vmem:[#allocation6 + $0xb0] ss:$12 sps:$4 sm:$0xff]  }
 0x198   :  { %1229 = vmatprep.subr.bf16.mxu0 %v9426_v42  ;;  %8165 = vmatprep.subr.bf16.mxu1 %v11018_v0  ;;  %v9727_v42 = vld [vmem:[#allocation6 + $0x94] ss:$12 sps:$4 sm:$0xff]  }
 0x19b   :  { %1230 = vmatpush1.bf16.msra.mxu0 %v9427_v43  ;;  %8166 = vmatpush3.bf16.msra.mxu1 %v8837_v41  ;;  %v9732_v43 = vld [vmem:[#allocation6 + $0x90] ss:$12 sps:$4 sm:$0xff]  }
 0x19c   :  { %1231 = vmatprep.subr.bf16.mxu0 %v9428_v45  ;;  %8167 = vmatprep.subr.bf16.mxu1 %v11018_v0  ;;  %v9742_v45 = vld [vmem:[#allocation6 + $0x78] ss:$12 sps:$4 sm:$0xff]  }
 0x19f   :  { %1232 = vmatpush1.bf16.msra.mxu0 %v9429_v47  ;;  %8168 = vmatpush3.bf16.msra.mxu1 %v8838_v44  ;;  %v9736_v44 = vld [vmem:[#allocation6 + $0x7c] ss:$12 sps:$4 sm:$0xff]   ;;  %v8859_v47 = vld [vmem:[#allocation6 + $0x80] ss:$12 sps:$4 sm:$0xff]  }
 0x1a0   :  { %1233 = vmatprep.subr.bf16.mxu0 %v9430_v50  ;;  %8169 = vmatprep.subr.bf16.mxu1 %v11018_v0  ;;  %v9749_v50 = vld [vmem:[#allocation6 + $0x60] ss:$12 sps:$4 sm:$0xff]  }
 0x1a3   :  { %1234 = vmatpush1.bf16.msra.mxu0 %v9431_v53  ;;  %8170 = vmatpush3.bf16.msra.mxu1 %v8839_v49  ;;  %v9746_v49 = vld [vmem:[#allocation6 + $0x64] ss:$12 sps:$4 sm:$0xff]   ;;  %v8863_v53 = vld [vmem:[#allocation6 + $0x68] ss:$12 sps:$4 sm:$0xff]  }
 0x1a4   :  { %1482 = vmatprep.subr.bf16.mxu0 %v9596_v52  ;;  %8175 = vmatprep.subr.bf16.mxu1 %v11018_v0  ;;  %v8841_v52 = vld [vmem:[#allocation6 + $0x158] ss:$12 sps:$4 sm:$0xff]  }
 0x1a6   :  { %1252 = vmatmul.mubr.bf16.vlgmr.msra.gmra.mxu0 %v9654_v48  ;;  %8172 = vmatmul.mubr.bf16.vlgmr.msra.gmra.mxu1 %v9654_v48 }
 0x1a7   :  { %1483 = vmatpush1.bf16.msra.mxu0 %v9594_v51  ;;  %1514 = vmatprep.mubr.bf16.mxu0 %v11015_v1  ;;  %v8840_v51 = vld [vmem:[#allocation6 + $0x170] ss:$12 sps:$4 sm:$0xff]  }
 0x1a8   :  { %1484 = vmatprep.subr.bf16.mxu0 %v9601_v54  ;;  %8191 = vmatprep.mubr.msk.bf16.mxu1 %vm9528_vm0, %v11018_v0  ;;  %v8842_v54 = vld [vmem:[#allocation6 + $0x140] ss:$12 sps:$4 sm:$0xff]  }
 0x1a9   :  { %8176 = vmatpush3.bf16.msra.mxu1 %v8840_v51  ;;  %v9753_v51 = vld [vmem:[#allocation6 + $0x4c] ss:$12 sps:$4 sm:$0xff]  }
 0x1aa   :  { %8177 = vmatprep.subr.bf16.mxu1 %v11018_v0 }
 0x1ab   :  { %1485 = vmatpush1.bf16.msra.mxu0 %v9603_v55  ;;  %v8843_v55 = vld [vmem:[#allocation6 + $0x128] ss:$12 sps:$4 sm:$0xff]  }
 0x1ac   :  { %1486 = vmatprep.subr.bf16.mxu0 %v9607_v57  ;;  %v8844_v57 = vld [vmem:[#allocation6 + $0x110] ss:$12 sps:$4 sm:$0xff]  }
 0x1ad   :  { %8178 = vmatpush3.bf16.msra.mxu1 %v8841_v52  ;;  %v9756_v52 = vld [vmem:[#allocation6 + $0x48] ss:$12 sps:$4 sm:$0xff]  }
 0x1ae   :  { %8179 = vmatprep.subr.bf16.mxu1 %v11018_v0 }
 0x1af   :  { %1487 = vmatpush1.bf16.msra.mxu0 %v9610_v58  ;;  %v9705_v58 = vld [vmem:[#allocation6 + $0xac] ss:$12 sps:$4 sm:$0xff]  }
 0x1b0   :  { %1488 = vmatprep.subr.bf16.mxu0 %v9614_v60  ;;  %v8845_v60 = vld [vmem:[#allocation6 + $0xf8] ss:$12 sps:$4 sm:$0xff]  }
 0x1b1   :  { %8180 = vmatpush3.bf16.msra.mxu1 %v8842_v54  ;;  %v8867_v54 = vld [vmem:[#allocation6 + $0x50] ss:$12 sps:$4 sm:$0xff]  }
 0x1b2   :  { %8181 = vmatprep.subr.bf16.mxu1 %v11018_v0 }
 0x1b3   :  { %1489 = vmatpush1.bf16.msra.mxu0 %v9617_v61  ;;  %v8846_v61 = vld [vmem:[#allocation6 + $0xe0] ss:$12 sps:$4 sm:$0xff]  }
 0x1b4   :  { %1490 = vmatprep.subr.bf16.mxu0 %v9623_v2 }
 0x1b5   :  { %8182 = vmatpush3.bf16.msra.mxu1 %v8843_v55  ;;  %v9760_v55 = vld [vmem:[#allocation6 + $0x34] ss:$12 sps:$4 sm:$0xff]  }
 0x1b6   :  { %8183 = vmatprep.subr.bf16.mxu1 %v11018_v0 }
 0x1b7   :  { %1491 = vmatpush1.bf16.msra.mxu0 %v9621_v63  ;;  %v8847_v63 = vld [vmem:[#allocation6 + $0xc8] ss:$12 sps:$4 sm:$0xff]  }
 0x1b8   :  { %1492 = vmatprep.subr.bf16.mxu0 %v9626_v4 }
 0x1b9   :  { %8184 = vmatpush3.bf16.msra.mxu1 %v8844_v57  ;;  %v9763_v57 = vld [vmem:[#allocation6 + $0x30] ss:$12 sps:$4 sm:$0xff]  }
 0x1ba   :  { %8185 = vmatprep.subr.bf16.mxu1 %v11018_v0 }
 0x1bb   :  { %1493 = vmatpush1.bf16.msra.mxu0 %v9629_v5 }
 0x1bc   :  { %1494 = vmatprep.subr.bf16.mxu0 %v9631_v7 }
 0x1bd   :  { %8186 = vmatpush3.bf16.msra.mxu1 %v8845_v60  ;;  %v8871_v60 = vld [vmem:[#allocation6 + $0x38] ss:$12 sps:$4 sm:$0xff]  }
 0x1be   :  { %8187 = vmatprep.subr.bf16.mxu1 %v11018_v0 }
 0x1bf   :  { %1495 = vmatpush1.bf16.msra.mxu0 %v9636_v8 }
 0x1c0   :  { %1496 = vmatprep.subr.bf16.mxu0 %v9638_v10 }
 0x1c1   :  { %8188 = vmatpush3.bf16.msra.mxu1 %v8846_v61  ;;  %v9767_v61 = vld [vmem:[#allocation6 + $0x1c] ss:$12 sps:$4 sm:$0xff]  }
 0x1c2   :  { %8189 = vmatprep.subr.bf16.mxu1 %v11018_v0 }
 0x1c3   :  { %1497 = vmatpush1.bf16.msra.mxu0 %v9643_v11 }
 0x1c4   :  { %1729 = vmatprep.subr.bf16.mxu0 %v9705_v58 }
 0x1c5   :  { %8190 = vmatpush3.bf16.msra.mxu1 %v8847_v63  ;;  %v9770_v63 = vld [vmem:[#allocation6 + $0x18] ss:$12 sps:$4 sm:$0xff]  }
 0x1c6   :  { %8195 = vmatprep.subr.bf16.mxu1 %v11018_v0 }
 0x226   :  { %v9712_v2 = vpop.f32.mrf.mxu0  ;;  %v9714_v4 = vpop.f32.mrf.mxu1 }
 0x227   :  { %11038 = vst [vmem:[#allocation13_spill] sm:$0xff] %v9712_v2  ;;  %11039 = vst [vmem:[#allocation14_spill] sm:$0xff] %v9714_v4 }
 0x228   :  { %v9716_v5 = vpop.f32.mrf.mxu0  ;;  %v8133_v7 = vpop.f32.mrf.mxu1 }
 0x229   :  { %11040 = vst [vmem:[#allocation15_spill] sm:$0xff] %v9716_v5  ;;  %v8875_v7 = vld [vmem:[#allocation6 + $0x20] ss:$12 sps:$4 sm:$0xff]  }
 0x22a   :  { %v770_v8 = vpop.f32.mrf.mxu0  ;;  %v810_v10 = vpop.f32.mrf.mxu1 }
 0x22b   :  { %v9774_v8 = vld [vmem:[#allocation6 + $0x4] ss:$12 sps:$4 sm:$0xff]   ;;  %v9777_v10 = vld [vmem:[#allocation6] ss:$12 sps:$4 sm:$0xff]  }
 0x22c   :  { %v771_v11 = vpop.f32.mrf.mxu0  ;;  %v8134_v48 = vpop.f32.mrf.mxu1 }
 0x22d   :  { %v8879_v11 = vld [vmem:[#allocation6 + $0x8] ss:$12 sps:$4 sm:$0xff]   ;;  %v9781_v48 = vld [vmem:[#allocation8 + $0xac] ss:$12 sps:$4 sm:$0xff]  }
 0x246   :  { %v1012_v56 = vpop.f32.mrf.mxu0  ;;  %v1053_v59 = vpop.f32.mrf.mxu1 }
 0x248   :  { %v1014_v62 = vpop.f32.mrf.mxu0  ;;  %v8153_v3 = vpop.f32.mrf.mxu1 }
 0x249   :  { %v9788_v3 = vld [vmem:[#allocation8 + $0x94] ss:$12 sps:$4 sm:$0xff]  }
 0x24a   :  { %v1016_v6 = vpop.f32.mrf.mxu0  ;;  %v1056_v9 = vpop.f32.mrf.mxu1 }
 0x24b   :  { %v9791_v6 = vld [vmem:[#allocation8 + $0x90] ss:$12 sps:$4 sm:$0xff]   ;;  %v8887_v9 = vld [vmem:[#allocation8 + $0x98] ss:$12 sps:$4 sm:$0xff]  }
 0x24c   :  { %v1017_v12 = vpop.f32.mrf.mxu0  ;;  %v8154_v13 = vpop.f32.mrf.mxu1 }
 0x24d   :  { %v9795_v12 = vld [vmem:[#allocation8 + $0x7c] ss:$12 sps:$4 sm:$0xff]   ;;  %v9801_v13 = vld [vmem:[#allocation8 + $0x78] ss:$12 sps:$4 sm:$0xff]  }
 0x266   :  { %v1253_v14 = vpop.f32.mrf.mxu0  ;;  %v1294_v15 = vpop.f32.mrf.mxu1 }
 0x267   :  { %v1300_v16 = vadd.f32 %v1253_v14, %v1012_v56  ;;  %v1568_v56 = vld [vmem:[#allocation3 + $0x8] sm:$0xf]  ;;  %v8891_v14 = vld [vmem:[#allocation8 + $0x80] ss:$12 sps:$4 sm:$0xff]  }
 0x268   :  { %v1255_v17 = vpop.f32.mrf.mxu0  ;;  %v8173_v18 = vpop.f32.mrf.mxu1 }
 0x269   :  { %v7277_v19 = vmul.f32 -1.442695, %v1300_v16  ;;  %v1307_v24 = vadd.f32 %v1255_v17, %v1014_v62  ;;  %v8883_v62 = vld [vmem:[#allocation8 + $0xb0] ss:$12 sps:$4 sm:$0xff]   ;;  %v9808_v16 = vld [vmem:[#allocation8 + $0x60] ss:$12 sps:$4 sm:$0xff]  }
 0x26a   :  { %v1257_v20 = vpop.f32.mrf.mxu0  ;;  %v1297_v21 = vpop.f32.mrf.mxu1  ;;  %v8895_v17 = vld [vmem:[#allocation8 + $0x68] ss:$12 sps:$4 sm:$0xff]   ;;  %v9812_v18 = vld [vmem:[#allocation8 + $0x4c] ss:$12 sps:$4 sm:$0xff]  }
 0x26b   :  { %9250 = vpow2.f32 %v7277_v19  ;;  %v7278_v25 = vmul.f32 -1.442695, %v1307_v24  ;;  %v9815_v19 = vld [vmem:[#allocation8 + $0x48] ss:$12 sps:$4 sm:$0xff]   ;;  %v8899_v20 = vld [vmem:[#allocation8 + $0x50] ss:$12 sps:$4 sm:$0xff]  }
 0x26c   :  { %v1258_v22 = vpop.f32.mrf.mxu0  ;;  %v8174_v23 = vpop.f32.mrf.mxu1  ;;  %v9819_v21 = vld [vmem:[#allocation8 + $0x34] ss:$12 sps:$4 sm:$0xff]   ;;  %v9826_v24 = vld [vmem:[#allocation8 + $0x1c] ss:$12 sps:$4 sm:$0xff]  }
 0x26d   :  { %9252 = vpow2.f32 %v7278_v25  ;;  %v9822_v22 = vld [vmem:[#allocation8 + $0x30] ss:$12 sps:$4 sm:$0xff]   ;;  %v8903_v23 = vld [vmem:[#allocation8 + $0x38] ss:$12 sps:$4 sm:$0xff]  }
 0x26e   :  { %v9829_v25 = vld [vmem:[#allocation8 + $0x18] ss:$12 sps:$4 sm:$0xff]  }
 0x278   :  { %v9251_v26 = vpop.eup %9250 }
 0x279   :  { %v1304_v27 = vadd.f32 1.0, %v9251_v26  ;;  %v8907_v26 = vld [vmem:[#allocation8 + $0x20] ss:$12 sps:$4 sm:$0xff]  }
 0x27a   :  { %v9253_v28 = vpop.eup %9252 }
 0x27b   :  { %9254 = vrcp.f32 %v1304_v27  ;;  %v1311_v29 = vadd.f32 1.0, %v9253_v28  ;;  %v9833_v27 = vld [vmem:[#allocation8 + $0x4] ss:$12 sps:$4 sm:$0xff]   ;;  %v9836_v28 = vld [vmem:[#allocation8] ss:$12 sps:$4 sm:$0xff]  }
 0x27d   :  { %9256 = vrcp.f32 %v1311_v29  ;;  %v8911_v29 = vld [vmem:[#allocation8 + $0x8] ss:$12 sps:$4 sm:$0xff]  }
 0x288   :  { %v9255_v30 = vpop.eup %9254 }
 0x289   :  { %v1314_v31 = vmul.f32 %v9255_v30, %v1294_v15  ;;  %v9805_v15 = vld [vmem:[#allocation8 + $0x64] ss:$12 sps:$4 sm:$0xff]   ;;  %v9847_v30 = vld [vmem:[#allocation6 + $0x16c] ss:$12 sps:$4 sm:$0xff]  }
 0x28a   :  { %v9257_v33 = vpop.eup %9256 }
 0x28b   :  { %v1315_v32 = vadd.f32 %v1314_v31, %v1053_v59  ;;  %v1317_v34 = vsub.f32 1.0, %v9257_v33  ;;  %v1319_v37 = vmul.f32 %v9257_v33, %v9650_v46  ;;  %v8855_v46 = vld [vmem:[#allocation6 + $0x98] ss:$12 sps:$4 sm:$0xff]   ;;  %v9784_v59 = vld [vmem:[#allocation8 + $0xa8] ss:$12 sps:$4 sm:$0xff]  }
 0x28c   :  { %v9849_v31 = vld [vmem:[#allocation6 + $0x168] ss:$12 sps:$4 sm:$0xff]  }
 0x28d   :  { %9258 = vtanh.f32 %v1315_v32  ;;  %v8915_v32 = vld [vmem:[#allocation6 + $0x170] ss:$12 sps:$4 sm:$0xff]   ;;  %v9853_v33 = vld [vmem:[#allocation6 + $0x154] ss:$12 sps:$4 sm:$0xff]  }
 0x29a   :  { %v9259_v35 = vpop.eup %9258 }
 0x29b   :  { %v1318_v36 = vmul.f32 %v9259_v35, %v1317_v34  ;;  %v9856_v34 = vld [vmem:[#allocation6 + $0x150] ss:$12 sps:$4 sm:$0xff]   ;;  %v8919_v35 = vld [vmem:[#allocation6 + $0x158] ss:$12 sps:$4 sm:$0xff]  }
 0x29d   :  { %v9719_v38 = vadd.f32 %v1319_v37, %v1318_v36  ;;  %v9860_v36 = vld [vmem:[#allocation6 + $0x13c] ss:$12 sps:$4 sm:$0xff]   ;;  %v9863_v37 = vld [vmem:[#allocation6 + $0x138] ss:$12 sps:$4 sm:$0xff]  }
 0x29f   :  { %v9725_v41 = vpack.c.bf16 %v9719_v38, %v9719_v38 }
 0x2a1   :  { %1515 = vmatmul.mubr.bf16.vlgmr.msra.gmra.mxu0 %v9725_v41  ;;  %8192 = vmatmul.mubr.bf16.vlgmr.msra.gmra.mxu1 %v9725_v41 }
 0x2a2   :  { %1730 = vmatpush1.bf16.msra.mxu0 %v9721_v39  ;;  %8196 = vmatpush3.bf16.msra.mxu1 %v8851_v40  ;;  %v8923_v40 = vld [vmem:[#allocation6 + $0x140] ss:$12 sps:$4 sm:$0xff]  }
 0x2a3   :  { %1731 = vmatprep.subr.bf16.mxu0 %v9727_v42  ;;  %8197 = vmatprep.subr.bf16.mxu1 %v11018_v0 }
 0x2a4   :  { %1761 = vmatprep.mubr.bf16.mxu0 %v11015_v1  ;;  %8211 = vmatprep.mubr.msk.bf16.mxu1 %vm9528_vm0, %v11018_v0 }
 0x2a6   :  { %1732 = vmatpush1.bf16.msra.mxu0 %v9732_v43  ;;  %8198 = vmatpush3.bf16.msra.mxu1 %v8855_v46  ;;  %v9870_v46 = vld [vmem:[#allocation6 + $0x120] ss:$12 sps:$4 sm:$0xff]  }
 0x2a7   :  { %1733 = vmatprep.subr.bf16.mxu0 %v9736_v44  ;;  %8199 = vmatprep.subr.bf16.mxu1 %v11018_v0 }
 0x2aa   :  { %1734 = vmatpush1.bf16.msra.mxu0 %v9742_v45  ;;  %8200 = vmatpush3.bf16.msra.mxu1 %v8859_v47  ;;  %v8927_v47 = vld [vmem:[#allocation6 + $0x128] ss:$12 sps:$4 sm:$0xff]  }
 0x2ab   :  { %1735 = vmatprep.subr.bf16.mxu0 %v9746_v49  ;;  %8201 = vmatprep.subr.bf16.mxu1 %v11018_v0 }
 0x2ae   :  { %1736 = vmatpush1.bf16.msra.mxu0 %v9749_v50  ;;  %8202 = vmatpush3.bf16.msra.mxu1 %v8863_v53  ;;  %v9874_v53 = vld [vmem:[#allocation6 + $0x108] ss:$12 sps:$4 sm:$0xff]  }
 0x2af   :  { %1737 = vmatprep.subr.bf16.mxu0 %v9753_v51  ;;  %8203 = vmatprep.subr.bf16.mxu1 %v11018_v0 }
 0x2b2   :  { %1738 = vmatpush1.bf16.msra.mxu0 %v9756_v52  ;;  %8204 = vmatpush3.bf16.msra.mxu1 %v8867_v54  ;;  %v9876_v54 = vld [vmem:[#allocation6 + $0x10c] ss:$12 sps:$4 sm:$0xff]  }
 0x2b3   :  { %1739 = vmatprep.subr.bf16.mxu0 %v9760_v55  ;;  %8205 = vmatprep.subr.bf16.mxu1 %v11018_v0 }
 0x2b6   :  { %1740 = vmatpush1.bf16.msra.mxu0 %v9763_v57  ;;  %8206 = vmatpush3.bf16.msra.mxu1 %v8871_v60  ;;  %v8931_v60 = vld [vmem:[#allocation6 + $0x110] ss:$12 sps:$4 sm:$0xff]  }
 0x2b7   :  { %1741 = vmatprep.subr.bf16.mxu0 %v9767_v61  ;;  %8207 = vmatprep.subr.bf16.mxu1 %v11018_v0 }
 0x2ba   :  { %1742 = vmatpush1.bf16.msra.mxu0 %v9770_v63  ;;  %8208 = vmatpush3.bf16.msra.mxu1 %v8875_v7  ;;  %v9879_v7 = vld [vmem:[#allocation6 + $0xf4] ss:$12 sps:$4 sm:$0xff]  }
 0x2bb   :  { %1743 = vmatprep.subr.bf16.mxu0 %v9774_v8  ;;  %8209 = vmatprep.subr.bf16.mxu1 %v11018_v0 }
 0x2be   :  { %1744 = vmatpush1.bf16.msra.mxu0 %v9777_v10  ;;  %8210 = vmatpush3.bf16.msra.mxu1 %v8879_v11  ;;  %v9883_v11 = vld [vmem:[#allocation6 + $0xf0] ss:$12 sps:$4 sm:$0xff]  }
 0x2bf   :  { %1970 = vmatprep.subr.bf16.mxu0 %v9781_v48  ;;  %8215 = vmatprep.subr.bf16.mxu1 %v11018_v0  ;;  %11041 = vst [vmem:[#allocation16_spill] sm:$0xff] %v9883_v11 }
 0x2c1   :  { %1762 = vmatmul.mubr.bf16.vlgmr.msra.gmra.mxu0 %v1568_v56  ;;  %8212 = vmatmul.mubr.bf16.vlgmr.msra.gmra.mxu1 %v1568_v56  ;;  %v8935_v56 = vld [vmem:[#allocation6 + $0xf8] ss:$12 sps:$4 sm:$0xff]  }
 0x2c2   :  { %1971 = vmatpush1.bf16.msra.mxu0 %v9784_v59  ;;  %8216 = vmatpush3.bf16.msra.mxu1 %v8883_v62  ;;  %v9887_v62 = vld [vmem:[#allocation6 + $0xdc] ss:$12 sps:$4 sm:$0xff]  }
 0x2c3   :  { %1972 = vmatprep.subr.bf16.mxu0 %v9788_v3  ;;  %8217 = vmatprep.subr.bf16.mxu1 %v11018_v0  ;;  %11042 = vst [vmem:[#allocation17_spill] sm:$0xff] %v9887_v62 }
 0x2c4   :  { %2002 = vmatprep.mubr.bf16.mxu0 %v11015_v1  ;;  %8231 = vmatprep.mubr.msk.bf16.mxu1 %vm9528_vm0, %v11018_v0 }
 0x2c6   :  { %1973 = vmatpush1.bf16.msra.mxu0 %v9791_v6  ;;  %8218 = vmatpush3.bf16.msra.mxu1 %v8887_v9  ;;  %v9890_v9 = vld [vmem:[#allocation6 + $0xd8] ss:$12 sps:$4 sm:$0xff]  }
 0x2c7   :  { %1974 = vmatprep.subr.bf16.mxu0 %v9795_v12  ;;  %8219 = vmatprep.subr.bf16.mxu1 %v11018_v0  ;;  %11043 = vst [vmem:[#allocation18_spill] sm:$0xff] %v9890_v9 }
 0x2ca   :  { %1975 = vmatpush1.bf16.msra.mxu0 %v9801_v13  ;;  %8220 = vmatpush3.bf16.msra.mxu1 %v8891_v14  ;;  %v8939_v14 = vld [vmem:[#allocation6 + $0xe0] ss:$12 sps:$4 sm:$0xff]  }
 0x2cb   :  { %1976 = vmatprep.subr.bf16.mxu0 %v9805_v15  ;;  %8221 = vmatprep.subr.bf16.mxu1 %v11018_v0 }
 0x2ce   :  { %1977 = vmatpush1.bf16.msra.mxu0 %v9808_v16  ;;  %8222 = vmatpush3.bf16.msra.mxu1 %v8895_v17  ;;  %v9894_v17 = vld [vmem:[#allocation6 + $0xc4] ss:$12 sps:$4 sm:$0xff]  }
 0x2cf   :  { %1978 = vmatprep.subr.bf16.mxu0 %v9812_v18  ;;  %8223 = vmatprep.subr.bf16.mxu1 %v11018_v0  ;;  %11044 = vst [vmem:[#allocation19_spill] sm:$0xff] %v9894_v17 }
 0x2d2   :  { %1979 = vmatpush1.bf16.msra.mxu0 %v9815_v19  ;;  %8224 = vmatpush3.bf16.msra.mxu1 %v8899_v20  ;;  %v9897_v20 = vld [vmem:[#allocation6 + $0xc0] ss:$12 sps:$4 sm:$0xff]  }
 0x2d3   :  { %1980 = vmatprep.subr.bf16.mxu0 %v9819_v21  ;;  %8225 = vmatprep.subr.bf16.mxu1 %v11018_v0  ;;  %11045 = vst [vmem:[#allocation20_spill] sm:$0xff] %v9897_v20 }
 0x2d6   :  { %1981 = vmatpush1.bf16.msra.mxu0 %v9822_v22  ;;  %8226 = vmatpush3.bf16.msra.mxu1 %v8903_v23  ;;  %v8943_v23 = vld [vmem:[#allocation6 + $0xc8] ss:$12 sps:$4 sm:$0xff]  }
 0x2d7   :  { %1982 = vmatprep.subr.bf16.mxu0 %v9826_v24  ;;  %8227 = vmatprep.subr.bf16.mxu1 %v11018_v0 }
 0x2da   :  { %1983 = vmatpush1.bf16.msra.mxu0 %v9829_v25  ;;  %8228 = vmatpush3.bf16.msra.mxu1 %v8907_v26 }
 0x2db   :  { %1984 = vmatprep.subr.bf16.mxu0 %v9833_v27  ;;  %8229 = vmatprep.subr.bf16.mxu1 %v11018_v0 }
 0x2de   :  { %1985 = vmatpush1.bf16.msra.mxu0 %v9836_v28  ;;  %8230 = vmatpush3.bf16.msra.mxu1 %v8911_v29 }
 0x2df   :  { %8235 = vmatprep.subr.bf16.mxu1 %v11018_v0  ;;  %2233 = vmatprep.subr.bf16.mxu0 %v9847_v30 }
 0x2e1   :  { %2003 = vmatmul.mubr.bf16.vlgmr.msra.gmra.mxu0 %v9725_v41  ;;  %8232 = vmatmul.mubr.bf16.vlgmr.msra.gmra.mxu1 %v9725_v41  ;;  %v9867_v41 = vld [vmem:[#allocation6 + $0x124] ss:$12 sps:$4 sm:$0xff]  }
 0x2e2   :  { %2265 = vmatprep.mubr.bf16.mxu0 %v11015_v1  ;;  %8251 = vmatprep.mubr.msk.bf16.mxu1 %vm9528_vm0, %v11018_v0 }
 0x2e3   :  { %2234 = vmatpush1.bf16.msra.mxu0 %v9849_v31  ;;  %8236 = vmatpush3.bf16.msra.mxu1 %v8915_v32 }
 0x2e4   :  { %8237 = vmatprep.subr.bf16.mxu1 %v11018_v0  ;;  %2235 = vmatprep.subr.bf16.mxu0 %v9853_v33 }
 0x2e7   :  { %2236 = vmatpush1.bf16.msra.mxu0 %v9856_v34  ;;  %8238 = vmatpush3.bf16.msra.mxu1 %v8919_v35 }
 0x2e8   :  { %8239 = vmatprep.subr.bf16.mxu1 %v11018_v0  ;;  %2237 = vmatprep.subr.bf16.mxu0 %v9860_v36 }
 0x2eb   :  { %2238 = vmatpush1.bf16.msra.mxu0 %v9863_v37  ;;  %8240 = vmatpush3.bf16.msra.mxu1 %v8923_v40 }
 0x2ec   :  { %8241 = vmatprep.subr.bf16.mxu1 %v11018_v0  ;;  %2239 = vmatprep.subr.bf16.mxu0 %v9867_v41 }
 0x2ef   :  { %2240 = vmatpush1.bf16.msra.mxu0 %v9870_v46  ;;  %8242 = vmatpush3.bf16.msra.mxu1 %v8927_v47 }
 0x2f0   :  { %8243 = vmatprep.subr.bf16.mxu1 %v11018_v0  ;;  %2241 = vmatprep.subr.bf16.mxu0 %v9876_v54 }
 0x2f3   :  { %2242 = vmatpush1.bf16.msra.mxu0 %v9874_v53  ;;  %8244 = vmatpush3.bf16.msra.mxu1 %v8931_v60 }
 0x2f4   :  { %2243 = vmatprep.subr.bf16.mxu0 %v9879_v7  ;;  %8245 = vmatprep.subr.bf16.mxu1 %v11018_v0 }
 0x2f7   :  { %2244 = vmatpush1.bf16.msra.mxu0 %v9883_v11  ;;  %8246 = vmatpush3.bf16.msra.mxu1 %v8935_v56 }
 0x2f8   :  { %2245 = vmatprep.subr.bf16.mxu0 %v9887_v62  ;;  %8247 = vmatprep.subr.bf16.mxu1 %v11018_v0 }
 0x2fb   :  { %2246 = vmatpush1.bf16.msra.mxu0 %v9890_v9  ;;  %8248 = vmatpush3.bf16.msra.mxu1 %v8939_v14 }
 0x2fc   :  { %2247 = vmatprep.subr.bf16.mxu0 %v9894_v17  ;;  %8249 = vmatprep.subr.bf16.mxu1 %v11018_v0 }
 0x2ff   :  { %2248 = vmatpush1.bf16.msra.mxu0 %v9897_v20  ;;  %8250 = vmatpush3.bf16.msra.mxu1 %v8943_v23 }
 0x300   :  { %2480 = vmatprep.subr.bf16.mxu0 %v9705_v58  ;;  %8255 = vmatprep.subr.bf16.mxu1 %v11018_v0 }
 0x361   :  { %v9904_v26 = vpop.f32.mrf.mxu0  ;;  %v9906_v29 = vpop.f32.mrf.mxu1 }
 0x362   :  { %11046 = vst [vmem:[#allocation21_spill] sm:$0xff] %v9904_v26  ;;  %11047 = vst [vmem:[#allocation22_spill] sm:$0xff] %v9906_v29 }
 0x363   :  { %v9908_v32 = vpop.f32.mrf.mxu0  ;;  %v8193_v35 = vpop.f32.mrf.mxu1 }
 0x364   :  { %11048 = vst [vmem:[#allocation23_spill] sm:$0xff] %v9908_v32 }
 0x365   :  { %v1520_v40 = vpop.f32.mrf.mxu0  ;;  %v1560_v47 = vpop.f32.mrf.mxu1 }
 0x367   :  { %v1521_v60 = vpop.f32.mrf.mxu0  ;;  %v8194_v56 = vpop.f32.mrf.mxu1 }
 0x381   :  { %v1763_v14 = vpop.f32.mrf.mxu0  ;;  %v1804_v1 = vpop.f32.mrf.mxu1 }
 0x383   :  { %v1765_v4 = vpop.f32.mrf.mxu0  ;;  %v8213_v5 = vpop.f32.mrf.mxu1 }
 0x385   :  { %v1767_v23 = vpop.f32.mrf.mxu0  ;;  %v1807_v2 = vpop.f32.mrf.mxu1 }
 0x387   :  { %v1768_v58 = vpop.f32.mrf.mxu0  ;;  %v8214_v20 = vpop.f32.mrf.mxu1 }
 0x3a1   :  { %v2004_v0 = vpop.f32.mrf.mxu0  ;;  %v2045_v17 = vpop.f32.mrf.mxu1 }
 0x3a2   :  { %v2051_v26 = vadd.f32 %v2004_v0, %v1763_v14 }
 0x3a3   :  { %v2006_v9 = vpop.f32.mrf.mxu0  ;;  %v8233_v29 = vpop.f32.mrf.mxu1 }
 0x3a4   :  { %v7351_v62 = vmul.f32 -1.442695, %v2051_v26  ;;  %v2058_v60 = vadd.f32 %v2006_v9, %v1765_v4  ;;  %v8944_v4 = vld [vmem:[#allocation6 + $0xb0] ss:$12 sps:$4 sm:$0xff]   ;;  %v11049_v9 = vmov 0.0  }
 0x3a5   :  { %v2008_v32 = vpop.f32.mrf.mxu0  ;;  %v2048_v35 = vpop.f32.mrf.mxu1 }
 0x3a6   :  { %9260 = vpow2.f32 %v7351_v62  ;;  %v7352_v56 = vmul.f32 -1.442695, %v2058_v60 }
 0x3a7   :  { %v2009_v40 = vpop.f32.mrf.mxu0  ;;  %v8234_v47 = vpop.f32.mrf.mxu1 }
 0x3a8   :  { %9262 = vpow2.f32 %v7352_v56 }
 0x3b3   :  { %v9261_v11 = vpop.eup %9260 }
 0x3b4   :  { %v2055_v5 = vadd.f32 1.0, %v9261_v11 }
 0x3b5   :  { %v9263_v2 = vpop.eup %9262 }
 0x3b6   :  { %9264 = vrcp.f32 %v2055_v5  ;;  %v2062_v23 = vadd.f32 1.0, %v9263_v2 }
 0x3b8   :  { %9266 = vrcp.f32 %v2062_v23 }
 0x3c3   :  { %v9265_v20 = vpop.eup %9264 }
 0x3c4   :  { %v2065_v58 = vmul.f32 %v9265_v20, %v2045_v17  ;;  %v8946_v17 = vld [vmem:[#allocation6 + $0x80] ss:$12 sps:$4 sm:$0xff]  }
 0x3c5   :  { %v9267_v29 = vpop.eup %9266 }
 0x3c6   :  { %v2066_v0 = vadd.f32 %v2065_v58, %v1804_v1  ;;  %v2068_v26 = vsub.f32 1.0, %v9267_v29  ;;  %v2070_v62 = vmul.f32 %v9267_v29, %v9719_v38  ;;  %v8945_v1 = vld [vmem:[#allocation6 + $0x98] ss:$12 sps:$4 sm:$0xff]   ;;  %v11050_v38 = vmov 0  }
 0x3c8   :  { %9268 = vtanh.f32 %v2066_v0 }
 0x3d5   :  { %v9269_v32 = vpop.eup %9268 }
 0x3d6   :  { %v2069_v14 = vmul.f32 %v9269_v32, %v2068_v26 }
 0x3d8   :  { %v9911_v35 = vadd.f32 %v2070_v62, %v2069_v14 }
 0x3da   :  { %v9915_v11 = vpack.c.bf16 %v9911_v35, %v9911_v35 }
 0x3dc   :  { %2266 = vmatmul.mubr.bf16.vlgmr.msra.gmra.mxu0 %v9915_v11  ;;  %8252 = vmatmul.mubr.bf16.vlgmr.msra.gmra.mxu1 %v9915_v11 }
 0x3dd   :  { %2481 = vmatpush1.bf16.msra.mxu0 %v9721_v39  ;;  %8256 = vmatpush3.bf16.msra.mxu1 %v8944_v4  ;;  %v8947_v39 = vld [vmem:[#allocation6 + $0x68] ss:$12 sps:$4 sm:$0xff]  }
 0x3de   :  { %2482 = vmatprep.subr.bf16.mxu0 %v9727_v42  ;;  %8257 = vmatprep.subr.bf16.mxu1 %v11049_v9  ;;  %v8948_v42 = vld [vmem:[#allocation6 + $0x50] ss:$12 sps:$4 sm:$0xff]  }
 0x3df   :  { %2512 = vmatprep.mubr.bf16.mxu0 %v11050_v38  ;;  %8271 = vmatprep.mubr.msk.bf16.mxu1 %vm9528_vm0, %v11049_v9 }
 0x3e1   :  { %2483 = vmatpush1.bf16.msra.mxu0 %v9732_v43  ;;  %8258 = vmatpush3.bf16.msra.mxu1 %v8945_v1  ;;  %v8949_v43 = vld [vmem:[#allocation6 + $0x38] ss:$12 sps:$4 sm:$0xff]  }
 0x3e2   :  { %2484 = vmatprep.subr.bf16.mxu0 %v9736_v44  ;;  %8259 = vmatprep.subr.bf16.mxu1 %v11049_v9  ;;  %v8950_v44 = vld [vmem:[#allocation6 + $0x20] ss:$12 sps:$4 sm:$0xff]  }
 0x3e5   :  { %2485 = vmatpush1.bf16.msra.mxu0 %v9742_v45  ;;  %8260 = vmatpush3.bf16.msra.mxu1 %v8946_v17  ;;  %v8951_v45 = vld [vmem:[#allocation6 + $0x8] ss:$12 sps:$4 sm:$0xff]  }
 0x3e6   :  { %2486 = vmatprep.subr.bf16.mxu0 %v9746_v49  ;;  %8261 = vmatprep.subr.bf16.mxu1 %v11049_v9  ;;  %v2319_v49 = vld [vmem:[#allocation3 + $0xc] sm:$0xf] }
 0x3e9   :  { %2487 = vmatpush1.bf16.msra.mxu0 %v9749_v50  ;;  %8262 = vmatpush3.bf16.msra.mxu1 %v8947_v39  ;;  %v8952_v50 = vld [vmem:[#allocation8 + $0xb0] ss:$12 sps:$4 sm:$0xff]  }
 0x3ea   :  { %2488 = vmatprep.subr.bf16.mxu0 %v9753_v51  ;;  %8263 = vmatprep.subr.bf16.mxu1 %v11049_v9  ;;  %v8953_v51 = vld [vmem:[#allocation8 + $0x98] ss:$12 sps:$4 sm:$0xff]  }
 0x3ed   :  { %2489 = vmatpush1.bf16.msra.mxu0 %v9756_v52  ;;  %8264 = vmatpush3.bf16.msra.mxu1 %v8948_v42  ;;  %v8954_v52 = vld [vmem:[#allocation8 + $0x80] ss:$12 sps:$4 sm:$0xff]  }
 0x3ee   :  { %2490 = vmatprep.subr.bf16.mxu0 %v9760_v55  ;;  %8265 = vmatprep.subr.bf16.mxu1 %v11049_v9  ;;  %v8955_v55 = vld [vmem:[#allocation8 + $0x68] ss:$12 sps:$4 sm:$0xff]  }
 0x3f1   :  { %2491 = vmatpush1.bf16.msra.mxu0 %v9763_v57  ;;  %8266 = vmatpush3.bf16.msra.mxu1 %v8949_v43  ;;  %v8956_v57 = vld [vmem:[#allocation8 + $0x50] ss:$12 sps:$4 sm:$0xff]  }
 0x3f2   :  { %2492 = vmatprep.subr.bf16.mxu0 %v9767_v61  ;;  %8267 = vmatprep.subr.bf16.mxu1 %v11049_v9  ;;  %v8957_v61 = vld [vmem:[#allocation8 + $0x38] ss:$12 sps:$4 sm:$0xff]  }
 0x3f5   :  { %2493 = vmatpush1.bf16.msra.mxu0 %v9770_v63  ;;  %8268 = vmatpush3.bf16.msra.mxu1 %v8950_v44  ;;  %v8958_v63 = vld [vmem:[#allocation8 + $0x20] ss:$12 sps:$4 sm:$0xff]  }
 0x3f6   :  { %2494 = vmatprep.subr.bf16.mxu0 %v9774_v8  ;;  %8269 = vmatprep.subr.bf16.mxu1 %v11049_v9  ;;  %v8959_v8 = vld [vmem:[#allocation8 + $0x8] ss:$12 sps:$4 sm:$0xff]  }
 0x3f9   :  { %2495 = vmatpush1.bf16.msra.mxu0 %v9777_v10  ;;  %8270 = vmatpush3.bf16.msra.mxu1 %v8951_v45  ;;  %v11051_v10 = vld [vmem:[#allocation16_spill] sm:$0xff] }
 0x3fa   :  { %2721 = vmatprep.subr.bf16.mxu0 %v9781_v48  ;;  %8275 = vmatprep.subr.bf16.mxu1 %v11049_v9  ;;  %v11052_v48 = vld [vmem:[#allocation17_spill] sm:$0xff] }
 0x3fc   :  { %2513 = vmatmul.mubr.bf16.vlgmr.msra.gmra.mxu0 %v2319_v49  ;;  %8272 = vmatmul.mubr.bf16.vlgmr.msra.gmra.mxu1 %v2319_v49 }
 0x3fd   :  { %2722 = vmatpush1.bf16.msra.mxu0 %v9784_v59  ;;  %8276 = vmatpush3.bf16.msra.mxu1 %v8952_v50  ;;  %v11053_v59 = vld [vmem:[#allocation18_spill] sm:$0xff] }
 0x3fe   :  { %2723 = vmatprep.subr.bf16.mxu0 %v9788_v3  ;;  %8277 = vmatprep.subr.bf16.mxu1 %v11049_v9  ;;  %v11054_v3 = vld [vmem:[#allocation19_spill] sm:$0xff] }
 0x3ff   :  { %2753 = vmatprep.mubr.bf16.mxu0 %v11050_v38  ;;  %8291 = vmatprep.mubr.msk.bf16.mxu1 %vm9528_vm0, %v11049_v9 }
 0x401   :  { %2724 = vmatpush1.bf16.msra.mxu0 %v9791_v6  ;;  %8278 = vmatpush3.bf16.msra.mxu1 %v8953_v51  ;;  %v11055_v6 = vld [vmem:[#allocation20_spill] sm:$0xff] }
 0x402   :  { %2725 = vmatprep.subr.bf16.mxu0 %v9795_v12  ;;  %8279 = vmatprep.subr.bf16.mxu1 %v11049_v9  ;;  %v8960_v12 = vld [vmem:[#allocation6 + $0x170] ss:$12 sps:$4 sm:$0xff]  }
 0x405   :  { %2726 = vmatpush1.bf16.msra.mxu0 %v9801_v13  ;;  %8280 = vmatpush3.bf16.msra.mxu1 %v8954_v52  ;;  %v8961_v13 = vld [vmem:[#allocation6 + $0x158] ss:$12 sps:$4 sm:$0xff]   ;;  %v10013_v52 = vld [vmem:[#allocation6 + $0xa8] ss:$12 sps:$4 sm:$0xff]  }
 0x406   :  { %2727 = vmatprep.subr.bf16.mxu0 %v9805_v15  ;;  %8281 = vmatprep.subr.bf16.mxu1 %v11049_v9  ;;  %v8962_v15 = vld [vmem:[#allocation6 + $0x140] ss:$12 sps:$4 sm:$0xff]  }
 0x409   :  { %2728 = vmatpush1.bf16.msra.mxu0 %v9808_v16  ;;  %8282 = vmatpush3.bf16.msra.mxu1 %v8955_v55  ;;  %v8963_v16 = vld [vmem:[#allocation6 + $0x128] ss:$12 sps:$4 sm:$0xff]   ;;  %v8971_v55 = vld [vmem:[#allocation6 + $0xb0] ss:$12 sps:$4 sm:$0xff]  }
 0x40a   :  { %2729 = vmatprep.subr.bf16.mxu0 %v9812_v18  ;;  %8283 = vmatprep.subr.bf16.mxu1 %v11049_v9  ;;  %v8964_v18 = vld [vmem:[#allocation6 + $0x110] ss:$12 sps:$4 sm:$0xff]  }
 0x40d   :  { %2730 = vmatpush1.bf16.msra.mxu0 %v9815_v19  ;;  %8284 = vmatpush3.bf16.msra.mxu1 %v8956_v57  ;;  %v9997_v19 = vld [vmem:[#allocation6 + $0xac] ss:$12 sps:$4 sm:$0xff]  }
 0x40e   :  { %2731 = vmatprep.subr.bf16.mxu0 %v9819_v21  ;;  %8285 = vmatprep.subr.bf16.mxu1 %v11049_v9  ;;  %v8965_v21 = vld [vmem:[#allocation6 + $0xf8] ss:$12 sps:$4 sm:$0xff]  }
 0x411   :  { %2732 = vmatpush1.bf16.msra.mxu0 %v9822_v22  ;;  %8286 = vmatpush3.bf16.msra.mxu1 %v8957_v61  ;;  %v8966_v22 = vld [vmem:[#allocation6 + $0xe0] ss:$12 sps:$4 sm:$0xff]  }
 0x412   :  { %2733 = vmatprep.subr.bf16.mxu0 %v9826_v24  ;;  %8287 = vmatprep.subr.bf16.mxu1 %v11049_v9  ;;  %v8967_v24 = vld [vmem:[#allocation6 + $0xc8] ss:$12 sps:$4 sm:$0xff]  }
 0x413   :  { %v10019_v61 = vld [vmem:[#allocation6 + $0x94] ss:$12 sps:$4 sm:$0xff]  }
 0x415   :  { %2734 = vmatpush1.bf16.msra.mxu0 %v9829_v25  ;;  %8288 = vmatpush3.bf16.msra.mxu1 %v8958_v63  ;;  %v10024_v63 = vld [vmem:[#allocation6 + $0x90] ss:$12 sps:$4 sm:$0xff]  }
 0x416   :  { %2735 = vmatprep.subr.bf16.mxu0 %v9833_v27  ;;  %8289 = vmatprep.subr.bf16.mxu1 %v11049_v9 }
 0x419   :  { %2736 = vmatpush1.bf16.msra.mxu0 %v9836_v28  ;;  %8290 = vmatpush3.bf16.msra.mxu1 %v8959_v8  ;;  %v10028_v8 = vld [vmem:[#allocation6 + $0x7c] ss:$12 sps:$4 sm:$0xff]  }
 0x41a   :  { %2984 = vmatprep.subr.bf16.mxu0 %v9847_v30  ;;  %8295 = vmatprep.subr.bf16.mxu1 %v11049_v9 }
 0x41c   :  { %2754 = vmatmul.mubr.bf16.vlgmr.msra.gmra.mxu0 %v9915_v11  ;;  %8292 = vmatmul.mubr.bf16.vlgmr.msra.gmra.mxu1 %v9915_v11 }
 0x41d   :  { %2985 = vmatpush1.bf16.msra.mxu0 %v9849_v31  ;;  %3016 = vmatprep.mubr.bf16.mxu0 %v11050_v38 }
 0x41e   :  { %2986 = vmatprep.subr.bf16.mxu0 %v9853_v33  ;;  %8311 = vmatprep.mubr.msk.bf16.mxu1 %vm9528_vm0, %v11049_v9 }
 0x41f   :  { %8296 = vmatpush3.bf16.msra.mxu1 %v8960_v12  ;;  %v10045_v12 = vld [vmem:[#allocation6 + $0x4c] ss:$12 sps:$4 sm:$0xff]  }
 0x420   :  { %8297 = vmatprep.subr.bf16.mxu1 %v11049_v9 }
 0x421   :  { %2987 = vmatpush1.bf16.msra.mxu0 %v9856_v34 }
 0x422   :  { %2988 = vmatprep.subr.bf16.mxu0 %v9860_v36 }
 0x423   :  { %8298 = vmatpush3.bf16.msra.mxu1 %v8961_v13  ;;  %v10048_v13 = vld [vmem:[#allocation6 + $0x48] ss:$12 sps:$4 sm:$0xff]  }
 0x424   :  { %8299 = vmatprep.subr.bf16.mxu1 %v11049_v9 }
 0x425   :  { %2989 = vmatpush1.bf16.msra.mxu0 %v9863_v37 }
 0x426   :  { %2990 = vmatprep.subr.bf16.mxu0 %v9867_v41 }
 0x427   :  { %8300 = vmatpush3.bf16.msra.mxu1 %v8962_v15  ;;  %v8987_v15 = vld [vmem:[#allocation6 + $0x50] ss:$12 sps:$4 sm:$0xff]  }
 0x428   :  { %8301 = vmatprep.subr.bf16.mxu1 %v11049_v9 }
 0x429   :  { %2991 = vmatpush1.bf16.msra.mxu0 %v9870_v46 }
 0x42a   :  { %2992 = vmatprep.subr.bf16.mxu0 %v9876_v54 }
 0x42b   :  { %8302 = vmatpush3.bf16.msra.mxu1 %v8963_v16  ;;  %v10052_v16 = vld [vmem:[#allocation6 + $0x34] ss:$12 sps:$4 sm:$0xff]  }
 0x42c   :  { %8303 = vmatprep.subr.bf16.mxu1 %v11049_v9 }
 0x42d   :  { %2993 = vmatpush1.bf16.msra.mxu0 %v9874_v53 }
 0x42e   :  { %2994 = vmatprep.subr.bf16.mxu0 %v9879_v7 }
 0x42f   :  { %8304 = vmatpush3.bf16.msra.mxu1 %v8964_v18  ;;  %v10055_v18 = vld [vmem:[#allocation6 + $0x30] ss:$12 sps:$4 sm:$0xff]  }
 0x430   :  { %8305 = vmatprep.subr.bf16.mxu1 %v11049_v9 }
 0x431   :  { %2995 = vmatpush1.bf16.msra.mxu0 %v11051_v10  ;;  %v10034_v10 = vld [vmem:[#allocation6 + $0x78] ss:$12 sps:$4 sm:$0xff]  }
 0x432   :  { %2996 = vmatprep.subr.bf16.mxu0 %v11052_v48  ;;  %v8979_v48 = vld [vmem:[#allocation6 + $0x80] ss:$12 sps:$4 sm:$0xff]  }
 0x433   :  { %8306 = vmatpush3.bf16.msra.mxu1 %v8965_v21  ;;  %v8991_v21 = vld [vmem:[#allocation6 + $0x38] ss:$12 sps:$4 sm:$0xff]  }
 0x434   :  { %8307 = vmatprep.subr.bf16.mxu1 %v11049_v9 }
 0x435   :  { %2997 = vmatpush1.bf16.msra.mxu0 %v11053_v59  ;;  %v10038_v59 = vld [vmem:[#allocation6 + $0x64] ss:$12 sps:$4 sm:$0xff]  }
 0x436   :  { %2998 = vmatprep.subr.bf16.mxu0 %v11054_v3  ;;  %v10041_v3 = vld [vmem:[#allocation6 + $0x60] ss:$12 sps:$4 sm:$0xff]  }
 0x437   :  { %8308 = vmatpush3.bf16.msra.mxu1 %v8966_v22  ;;  %v10059_v22 = vld [vmem:[#allocation6 + $0x1c] ss:$12 sps:$4 sm:$0xff]  }
 0x438   :  { %8309 = vmatprep.subr.bf16.mxu1 %v11049_v9 }
 0x439   :  { %2999 = vmatpush1.bf16.msra.mxu0 %v11055_v6  ;;  %v8983_v6 = vld [vmem:[#allocation6 + $0x68] ss:$12 sps:$4 sm:$0xff]  }
 0x43a   :  { %3231 = vmatprep.subr.bf16.mxu0 %v9997_v19 }
 0x43b   :  { %8310 = vmatpush3.bf16.msra.mxu1 %v8967_v24  ;;  %v10062_v24 = vld [vmem:[#allocation6 + $0x18] ss:$12 sps:$4 sm:$0xff]  }
 0x43c   :  { %8315 = vmatprep.subr.bf16.mxu1 %v11049_v9 }
 0x49c   :  { %v10004_v25 = vpop.f32.mrf.mxu0  ;;  %v10006_v27 = vpop.f32.mrf.mxu1 }
 0x49d   :  { %11056 = vst [vmem:[#allocation16_spill] sm:$0xff] %v10004_v25  ;;  %11057 = vst [vmem:[#allocation17_spill] sm:$0xff] %v10006_v27 }
 0x49e   :  { %v10008_v28 = vpop.f32.mrf.mxu0  ;;  %v8253_v30 = vpop.f32.mrf.mxu1 }
 0x49f   :  { %11058 = vst [vmem:[#allocation18_spill] sm:$0xff] %v10008_v28  ;;  %v8995_v30 = vld [vmem:[#allocation6 + $0x20] ss:$12 sps:$4 sm:$0xff]  }
 0x4a0   :  { %v2271_v31 = vpop.f32.mrf.mxu0  ;;  %v2311_v33 = vpop.f32.mrf.mxu1 }
 0x4a1   :  { %v10066_v31 = vld [vmem:[#allocation6 + $0x4] ss:$12 sps:$4 sm:$0xff]   ;;  %v10069_v33 = vld [vmem:[#allocation6] ss:$12 sps:$4 sm:$0xff]  }
 0x4a2   :  { %v2272_v34 = vpop.f32.mrf.mxu0  ;;  %v8254_v36 = vpop.f32.mrf.mxu1 }
 0x4a3   :  { %v8999_v34 = vld [vmem:[#allocation6 + $0x8] ss:$12 sps:$4 sm:$0xff]   ;;  %v10073_v36 = vld [vmem:[#allocation8 + $0xac] ss:$12 sps:$4 sm:$0xff]  }
 0x4bc   :  { %v2514_v37 = vpop.f32.mrf.mxu0  ;;  %v2555_v41 = vpop.f32.mrf.mxu1 }
 0x4be   :  { %v2516_v46 = vpop.f32.mrf.mxu0  ;;  %v8273_v53 = vpop.f32.mrf.mxu1 }
 0x4bf   :  { %v10080_v53 = vld [vmem:[#allocation8 + $0x94] ss:$12 sps:$4 sm:$0xff]  }
 0x4c0   :  { %v2518_v54 = vpop.f32.mrf.mxu0  ;;  %v2558_v7 = vpop.f32.mrf.mxu1 }
 0x4c1   :  { %v10083_v54 = vld [vmem:[#allocation8 + $0x90] ss:$12 sps:$4 sm:$0xff]   ;;  %v9007_v7 = vld [vmem:[#allocation8 + $0x98] ss:$12 sps:$4 sm:$0xff]  }
 0x4c2   :  { %v2519_v40 = vpop.f32.mrf.mxu0  ;;  %v8274_v47 = vpop.f32.mrf.mxu1 }
 0x4c3   :  { %v10087_v40 = vld [vmem:[#allocation8 + $0x7c] ss:$12 sps:$4 sm:$0xff]   ;;  %v10093_v47 = vld [vmem:[#allocation8 + $0x78] ss:$12 sps:$4 sm:$0xff]  }
 0x4dc   :  { %v2755_v60 = vpop.f32.mrf.mxu0  ;;  %v2796_v56 = vpop.f32.mrf.mxu1 }
 0x4dd   :  { %v2802_v5 = vadd.f32 %v2755_v60, %v2514_v37  ;;  %v3070_v37 = vld [vmem:[#allocation3 + $0x10] sm:$0xf]  ;;  %v9011_v60 = vld [vmem:[#allocation8 + $0x80] ss:$12 sps:$4 sm:$0xff]  }
 0x4de   :  { %v2757_v2 = vpop.f32.mrf.mxu0  ;;  %v8293_v23 = vpop.f32.mrf.mxu1 }
 0x4df   :  { %v7425_v20 = vmul.f32 -1.442695, %v2802_v5  ;;  %v2809_v32 = vadd.f32 %v2757_v2, %v2516_v46  ;;  %v9003_v46 = vld [vmem:[#allocation8 + $0xb0] ss:$12 sps:$4 sm:$0xff]   ;;  %v10100_v5 = vld [vmem:[#allocation8 + $0x60] ss:$12 sps:$4 sm:$0xff]  }
 0x4e0   :  { %v2759_v58 = vpop.f32.mrf.mxu0  ;;  %v2799_v0 = vpop.f32.mrf.mxu1  ;;  %v9015_v2 = vld [vmem:[#allocation8 + $0x68] ss:$12 sps:$4 sm:$0xff]   ;;  %v10104_v23 = vld [vmem:[#allocation8 + $0x4c] ss:$12 sps:$4 sm:$0xff]  }
 0x4e1   :  { %9270 = vpow2.f32 %v7425_v20  ;;  %v7426_v14 = vmul.f32 -1.442695, %v2809_v32  ;;  %v10107_v20 = vld [vmem:[#allocation8 + $0x48] ss:$12 sps:$4 sm:$0xff]   ;;  %v9019_v58 = vld [vmem:[#allocation8 + $0x50] ss:$12 sps:$4 sm:$0xff]  }
 0x4e2   :  { %v2760_v29 = vpop.f32.mrf.mxu0  ;;  %v8294_v26 = vpop.f32.mrf.mxu1  ;;  %v10111_v0 = vld [vmem:[#allocation8 + $0x34] ss:$12 sps:$4 sm:$0xff]   ;;  %v10118_v32 = vld [vmem:[#allocation8 + $0x1c] ss:$12 sps:$4 sm:$0xff]  }
 0x4e3   :  { %9272 = vpow2.f32 %v7426_v14  ;;  %v10114_v29 = vld [vmem:[#allocation8 + $0x30] ss:$12 sps:$4 sm:$0xff]   ;;  %v9023_v26 = vld [vmem:[#allocation8 + $0x38] ss:$12 sps:$4 sm:$0xff]  }
 0x4e4   :  { %v10121_v14 = vld [vmem:[#allocation8 + $0x18] ss:$12 sps:$4 sm:$0xff]  }
 0x4ee   :  { %v9271_v62 = vpop.eup %9270 }
 0x4ef   :  { %v2806_v4 = vadd.f32 1.0, %v9271_v62  ;;  %v9027_v62 = vld [vmem:[#allocation8 + $0x20] ss:$12 sps:$4 sm:$0xff]  }
 0x4f0   :  { %v9273_v11 = vpop.eup %9272 }
 0x4f1   :  { %9274 = vrcp.f32 %v2806_v4  ;;  %v2813_v1 = vadd.f32 1.0, %v9273_v11  ;;  %v10125_v4 = vld [vmem:[#allocation8 + $0x4] ss:$12 sps:$4 sm:$0xff]   ;;  %v10128_v11 = vld [vmem:[#allocation8] ss:$12 sps:$4 sm:$0xff]  }
 0x4f3   :  { %9276 = vrcp.f32 %v2813_v1  ;;  %v9031_v1 = vld [vmem:[#allocation8 + $0x8] ss:$12 sps:$4 sm:$0xff]  }
 0x4fe   :  { %v9275_v17 = vpop.eup %9274 }
 0x4ff   :  { %v2816_v39 = vmul.f32 %v9275_v17, %v2796_v56  ;;  %v10097_v56 = vld [vmem:[#allocation8 + $0x64] ss:$12 sps:$4 sm:$0xff]   ;;  %v10139_v17 = vld [vmem:[#allocation6 + $0x16c] ss:$12 sps:$4 sm:$0xff]  }
 0x500   :  { %v9277_v43 = vpop.eup %9276 }
 0x501   :  { %v2817_v42 = vadd.f32 %v2816_v39, %v2555_v41  ;;  %v2819_v44 = vsub.f32 1.0, %v9277_v43  ;;  %v2821_v50 = vmul.f32 %v9277_v43, %v9911_v35  ;;  %v8975_v35 = vld [vmem:[#allocation6 + $0x98] ss:$12 sps:$4 sm:$0xff]   ;;  %v10076_v41 = vld [vmem:[#allocation8 + $0xa8] ss:$12 sps:$4 sm:$0xff]  }
 0x502   :  { %v10141_v39 = vld [vmem:[#allocation6 + $0x168] ss:$12 sps:$4 sm:$0xff]  }
 0x503   :  { %9278 = vtanh.f32 %v2817_v42  ;;  %v9035_v42 = vld [vmem:[#allocation6 + $0x170] ss:$12 sps:$4 sm:$0xff]   ;;  %v10145_v43 = vld [vmem:[#allocation6 + $0x154] ss:$12 sps:$4 sm:$0xff]  }
 0x510   :  { %v9279_v45 = vpop.eup %9278 }
 0x511   :  { %v2820_v49 = vmul.f32 %v9279_v45, %v2819_v44  ;;  %v10148_v44 = vld [vmem:[#allocation6 + $0x150] ss:$12 sps:$4 sm:$0xff]   ;;  %v9039_v45 = vld [vmem:[#allocation6 + $0x158] ss:$12 sps:$4 sm:$0xff]  }
 0x513   :  { %v10011_v51 = vadd.f32 %v2821_v50, %v2820_v49  ;;  %v10152_v49 = vld [vmem:[#allocation6 + $0x13c] ss:$12 sps:$4 sm:$0xff]   ;;  %v10155_v50 = vld [vmem:[#allocation6 + $0x138] ss:$12 sps:$4 sm:$0xff]  }
 0x515   :  { %v10017_v57 = vpack.c.bf16 %v10011_v51, %v10011_v51 }
 0x517   :  { %3017 = vmatmul.mubr.bf16.vlgmr.msra.gmra.mxu0 %v10017_v57  ;;  %8312 = vmatmul.mubr.bf16.vlgmr.msra.gmra.mxu1 %v10017_v57 }
 0x518   :  { %3232 = vmatpush1.bf16.msra.mxu0 %v10013_v52  ;;  %8316 = vmatpush3.bf16.msra.mxu1 %v8971_v55  ;;  %v9043_v55 = vld [vmem:[#allocation6 + $0x140] ss:$12 sps:$4 sm:$0xff]  }
 0x519   :  { %3233 = vmatprep.subr.bf16.mxu0 %v10019_v61  ;;  %8317 = vmatprep.subr.bf16.mxu1 %v11049_v9 }
 0x51a   :  { %3263 = vmatprep.mubr.bf16.mxu0 %v11050_v38  ;;  %8331 = vmatprep.mubr.msk.bf16.mxu1 %vm9528_vm0, %v11049_v9 }
 0x51c   :  { %3234 = vmatpush1.bf16.msra.mxu0 %v10024_v63  ;;  %8318 = vmatpush3.bf16.msra.mxu1 %v8975_v35  ;;  %v10162_v35 = vld [vmem:[#allocation6 + $0x120] ss:$12 sps:$4 sm:$0xff]  }
 0x51d   :  { %3235 = vmatprep.subr.bf16.mxu0 %v10028_v8  ;;  %8319 = vmatprep.subr.bf16.mxu1 %v11049_v9 }
 0x520   :  { %3236 = vmatpush1.bf16.msra.mxu0 %v10034_v10  ;;  %8320 = vmatpush3.bf16.msra.mxu1 %v8979_v48  ;;  %v9047_v48 = vld [vmem:[#allocation6 + $0x128] ss:$12 sps:$4 sm:$0xff]  }
 0x521   :  { %3237 = vmatprep.subr.bf16.mxu0 %v10038_v59  ;;  %8321 = vmatprep.subr.bf16.mxu1 %v11049_v9 }
 0x524   :  { %3238 = vmatpush1.bf16.msra.mxu0 %v10041_v3  ;;  %8322 = vmatpush3.bf16.msra.mxu1 %v8983_v6  ;;  %v10166_v6 = vld [vmem:[#allocation6 + $0x108] ss:$12 sps:$4 sm:$0xff]  }
 0x525   :  { %3239 = vmatprep.subr.bf16.mxu0 %v10045_v12  ;;  %8323 = vmatprep.subr.bf16.mxu1 %v11049_v9  ;;  %11059 = vst [vmem:[#allocation19_spill] sm:$0xff] %v10166_v6 }
 0x528   :  { %3240 = vmatpush1.bf16.msra.mxu0 %v10048_v13  ;;  %8324 = vmatpush3.bf16.msra.mxu1 %v8987_v15  ;;  %v10168_v15 = vld [vmem:[#allocation6 + $0x10c] ss:$12 sps:$4 sm:$0xff]  }
 0x529   :  { %3241 = vmatprep.subr.bf16.mxu0 %v10052_v16  ;;  %8325 = vmatprep.subr.bf16.mxu1 %v11049_v9 }
 0x52c   :  { %3242 = vmatpush1.bf16.msra.mxu0 %v10055_v18  ;;  %8326 = vmatpush3.bf16.msra.mxu1 %v8991_v21  ;;  %v9051_v21 = vld [vmem:[#allocation6 + $0x110] ss:$12 sps:$4 sm:$0xff]  }
 0x52d   :  { %3243 = vmatprep.subr.bf16.mxu0 %v10059_v22  ;;  %8327 = vmatprep.subr.bf16.mxu1 %v11049_v9 }
 0x530   :  { %3244 = vmatpush1.bf16.msra.mxu0 %v10062_v24  ;;  %8328 = vmatpush3.bf16.msra.mxu1 %v8995_v30  ;;  %v10171_v30 = vld [vmem:[#allocation6 + $0xf4] ss:$12 sps:$4 sm:$0xff]  }
 0x531   :  { %3245 = vmatprep.subr.bf16.mxu0 %v10066_v31  ;;  %8329 = vmatprep.subr.bf16.mxu1 %v11049_v9  ;;  %11060 = vst [vmem:[#allocation20_spill] sm:$0xff] %v10171_v30 }
 0x534   :  { %3246 = vmatpush1.bf16.msra.mxu0 %v10069_v33  ;;  %8330 = vmatpush3.bf16.msra.mxu1 %v8999_v34  ;;  %v10175_v34 = vld [vmem:[#allocation6 + $0xf0] ss:$12 sps:$4 sm:$0xff]  }
 0x535   :  { %3472 = vmatprep.subr.bf16.mxu0 %v10073_v36  ;;  %8335 = vmatprep.subr.bf16.mxu1 %v11049_v9  ;;  %11061 = vst [vmem:[#allocation24_spill] sm:$0xff] %v10175_v34 }
 0x537   :  { %3264 = vmatmul.mubr.bf16.vlgmr.msra.gmra.mxu0 %v3070_v37  ;;  %8332 = vmatmul.mubr.bf16.vlgmr.msra.gmra.mxu1 %v3070_v37  ;;  %v9055_v37 = vld [vmem:[#allocation6 + $0xf8] ss:$12 sps:$4 sm:$0xff]  }
 0x538   :  { %3473 = vmatpush1.bf16.msra.mxu0 %v10076_v41  ;;  %8336 = vmatpush3.bf16.msra.mxu1 %v9003_v46  ;;  %v10179_v46 = vld [vmem:[#allocation6 + $0xdc] ss:$12 sps:$4 sm:$0xff]  }
 0x539   :  { %3474 = vmatprep.subr.bf16.mxu0 %v10080_v53  ;;  %8337 = vmatprep.subr.bf16.mxu1 %v11049_v9  ;;  %11062 = vst [vmem:[#allocation25_spill] sm:$0xff] %v10179_v46 }
 0x53a   :  { %3504 = vmatprep.mubr.bf16.mxu0 %v11050_v38  ;;  %8351 = vmatprep.mubr.msk.bf16.mxu1 %vm9528_vm0, %v11049_v9 }
 0x53c   :  { %3475 = vmatpush1.bf16.msra.mxu0 %v10083_v54  ;;  %8338 = vmatpush3.bf16.msra.mxu1 %v9007_v7  ;;  %v10182_v7 = vld [vmem:[#allocation6 + $0xd8] ss:$12 sps:$4 sm:$0xff]  }
 0x53d   :  { %3476 = vmatprep.subr.bf16.mxu0 %v10087_v40  ;;  %8339 = vmatprep.subr.bf16.mxu1 %v11049_v9  ;;  %11063 = vst [vmem:[#allocation26_spill] sm:$0xff] %v10182_v7 }
 0x540   :  { %3477 = vmatpush1.bf16.msra.mxu0 %v10093_v47  ;;  %8340 = vmatpush3.bf16.msra.mxu1 %v9011_v60  ;;  %v9059_v60 = vld [vmem:[#allocation6 + $0xe0] ss:$12 sps:$4 sm:$0xff]  }
 0x541   :  { %3478 = vmatprep.subr.bf16.mxu0 %v10097_v56  ;;  %8341 = vmatprep.subr.bf16.mxu1 %v11049_v9 }
 0x544   :  { %3479 = vmatpush1.bf16.msra.mxu0 %v10100_v5  ;;  %8342 = vmatpush3.bf16.msra.mxu1 %v9015_v2  ;;  %v10186_v2 = vld [vmem:[#allocation6 + $0xc4] ss:$12 sps:$4 sm:$0xff]  }
 0x545   :  { %3480 = vmatprep.subr.bf16.mxu0 %v10104_v23  ;;  %8343 = vmatprep.subr.bf16.mxu1 %v11049_v9  ;;  %11064 = vst [vmem:[#allocation27_spill] sm:$0xff] %v10186_v2 }
 0x548   :  { %3481 = vmatpush1.bf16.msra.mxu0 %v10107_v20  ;;  %8344 = vmatpush3.bf16.msra.mxu1 %v9019_v58  ;;  %v10189_v58 = vld [vmem:[#allocation6 + $0xc0] ss:$12 sps:$4 sm:$0xff]  }
 0x549   :  { %3482 = vmatprep.subr.bf16.mxu0 %v10111_v0  ;;  %8345 = vmatprep.subr.bf16.mxu1 %v11049_v9  ;;  %11065 = vst [vmem:[#allocation28_spill] sm:$0xff] %v10189_v58 }
 0x54c   :  { %3483 = vmatpush1.bf16.msra.mxu0 %v10114_v29  ;;  %8346 = vmatpush3.bf16.msra.mxu1 %v9023_v26  ;;  %v9063_v26 = vld [vmem:[#allocation6 + $0xc8] ss:$12 sps:$4 sm:$0xff]  }
 0x54d   :  { %3484 = vmatprep.subr.bf16.mxu0 %v10118_v32  ;;  %8347 = vmatprep.subr.bf16.mxu1 %v11049_v9 }
 0x550   :  { %3485 = vmatpush1.bf16.msra.mxu0 %v10121_v14  ;;  %8348 = vmatpush3.bf16.msra.mxu1 %v9027_v62 }
 0x551   :  { %3486 = vmatprep.subr.bf16.mxu0 %v10125_v4  ;;  %8349 = vmatprep.subr.bf16.mxu1 %v11049_v9 }
 0x554   :  { %3487 = vmatpush1.bf16.msra.mxu0 %v10128_v11  ;;  %8350 = vmatpush3.bf16.msra.mxu1 %v9031_v1 }
 0x555   :  { %8355 = vmatprep.subr.bf16.mxu1 %v11049_v9  ;;  %3735 = vmatprep.subr.bf16.mxu0 %v10139_v17 }
 0x557   :  { %3505 = vmatmul.mubr.bf16.vlgmr.msra.gmra.mxu0 %v10017_v57  ;;  %8352 = vmatmul.mubr.bf16.vlgmr.msra.gmra.mxu1 %v10017_v57  ;;  %v10159_v57 = vld [vmem:[#allocation6 + $0x124] ss:$12 sps:$4 sm:$0xff]  }
 0x558   :  { %3767 = vmatprep.mubr.bf16.mxu0 %v11050_v38  ;;  %8371 = vmatprep.mubr.msk.bf16.mxu1 %vm9528_vm0, %v11049_v9 }
 0x559   :  { %3736 = vmatpush1.bf16.msra.mxu0 %v10141_v39  ;;  %8356 = vmatpush3.bf16.msra.mxu1 %v9035_v42 }
 0x55a   :  { %8357 = vmatprep.subr.bf16.mxu1 %v11049_v9  ;;  %3737 = vmatprep.subr.bf16.mxu0 %v10145_v43 }
 0x55d   :  { %3738 = vmatpush1.bf16.msra.mxu0 %v10148_v44  ;;  %8358 = vmatpush3.bf16.msra.mxu1 %v9039_v45 }
 0x55e   :  { %8359 = vmatprep.subr.bf16.mxu1 %v11049_v9  ;;  %3739 = vmatprep.subr.bf16.mxu0 %v10152_v49 }
 0x561   :  { %3740 = vmatpush1.bf16.msra.mxu0 %v10155_v50  ;;  %8360 = vmatpush3.bf16.msra.mxu1 %v9043_v55 }
 0x562   :  { %8361 = vmatprep.subr.bf16.mxu1 %v11049_v9  ;;  %3741 = vmatprep.subr.bf16.mxu0 %v10159_v57 }
 0x565   :  { %3742 = vmatpush1.bf16.msra.mxu0 %v10162_v35  ;;  %8362 = vmatpush3.bf16.msra.mxu1 %v9047_v48 }
 0x566   :  { %8363 = vmatprep.subr.bf16.mxu1 %v11049_v9  ;;  %3743 = vmatprep.subr.bf16.mxu0 %v10168_v15 }
 0x569   :  { %3744 = vmatpush1.bf16.msra.mxu0 %v10166_v6  ;;  %8364 = vmatpush3.bf16.msra.mxu1 %v9051_v21 }
 0x56a   :  { %3745 = vmatprep.subr.bf16.mxu0 %v10171_v30  ;;  %8365 = vmatprep.subr.bf16.mxu1 %v11049_v9 }
 0x56d   :  { %3746 = vmatpush1.bf16.msra.mxu0 %v10175_v34  ;;  %8366 = vmatpush3.bf16.msra.mxu1 %v9055_v37 }
 0x56e   :  { %3747 = vmatprep.subr.bf16.mxu0 %v10179_v46  ;;  %8367 = vmatprep.subr.bf16.mxu1 %v11049_v9 }
 0x571   :  { %3748 = vmatpush1.bf16.msra.mxu0 %v10182_v7  ;;  %8368 = vmatpush3.bf16.msra.mxu1 %v9059_v60 }
 0x572   :  { %3749 = vmatprep.subr.bf16.mxu0 %v10186_v2  ;;  %8369 = vmatprep.subr.bf16.mxu1 %v11049_v9 }
 0x575   :  { %3750 = vmatpush1.bf16.msra.mxu0 %v10189_v58  ;;  %8370 = vmatpush3.bf16.msra.mxu1 %v9063_v26 }
 0x576   :  { %3982 = vmatprep.subr.bf16.mxu0 %v9997_v19  ;;  %8375 = vmatprep.subr.bf16.mxu1 %v11049_v9 }
 0x5d7   :  { %v10196_v62 = vpop.f32.mrf.mxu0  ;;  %v10198_v1 = vpop.f32.mrf.mxu1 }
 0x5d8   :  { %11066 = vst [vmem:[#allocation29_spill] sm:$0xff] %v10196_v62  ;;  %11067 = vst [vmem:[#allocation30_spill] sm:$0xff] %v10198_v1 }
 0x5d9   :  { %v10200_v42 = vpop.f32.mrf.mxu0  ;;  %v8313_v45 = vpop.f32.mrf.mxu1 }
 0x5da   :  { %11068 = vst [vmem:[#allocation31_spill] sm:$0xff] %v10200_v42 }
 0x5db   :  { %v3022_v55 = vpop.f32.mrf.mxu0  ;;  %v3062_v48 = vpop.f32.mrf.mxu1 }
 0x5dd   :  { %v3023_v21 = vpop.f32.mrf.mxu0  ;;  %v8314_v37 = vpop.f32.mrf.mxu1 }
 0x5f7   :  { %v3265_v60 = vpop.f32.mrf.mxu0  ;;  %v3306_v27 = vpop.f32.mrf.mxu1 }
 0x5f9   :  { %v3267_v28 = vpop.f32.mrf.mxu0  ;;  %v8333_v25 = vpop.f32.mrf.mxu1 }
 0x5fb   :  { %v3269_v26 = vpop.f32.mrf.mxu0  ;;  %v3309_v58 = vpop.f32.mrf.mxu1 }
 0x5fd   :  { %v3270_v19 = vpop.f32.mrf.mxu0  ;;  %v8334_v2 = vpop.f32.mrf.mxu1 }
 0x617   :  { %v3506_v7 = vpop.f32.mrf.mxu0  ;;  %v3547_v46 = vpop.f32.mrf.mxu1 }
 0x618   :  { %v3553_v62 = vadd.f32 %v3506_v7, %v3265_v60 }
 0x619   :  { %v3508_v34 = vpop.f32.mrf.mxu0  ;;  %v8353_v1 = vpop.f32.mrf.mxu1 }
 0x61a   :  { %v7499_v30 = vmul.f32 -1.442695, %v3553_v62  ;;  %v3560_v21 = vadd.f32 %v3508_v34, %v3267_v28  ;;  %v9064_v28 = vld [vmem:[#allocation6 + $0xb0] ss:$12 sps:$4 sm:$0xff]  }
 0x61b   :  { %v3510_v42 = vpop.f32.mrf.mxu0  ;;  %v3550_v45 = vpop.f32.mrf.mxu1 }
 0x61c   :  { %9280 = vpow2.f32 %v7499_v30  ;;  %v7500_v37 = vmul.f32 -1.442695, %v3560_v21 }
 0x61d   :  { %v3511_v55 = vpop.f32.mrf.mxu0  ;;  %v8354_v48 = vpop.f32.mrf.mxu1 }
 0x61e   :  { %9282 = vpow2.f32 %v7500_v37 }
 0x629   :  { %v9281_v6 = vpop.eup %9280 }
 0x62a   :  { %v3557_v25 = vadd.f32 1.0, %v9281_v6 }
 0x62b   :  { %v9283_v58 = vpop.eup %9282 }
 0x62c   :  { %9284 = vrcp.f32 %v3557_v25  ;;  %v3564_v26 = vadd.f32 1.0, %v9283_v58 }
 0x62e   :  { %9286 = vrcp.f32 %v3564_v26 }
 0x639   :  { %v9285_v2 = vpop.eup %9284 }
 0x63a   :  { %v3567_v19 = vmul.f32 %v9285_v2, %v3547_v46 }
 0x63b   :  { %v9287_v1 = vpop.eup %9286 }
 0x63c   :  { %v3568_v7 = vadd.f32 %v3567_v19, %v3306_v27  ;;  %v3570_v62 = vsub.f32 1.0, %v9287_v1  ;;  %v3572_v30 = vmul.f32 %v9287_v1, %v10011_v51  ;;  %v9065_v27 = vld [vmem:[#allocation6 + $0x98] ss:$12 sps:$4 sm:$0xff]   ;;  %v9066_v51 = vld [vmem:[#allocation6 + $0x80] ss:$12 sps:$4 sm:$0xff]  }
 0x63e   :  { %9288 = vtanh.f32 %v3568_v7 }
 0x64b   :  { %v9289_v42 = vpop.eup %9288 }
 0x64c   :  { %v3571_v60 = vmul.f32 %v9289_v42, %v3570_v62 }
 0x64e   :  { %v10203_v45 = vadd.f32 %v3572_v30, %v3571_v60 }
 0x650   :  { %v10207_v6 = vpack.c.bf16 %v10203_v45, %v10203_v45 }
 0x652   :  { %3768 = vmatmul.mubr.bf16.vlgmr.msra.gmra.mxu0 %v10207_v6  ;;  %8372 = vmatmul.mubr.bf16.vlgmr.msra.gmra.mxu1 %v10207_v6 }
 0x653   :  { %3983 = vmatpush1.bf16.msra.mxu0 %v10013_v52  ;;  %8376 = vmatpush3.bf16.msra.mxu1 %v9064_v28  ;;  %v9067_v52 = vld [vmem:[#allocation6 + $0x68] ss:$12 sps:$4 sm:$0xff]  }
 0x654   :  { %3984 = vmatprep.subr.bf16.mxu0 %v10019_v61  ;;  %8377 = vmatprep.subr.bf16.mxu1 %v11049_v9  ;;  %v9068_v61 = vld [vmem:[#allocation6 + $0x50] ss:$12 sps:$4 sm:$0xff]  }
 0x655   :  { %4014 = vmatprep.mubr.bf16.mxu0 %v11050_v38  ;;  %8391 = vmatprep.mubr.msk.bf16.mxu1 %vm9528_vm0, %v11049_v9 }
 0x657   :  { %3985 = vmatpush1.bf16.msra.mxu0 %v10024_v63  ;;  %8378 = vmatpush3.bf16.msra.mxu1 %v9065_v27  ;;  %v9069_v63 = vld [vmem:[#allocation6 + $0x38] ss:$12 sps:$4 sm:$0xff]  }
 0x658   :  { %3986 = vmatprep.subr.bf16.mxu0 %v10028_v8  ;;  %8379 = vmatprep.subr.bf16.mxu1 %v11049_v9  ;;  %v9070_v8 = vld [vmem:[#allocation6 + $0x20] ss:$12 sps:$4 sm:$0xff]  }
 0x65b   :  { %3987 = vmatpush1.bf16.msra.mxu0 %v10034_v10  ;;  %8380 = vmatpush3.bf16.msra.mxu1 %v9066_v51  ;;  %v9071_v10 = vld [vmem:[#allocation6 + $0x8] ss:$12 sps:$4 sm:$0xff]  }
 0x65c   :  { %3988 = vmatprep.subr.bf16.mxu0 %v10038_v59  ;;  %8381 = vmatprep.subr.bf16.mxu1 %v11049_v9  ;;  %v3821_v59 = vld [vmem:[#allocation3 + $0x14] sm:$0xf] }
 0x65f   :  { %3989 = vmatpush1.bf16.msra.mxu0 %v10041_v3  ;;  %8382 = vmatpush3.bf16.msra.mxu1 %v9067_v52  ;;  %v9072_v3 = vld [vmem:[#allocation8 + $0xb0] ss:$12 sps:$4 sm:$0xff]  }
 0x660   :  { %3990 = vmatprep.subr.bf16.mxu0 %v10045_v12  ;;  %8383 = vmatprep.subr.bf16.mxu1 %v11049_v9  ;;  %v9073_v12 = vld [vmem:[#allocation8 + $0x98] ss:$12 sps:$4 sm:$0xff]  }
 0x663   :  { %3991 = vmatpush1.bf16.msra.mxu0 %v10048_v13  ;;  %8384 = vmatpush3.bf16.msra.mxu1 %v9068_v61  ;;  %v9074_v13 = vld [vmem:[#allocation8 + $0x80] ss:$12 sps:$4 sm:$0xff]  }
 0x664   :  { %3992 = vmatprep.subr.bf16.mxu0 %v10052_v16  ;;  %8385 = vmatprep.subr.bf16.mxu1 %v11049_v9  ;;  %v9075_v16 = vld [vmem:[#allocation8 + $0x68] ss:$12 sps:$4 sm:$0xff]  }
 0x667   :  { %3993 = vmatpush1.bf16.msra.mxu0 %v10055_v18  ;;  %8386 = vmatpush3.bf16.msra.mxu1 %v9069_v63  ;;  %v9076_v18 = vld [vmem:[#allocation8 + $0x50] ss:$12 sps:$4 sm:$0xff]  }
 0x668   :  { %3994 = vmatprep.subr.bf16.mxu0 %v10059_v22  ;;  %8387 = vmatprep.subr.bf16.mxu1 %v11049_v9  ;;  %v9077_v22 = vld [vmem:[#allocation8 + $0x38] ss:$12 sps:$4 sm:$0xff]  }
 0x66b   :  { %3995 = vmatpush1.bf16.msra.mxu0 %v10062_v24  ;;  %8388 = vmatpush3.bf16.msra.mxu1 %v9070_v8  ;;  %v9078_v24 = vld [vmem:[#allocation8 + $0x20] ss:$12 sps:$4 sm:$0xff]  }
 0x66c   :  { %3996 = vmatprep.subr.bf16.mxu0 %v10066_v31  ;;  %8389 = vmatprep.subr.bf16.mxu1 %v11049_v9  ;;  %v9079_v31 = vld [vmem:[#allocation8 + $0x8] ss:$12 sps:$4 sm:$0xff]  }
 0x66f   :  { %3997 = vmatpush1.bf16.msra.mxu0 %v10069_v33  ;;  %8390 = vmatpush3.bf16.msra.mxu1 %v9071_v10  ;;  %v11069_v33 = vld [vmem:[#allocation19_spill] sm:$0xff] }
 0x670   :  { %4223 = vmatprep.subr.bf16.mxu0 %v10073_v36  ;;  %8395 = vmatprep.subr.bf16.mxu1 %v11049_v9  ;;  %v11070_v36 = vld [vmem:[#allocation20_spill] sm:$0xff] }
 0x672   :  { %4015 = vmatmul.mubr.bf16.vlgmr.msra.gmra.mxu0 %v3821_v59  ;;  %8392 = vmatmul.mubr.bf16.vlgmr.msra.gmra.mxu1 %v3821_v59 }
 0x673   :  { %4224 = vmatpush1.bf16.msra.mxu0 %v10076_v41  ;;  %8396 = vmatpush3.bf16.msra.mxu1 %v9072_v3  ;;  %v11071_v41 = vld [vmem:[#allocation24_spill] sm:$0xff] }
 0x674   :  { %4225 = vmatprep.subr.bf16.mxu0 %v10080_v53  ;;  %8397 = vmatprep.subr.bf16.mxu1 %v11049_v9  ;;  %v11072_v53 = vld [vmem:[#allocation25_spill] sm:$0xff] }
 0x675   :  { %4255 = vmatprep.mubr.bf16.mxu0 %v11050_v38  ;;  %8411 = vmatprep.mubr.msk.bf16.mxu1 %vm9528_vm0, %v11049_v9 }
 0x677   :  { %4226 = vmatpush1.bf16.msra.mxu0 %v10083_v54  ;;  %8398 = vmatpush3.bf16.msra.mxu1 %v9073_v12  ;;  %v11073_v54 = vld [vmem:[#allocation26_spill] sm:$0xff] }
 0x678   :  { %4227 = vmatprep.subr.bf16.mxu0 %v10087_v40  ;;  %8399 = vmatprep.subr.bf16.mxu1 %v11049_v9  ;;  %v11074_v40 = vld [vmem:[#allocation27_spill] sm:$0xff] }
 0x67b   :  { %4228 = vmatpush1.bf16.msra.mxu0 %v10093_v47  ;;  %8400 = vmatpush3.bf16.msra.mxu1 %v9074_v13  ;;  %v11075_v47 = vld [vmem:[#allocation28_spill] sm:$0xff] }
 0x67c   :  { %4229 = vmatprep.subr.bf16.mxu0 %v10097_v56  ;;  %8401 = vmatprep.subr.bf16.mxu1 %v11049_v9  ;;  %v9080_v56 = vld [vmem:[#allocation6 + $0x170] ss:$12 sps:$4 sm:$0xff]  }
 0x67f   :  { %4230 = vmatpush1.bf16.msra.mxu0 %v10100_v5  ;;  %8402 = vmatpush3.bf16.msra.mxu1 %v9075_v16  ;;  %v9081_v5 = vld [vmem:[#allocation6 + $0x158] ss:$12 sps:$4 sm:$0xff]  }
 0x680   :  { %4231 = vmatprep.subr.bf16.mxu0 %v10104_v23  ;;  %8403 = vmatprep.subr.bf16.mxu1 %v11049_v9  ;;  %v9082_v23 = vld [vmem:[#allocation6 + $0x140] ss:$12 sps:$4 sm:$0xff]  }
 0x683   :  { %4232 = vmatpush1.bf16.msra.mxu0 %v10107_v20  ;;  %8404 = vmatpush3.bf16.msra.mxu1 %v9076_v18  ;;  %v9083_v20 = vld [vmem:[#allocation6 + $0x128] ss:$12 sps:$4 sm:$0xff]  }
 0x684   :  { %4233 = vmatprep.subr.bf16.mxu0 %v10111_v0  ;;  %8405 = vmatprep.subr.bf16.mxu1 %v11049_v9  ;;  %v9084_v0 = vld [vmem:[#allocation6 + $0x110] ss:$12 sps:$4 sm:$0xff]   ;;  %v10305_v18 = vld [vmem:[#allocation6 + $0xa8] ss:$12 sps:$4 sm:$0xff]  }
 0x687   :  { %4234 = vmatpush1.bf16.msra.mxu0 %v10114_v29  ;;  %8406 = vmatpush3.bf16.msra.mxu1 %v9077_v22  ;;  %v10289_v29 = vld [vmem:[#allocation6 + $0xac] ss:$12 sps:$4 sm:$0xff]   ;;  %v9091_v22 = vld [vmem:[#allocation6 + $0xb0] ss:$12 sps:$4 sm:$0xff]  }
 0x688   :  { %4235 = vmatprep.subr.bf16.mxu0 %v10118_v32  ;;  %8407 = vmatprep.subr.bf16.mxu1 %v11049_v9  ;;  %v9085_v32 = vld [vmem:[#allocation6 + $0xf8] ss:$12 sps:$4 sm:$0xff]  }
 0x68b   :  { %4236 = vmatpush1.bf16.msra.mxu0 %v10121_v14  ;;  %8408 = vmatpush3.bf16.msra.mxu1 %v9078_v24  ;;  %v9086_v14 = vld [vmem:[#allocation6 + $0xe0] ss:$12 sps:$4 sm:$0xff]  }
 0x68c   :  { %4237 = vmatprep.subr.bf16.mxu0 %v10125_v4  ;;  %8409 = vmatprep.subr.bf16.mxu1 %v11049_v9  ;;  %v9087_v4 = vld [vmem:[#allocation6 + $0xc8] ss:$12 sps:$4 sm:$0xff]  }
 0x68f   :  { %4238 = vmatpush1.bf16.msra.mxu0 %v10128_v11  ;;  %8410 = vmatpush3.bf16.msra.mxu1 %v9079_v31  ;;  %v10311_v31 = vld [vmem:[#allocation6 + $0x94] ss:$12 sps:$4 sm:$0xff]  }
 0x690   :  { %4486 = vmatprep.subr.bf16.mxu0 %v10139_v17  ;;  %8415 = vmatprep.subr.bf16.mxu1 %v11049_v9 }
 0x692   :  { %4256 = vmatmul.mubr.bf16.vlgmr.msra.gmra.mxu0 %v10207_v6  ;;  %8412 = vmatmul.mubr.bf16.vlgmr.msra.gmra.mxu1 %v10207_v6 }
 0x693   :  { %4487 = vmatpush1.bf16.msra.mxu0 %v10141_v39  ;;  %4518 = vmatprep.mubr.bf16.mxu0 %v11050_v38 }
 0x694   :  { %4488 = vmatprep.subr.bf16.mxu0 %v10145_v43  ;;  %8431 = vmatprep.mubr.msk.bf16.mxu1 %vm9528_vm0, %v11049_v9 }
 0x695   :  { %8416 = vmatpush3.bf16.msra.mxu1 %v9080_v56  ;;  %v10337_v56 = vld [vmem:[#allocation6 + $0x4c] ss:$12 sps:$4 sm:$0xff]  }
 0x696   :  { %8417 = vmatprep.subr.bf16.mxu1 %v11049_v9 }
 0x697   :  { %4489 = vmatpush1.bf16.msra.mxu0 %v10148_v44 }
 0x698   :  { %4490 = vmatprep.subr.bf16.mxu0 %v10152_v49 }
 0x699   :  { %8418 = vmatpush3.bf16.msra.mxu1 %v9081_v5  ;;  %v10340_v5 = vld [vmem:[#allocation6 + $0x48] ss:$12 sps:$4 sm:$0xff]  }
 0x69a   :  { %8419 = vmatprep.subr.bf16.mxu1 %v11049_v9 }
 0x69b   :  { %4491 = vmatpush1.bf16.msra.mxu0 %v10155_v50 }
 0x69c   :  { %4492 = vmatprep.subr.bf16.mxu0 %v10159_v57 }
 0x69d   :  { %8420 = vmatpush3.bf16.msra.mxu1 %v9082_v23  ;;  %v9107_v23 = vld [vmem:[#allocation6 + $0x50] ss:$12 sps:$4 sm:$0xff]  }
 0x69e   :  { %8421 = vmatprep.subr.bf16.mxu1 %v11049_v9 }
 0x69f   :  { %4493 = vmatpush1.bf16.msra.mxu0 %v10162_v35 }
 0x6a0   :  { %4494 = vmatprep.subr.bf16.mxu0 %v10168_v15 }
 0x6a1   :  { %8422 = vmatpush3.bf16.msra.mxu1 %v9083_v20  ;;  %v10344_v20 = vld [vmem:[#allocation6 + $0x34] ss:$12 sps:$4 sm:$0xff]  }
 0x6a2   :  { %8423 = vmatprep.subr.bf16.mxu1 %v11049_v9 }
 0x6a3   :  { %4495 = vmatpush1.bf16.msra.mxu0 %v11069_v33  ;;  %v10316_v33 = vld [vmem:[#allocation6 + $0x90] ss:$12 sps:$4 sm:$0xff]  }
 0x6a4   :  { %4496 = vmatprep.subr.bf16.mxu0 %v11070_v36  ;;  %v10320_v36 = vld [vmem:[#allocation6 + $0x7c] ss:$12 sps:$4 sm:$0xff]  }
 0x6a5   :  { %8424 = vmatpush3.bf16.msra.mxu1 %v9084_v0  ;;  %v10347_v0 = vld [vmem:[#allocation6 + $0x30] ss:$12 sps:$4 sm:$0xff]  }
 0x6a6   :  { %8425 = vmatprep.subr.bf16.mxu1 %v11049_v9 }
 0x6a7   :  { %4497 = vmatpush1.bf16.msra.mxu0 %v11071_v41  ;;  %v10326_v41 = vld [vmem:[#allocation6 + $0x78] ss:$12 sps:$4 sm:$0xff]  }
 0x6a8   :  { %4498 = vmatprep.subr.bf16.mxu0 %v11072_v53  ;;  %v9099_v53 = vld [vmem:[#allocation6 + $0x80] ss:$12 sps:$4 sm:$0xff]  }
 0x6a9   :  { %8426 = vmatpush3.bf16.msra.mxu1 %v9085_v32  ;;  %v9111_v32 = vld [vmem:[#allocation6 + $0x38] ss:$12 sps:$4 sm:$0xff]  }
 0x6aa   :  { %8427 = vmatprep.subr.bf16.mxu1 %v11049_v9 }
 0x6ab   :  { %4499 = vmatpush1.bf16.msra.mxu0 %v11073_v54  ;;  %v10330_v54 = vld [vmem:[#allocation6 + $0x64] ss:$12 sps:$4 sm:$0xff]  }
 0x6ac   :  { %4500 = vmatprep.subr.bf16.mxu0 %v11074_v40  ;;  %v10333_v40 = vld [vmem:[#allocation6 + $0x60] ss:$12 sps:$4 sm:$0xff]  }
 0x6ad   :  { %8428 = vmatpush3.bf16.msra.mxu1 %v9086_v14  ;;  %v10351_v14 = vld [vmem:[#allocation6 + $0x1c] ss:$12 sps:$4 sm:$0xff]  }
 0x6ae   :  { %8429 = vmatprep.subr.bf16.mxu1 %v11049_v9 }
 0x6af   :  { %4501 = vmatpush1.bf16.msra.mxu0 %v11075_v47  ;;  %v9103_v47 = vld [vmem:[#allocation6 + $0x68] ss:$12 sps:$4 sm:$0xff]  }
 0x6b0   :  { %4733 = vmatprep.subr.bf16.mxu0 %v10289_v29 }
 0x6b1   :  { %8430 = vmatpush3.bf16.msra.mxu1 %v9087_v4  ;;  %v10354_v4 = vld [vmem:[#allocation6 + $0x18] ss:$12 sps:$4 sm:$0xff]  }
 0x6b2   :  { %8435 = vmatprep.subr.bf16.mxu1 %v11049_v9 }
 0x712   :  { %v10296_v11 = vpop.f32.mrf.mxu0  ;;  %v10298_v17 = vpop.f32.mrf.mxu1 }
 0x713   :  { %11076 = vst [vmem:[#allocation19_spill] sm:$0xff] %v10296_v11  ;;  %11077 = vst [vmem:[#allocation20_spill] sm:$0xff] %v10298_v17 }
 0x714   :  { %v10300_v39 = vpop.f32.mrf.mxu0  ;;  %v8373_v43 = vpop.f32.mrf.mxu1 }
 0x715   :  { %11078 = vst [vmem:[#allocation24_spill] sm:$0xff] %v10300_v39  ;;  %v9115_v43 = vld [vmem:[#allocation6 + $0x20] ss:$12 sps:$4 sm:$0xff]  }
 0x716   :  { %v3773_v44 = vpop.f32.mrf.mxu0  ;;  %v3813_v49 = vpop.f32.mrf.mxu1 }
 0x717   :  { %v10358_v44 = vld [vmem:[#allocation6 + $0x4] ss:$12 sps:$4 sm:$0xff]   ;;  %v10361_v49 = vld [vmem:[#allocation6] ss:$12 sps:$4 sm:$0xff]  }
 0x718   :  { %v3774_v50 = vpop.f32.mrf.mxu0  ;;  %v8374_v57 = vpop.f32.mrf.mxu1 }
 0x719   :  { %v9119_v50 = vld [vmem:[#allocation6 + $0x8] ss:$12 sps:$4 sm:$0xff]   ;;  %v10365_v57 = vld [vmem:[#allocation8 + $0xac] ss:$12 sps:$4 sm:$0xff]  }
 0x732   :  { %v4016_v35 = vpop.f32.mrf.mxu0  ;;  %v4057_v15 = vpop.f32.mrf.mxu1 }
 0x734   :  { %v4018_v34 = vpop.f32.mrf.mxu0  ;;  %v8393_v46 = vpop.f32.mrf.mxu1 }
 0x735   :  { %v10372_v46 = vld [vmem:[#allocation8 + $0x94] ss:$12 sps:$4 sm:$0xff]  }
 0x736   :  { %v4020_v55 = vpop.f32.mrf.mxu0  ;;  %v4060_v48 = vpop.f32.mrf.mxu1 }
 0x737   :  { %v10375_v55 = vld [vmem:[#allocation8 + $0x90] ss:$12 sps:$4 sm:$0xff]   ;;  %v9127_v48 = vld [vmem:[#allocation8 + $0x98] ss:$12 sps:$4 sm:$0xff]  }
 0x738   :  { %v4021_v21 = vpop.f32.mrf.mxu0  ;;  %v8394_v37 = vpop.f32.mrf.mxu1 }
 0x739   :  { %v10379_v21 = vld [vmem:[#allocation8 + $0x7c] ss:$12 sps:$4 sm:$0xff]   ;;  %v10385_v37 = vld [vmem:[#allocation8 + $0x78] ss:$12 sps:$4 sm:$0xff]  }
 0x752   :  { %v4257_v25 = vpop.f32.mrf.mxu0  ;;  %v4298_v58 = vpop.f32.mrf.mxu1 }
 0x753   :  { %v4304_v26 = vadd.f32 %v4257_v25, %v4016_v35  ;;  %v4572_v35 = vld [vmem:[#allocation3 + $0x18] sm:$0xf]  ;;  %v9131_v25 = vld [vmem:[#allocation8 + $0x80] ss:$12 sps:$4 sm:$0xff]  }
 0x754   :  { %v4259_v2 = vpop.f32.mrf.mxu0  ;;  %v8413_v19 = vpop.f32.mrf.mxu1 }
 0x755   :  { %v7573_v7 = vmul.f32 -1.442695, %v4304_v26  ;;  %v4311_v30 = vadd.f32 %v4259_v2, %v4018_v34  ;;  %v9123_v34 = vld [vmem:[#allocation8 + $0xb0] ss:$12 sps:$4 sm:$0xff]   ;;  %v10392_v26 = vld [vmem:[#allocation8 + $0x60] ss:$12 sps:$4 sm:$0xff]  }
 0x756   :  { %v4261_v1 = vpop.f32.mrf.mxu0  ;;  %v4301_v62 = vpop.f32.mrf.mxu1  ;;  %v9135_v2 = vld [vmem:[#allocation8 + $0x68] ss:$12 sps:$4 sm:$0xff]   ;;  %v10396_v19 = vld [vmem:[#allocation8 + $0x4c] ss:$12 sps:$4 sm:$0xff]  }
 0x757   :  { %9290 = vpow2.f32 %v7573_v7  ;;  %v7574_v28 = vmul.f32 -1.442695, %v4311_v30  ;;  %v10399_v7 = vld [vmem:[#allocation8 + $0x48] ss:$12 sps:$4 sm:$0xff]   ;;  %v9139_v1 = vld [vmem:[#allocation8 + $0x50] ss:$12 sps:$4 sm:$0xff]  }
 0x758   :  { %v4262_v42 = vpop.f32.mrf.mxu0  ;;  %v8414_v60 = vpop.f32.mrf.mxu1  ;;  %v10403_v62 = vld [vmem:[#allocation8 + $0x34] ss:$12 sps:$4 sm:$0xff]   ;;  %v10410_v30 = vld [vmem:[#allocation8 + $0x1c] ss:$12 sps:$4 sm:$0xff]  }
 0x759   :  { %9292 = vpow2.f32 %v7574_v28  ;;  %v10406_v42 = vld [vmem:[#allocation8 + $0x30] ss:$12 sps:$4 sm:$0xff]   ;;  %v9143_v60 = vld [vmem:[#allocation8 + $0x38] ss:$12 sps:$4 sm:$0xff]  }
 0x75a   :  { %v10413_v28 = vld [vmem:[#allocation8 + $0x18] ss:$12 sps:$4 sm:$0xff]  }
 0x764   :  { %v9291_v6 = vpop.eup %9290 }
 0x765   :  { %v4308_v27 = vadd.f32 1.0, %v9291_v6  ;;  %v9147_v6 = vld [vmem:[#allocation8 + $0x20] ss:$12 sps:$4 sm:$0xff]  }
 0x766   :  { %v9293_v51 = vpop.eup %9292 }
 0x767   :  { %9294 = vrcp.f32 %v4308_v27  ;;  %v4315_v52 = vadd.f32 1.0, %v9293_v51  ;;  %v10417_v27 = vld [vmem:[#allocation8 + $0x4] ss:$12 sps:$4 sm:$0xff]   ;;  %v10420_v51 = vld [vmem:[#allocation8] ss:$12 sps:$4 sm:$0xff]  }
 0x769   :  { %9296 = vrcp.f32 %v4315_v52  ;;  %v9151_v52 = vld [vmem:[#allocation8 + $0x8] ss:$12 sps:$4 sm:$0xff]  }
 0x774   :  { %v9295_v61 = vpop.eup %9294 }
 0x775   :  { %v4318_v63 = vmul.f32 %v9295_v61, %v4298_v58  ;;  %v10389_v58 = vld [vmem:[#allocation8 + $0x64] ss:$12 sps:$4 sm:$0xff]   ;;  %v10431_v61 = vld [vmem:[#allocation6 + $0x16c] ss:$12 sps:$4 sm:$0xff]  }
 0x776   :  { %v9297_v10 = vpop.eup %9296 }
 0x777   :  { %v4319_v8 = vadd.f32 %v4318_v63, %v4057_v15  ;;  %v4321_v59 = vsub.f32 1.0, %v9297_v10  ;;  %v4323_v13 = vmul.f32 %v9297_v10, %v10203_v45  ;;  %v9095_v45 = vld [vmem:[#allocation6 + $0x98] ss:$12 sps:$4 sm:$0xff]   ;;  %v10368_v15 = vld [vmem:[#allocation8 + $0xa8] ss:$12 sps:$4 sm:$0xff]  }
 0x778   :  { %v10433_v63 = vld [vmem:[#allocation6 + $0x168] ss:$12 sps:$4 sm:$0xff]  }
 0x779   :  { %9298 = vtanh.f32 %v4319_v8  ;;  %v9155_v8 = vld [vmem:[#allocation6 + $0x170] ss:$12 sps:$4 sm:$0xff]   ;;  %v10437_v10 = vld [vmem:[#allocation6 + $0x154] ss:$12 sps:$4 sm:$0xff]  }
 0x786   :  { %v9299_v3 = vpop.eup %9298 }
 0x787   :  { %v4322_v12 = vmul.f32 %v9299_v3, %v4321_v59  ;;  %v10440_v59 = vld [vmem:[#allocation6 + $0x150] ss:$12 sps:$4 sm:$0xff]   ;;  %v9159_v3 = vld [vmem:[#allocation6 + $0x158] ss:$12 sps:$4 sm:$0xff]  }
 0x789   :  { %v10303_v16 = vadd.f32 %v4323_v13, %v4322_v12  ;;  %v10444_v12 = vld [vmem:[#allocation6 + $0x13c] ss:$12 sps:$4 sm:$0xff]   ;;  %v10447_v13 = vld [vmem:[#allocation6 + $0x138] ss:$12 sps:$4 sm:$0xff]  }
 0x78b   :  { %v10309_v24 = vpack.c.bf16 %v10303_v16, %v10303_v16 }
 0x78d   :  { %4519 = vmatmul.mubr.bf16.vlgmr.msra.gmra.mxu0 %v10309_v24  ;;  %8432 = vmatmul.mubr.bf16.vlgmr.msra.gmra.mxu1 %v10309_v24 }
 0x78e   :  { %4734 = vmatpush1.bf16.msra.mxu0 %v10305_v18  ;;  %8436 = vmatpush3.bf16.msra.mxu1 %v9091_v22  ;;  %v9163_v22 = vld [vmem:[#allocation6 + $0x140] ss:$12 sps:$4 sm:$0xff]  }
 0x78f   :  { %4735 = vmatprep.subr.bf16.mxu0 %v10311_v31  ;;  %8437 = vmatprep.subr.bf16.mxu1 %v11049_v9 }
 0x790   :  { %4765 = vmatprep.mubr.bf16.mxu0 %v11050_v38  ;;  %8451 = vmatprep.mubr.msk.bf16.mxu1 %vm9528_vm0, %v11049_v9 }
 0x792   :  { %4736 = vmatpush1.bf16.msra.mxu0 %v10316_v33  ;;  %8438 = vmatpush3.bf16.msra.mxu1 %v9095_v45  ;;  %v10454_v45 = vld [vmem:[#allocation6 + $0x120] ss:$12 sps:$4 sm:$0xff]  }
 0x793   :  { %4737 = vmatprep.subr.bf16.mxu0 %v10320_v36  ;;  %8439 = vmatprep.subr.bf16.mxu1 %v11049_v9 }
 0x796   :  { %4738 = vmatpush1.bf16.msra.mxu0 %v10326_v41  ;;  %8440 = vmatpush3.bf16.msra.mxu1 %v9099_v53  ;;  %v9167_v53 = vld [vmem:[#allocation6 + $0x128] ss:$12 sps:$4 sm:$0xff]  }
 0x797   :  { %4739 = vmatprep.subr.bf16.mxu0 %v10330_v54  ;;  %8441 = vmatprep.subr.bf16.mxu1 %v11049_v9 }
 0x79a   :  { %4740 = vmatpush1.bf16.msra.mxu0 %v10333_v40  ;;  %8442 = vmatpush3.bf16.msra.mxu1 %v9103_v47  ;;  %v10458_v47 = vld [vmem:[#allocation6 + $0x108] ss:$12 sps:$4 sm:$0xff]  }
 0x79b   :  { %4741 = vmatprep.subr.bf16.mxu0 %v10337_v56  ;;  %8443 = vmatprep.subr.bf16.mxu1 %v11049_v9  ;;  %11079 = vst [vmem:[#allocation25_spill] sm:$0xff] %v10458_v47 }
 0x79e   :  { %4742 = vmatpush1.bf16.msra.mxu0 %v10340_v5  ;;  %8444 = vmatpush3.bf16.msra.mxu1 %v9107_v23  ;;  %v10460_v23 = vld [vmem:[#allocation6 + $0x10c] ss:$12 sps:$4 sm:$0xff]  }
 0x79f   :  { %4743 = vmatprep.subr.bf16.mxu0 %v10344_v20  ;;  %8445 = vmatprep.subr.bf16.mxu1 %v11049_v9 }
 0x7a2   :  { %4744 = vmatpush1.bf16.msra.mxu0 %v10347_v0  ;;  %8446 = vmatpush3.bf16.msra.mxu1 %v9111_v32  ;;  %v9171_v32 = vld [vmem:[#allocation6 + $0x110] ss:$12 sps:$4 sm:$0xff]  }
 0x7a3   :  { %4745 = vmatprep.subr.bf16.mxu0 %v10351_v14  ;;  %8447 = vmatprep.subr.bf16.mxu1 %v11049_v9 }
 0x7a6   :  { %4746 = vmatpush1.bf16.msra.mxu0 %v10354_v4  ;;  %8448 = vmatpush3.bf16.msra.mxu1 %v9115_v43  ;;  %v10463_v43 = vld [vmem:[#allocation6 + $0xf4] ss:$12 sps:$4 sm:$0xff]  }
 0x7a7   :  { %4747 = vmatprep.subr.bf16.mxu0 %v10358_v44  ;;  %8449 = vmatprep.subr.bf16.mxu1 %v11049_v9  ;;  %11080 = vst [vmem:[#allocation26_spill] sm:$0xff] %v10463_v43 }
 0x7aa   :  { %4748 = vmatpush1.bf16.msra.mxu0 %v10361_v49  ;;  %8450 = vmatpush3.bf16.msra.mxu1 %v9119_v50  ;;  %v10467_v50 = vld [vmem:[#allocation6 + $0xf0] ss:$12 sps:$4 sm:$0xff]  }
 0x7ab   :  { %4974 = vmatprep.subr.bf16.mxu0 %v10365_v57  ;;  %8455 = vmatprep.subr.bf16.mxu1 %v11049_v9  ;;  %11081 = vst [vmem:[#allocation27_spill] sm:$0xff] %v10467_v50 }
 0x7ad   :  { %4766 = vmatmul.mubr.bf16.vlgmr.msra.gmra.mxu0 %v4572_v35  ;;  %8452 = vmatmul.mubr.bf16.vlgmr.msra.gmra.mxu1 %v4572_v35  ;;  %v9175_v35 = vld [vmem:[#allocation6 + $0xf8] ss:$12 sps:$4 sm:$0xff]  }
 0x7ae   :  { %4975 = vmatpush1.bf16.msra.mxu0 %v10368_v15  ;;  %8456 = vmatpush3.bf16.msra.mxu1 %v9123_v34  ;;  %v10471_v34 = vld [vmem:[#allocation6 + $0xdc] ss:$12 sps:$4 sm:$0xff]  }
 0x7af   :  { %4976 = vmatprep.subr.bf16.mxu0 %v10372_v46  ;;  %8457 = vmatprep.subr.bf16.mxu1 %v11049_v9  ;;  %11082 = vst [vmem:[#allocation28_spill] sm:$0xff] %v10471_v34 }
 0x7b0   :  { %5006 = vmatprep.mubr.bf16.mxu0 %v11050_v38  ;;  %8471 = vmatprep.mubr.msk.bf16.mxu1 %vm9528_vm0, %v11049_v9 }
 0x7b2   :  { %4977 = vmatpush1.bf16.msra.mxu0 %v10375_v55  ;;  %8458 = vmatpush3.bf16.msra.mxu1 %v9127_v48  ;;  %v10474_v48 = vld [vmem:[#allocation6 + $0xd8] ss:$12 sps:$4 sm:$0xff]  }
 0x7b3   :  { %4978 = vmatprep.subr.bf16.mxu0 %v10379_v21  ;;  %8459 = vmatprep.subr.bf16.mxu1 %v11049_v9  ;;  %11083 = vst [vmem:[#allocation32_spill] sm:$0xff] %v10474_v48 }
 0x7b6   :  { %4979 = vmatpush1.bf16.msra.mxu0 %v10385_v37  ;;  %8460 = vmatpush3.bf16.msra.mxu1 %v9131_v25  ;;  %v9179_v25 = vld [vmem:[#allocation6 + $0xe0] ss:$12 sps:$4 sm:$0xff]  }
 0x7b7   :  { %4980 = vmatprep.subr.bf16.mxu0 %v10389_v58  ;;  %8461 = vmatprep.subr.bf16.mxu1 %v11049_v9 }
 0x7ba   :  { %4981 = vmatpush1.bf16.msra.mxu0 %v10392_v26  ;;  %8462 = vmatpush3.bf16.msra.mxu1 %v9135_v2  ;;  %v10478_v2 = vld [vmem:[#allocation6 + $0xc4] ss:$12 sps:$4 sm:$0xff]  }
 0x7bb   :  { %4982 = vmatprep.subr.bf16.mxu0 %v10396_v19  ;;  %8463 = vmatprep.subr.bf16.mxu1 %v11049_v9  ;;  %11084 = vst [vmem:[#allocation33_spill] sm:$0xff] %v10478_v2 }
 0x7be   :  { %4983 = vmatpush1.bf16.msra.mxu0 %v10399_v7  ;;  %8464 = vmatpush3.bf16.msra.mxu1 %v9139_v1  ;;  %v10481_v1 = vld [vmem:[#allocation6 + $0xc0] ss:$12 sps:$4 sm:$0xff]  }
 0x7bf   :  { %4984 = vmatprep.subr.bf16.mxu0 %v10403_v62  ;;  %8465 = vmatprep.subr.bf16.mxu1 %v11049_v9  ;;  %11085 = vst [vmem:[#allocation34_spill] sm:$0xff] %v10481_v1 }
 0x7c2   :  { %4985 = vmatpush1.bf16.msra.mxu0 %v10406_v42  ;;  %8466 = vmatpush3.bf16.msra.mxu1 %v9143_v60  ;;  %v9183_v60 = vld [vmem:[#allocation6 + $0xc8] ss:$12 sps:$4 sm:$0xff]  }
 0x7c3   :  { %4986 = vmatprep.subr.bf16.mxu0 %v10410_v30  ;;  %8467 = vmatprep.subr.bf16.mxu1 %v11049_v9 }
 0x7c6   :  { %4987 = vmatpush1.bf16.msra.mxu0 %v10413_v28  ;;  %8468 = vmatpush3.bf16.msra.mxu1 %v9147_v6 }
 0x7c7   :  { %4988 = vmatprep.subr.bf16.mxu0 %v10417_v27  ;;  %8469 = vmatprep.subr.bf16.mxu1 %v11049_v9 }
 0x7ca   :  { %4989 = vmatpush1.bf16.msra.mxu0 %v10420_v51  ;;  %8470 = vmatpush3.bf16.msra.mxu1 %v9151_v52 }
 0x7cb   :  { %8475 = vmatprep.subr.bf16.mxu1 %v11049_v9  ;;  %5237 = vmatprep.subr.bf16.mxu0 %v10431_v61 }
 0x7cd   :  { %5007 = vmatmul.mubr.bf16.vlgmr.msra.gmra.mxu0 %v10309_v24  ;;  %8472 = vmatmul.mubr.bf16.vlgmr.msra.gmra.mxu1 %v10309_v24  ;;  %v10451_v24 = vld [vmem:[#allocation6 + $0x124] ss:$12 sps:$4 sm:$0xff]  }
 0x7ce   :  { %5269 = vmatprep.mubr.bf16.mxu0 %v11050_v38  ;;  %8491 = vmatprep.mubr.msk.bf16.mxu1 %vm9528_vm0, %v11049_v9 }
 0x7cf   :  { %5238 = vmatpush1.bf16.msra.mxu0 %v10433_v63  ;;  %8476 = vmatpush3.bf16.msra.mxu1 %v9155_v8 }
 0x7d0   :  { %8477 = vmatprep.subr.bf16.mxu1 %v11049_v9  ;;  %5239 = vmatprep.subr.bf16.mxu0 %v10437_v10 }
 0x7d3   :  { %5240 = vmatpush1.bf16.msra.mxu0 %v10440_v59  ;;  %8478 = vmatpush3.bf16.msra.mxu1 %v9159_v3 }
 0x7d4   :  { %8479 = vmatprep.subr.bf16.mxu1 %v11049_v9  ;;  %5241 = vmatprep.subr.bf16.mxu0 %v10444_v12 }
 0x7d7   :  { %5242 = vmatpush1.bf16.msra.mxu0 %v10447_v13  ;;  %8480 = vmatpush3.bf16.msra.mxu1 %v9163_v22 }
 0x7d8   :  { %8481 = vmatprep.subr.bf16.mxu1 %v11049_v9  ;;  %5243 = vmatprep.subr.bf16.mxu0 %v10451_v24 }
 0x7db   :  { %5244 = vmatpush1.bf16.msra.mxu0 %v10454_v45  ;;  %8482 = vmatpush3.bf16.msra.mxu1 %v9167_v53 }
 0x7dc   :  { %8483 = vmatprep.subr.bf16.mxu1 %v11049_v9  ;;  %5245 = vmatprep.subr.bf16.mxu0 %v10460_v23 }
 0x7df   :  { %5246 = vmatpush1.bf16.msra.mxu0 %v10458_v47  ;;  %8484 = vmatpush3.bf16.msra.mxu1 %v9171_v32 }
 0x7e0   :  { %5247 = vmatprep.subr.bf16.mxu0 %v10463_v43  ;;  %8485 = vmatprep.subr.bf16.mxu1 %v11049_v9 }
 0x7e3   :  { %5248 = vmatpush1.bf16.msra.mxu0 %v10467_v50  ;;  %8486 = vmatpush3.bf16.msra.mxu1 %v9175_v35 }
 0x7e4   :  { %5249 = vmatprep.subr.bf16.mxu0 %v10471_v34  ;;  %8487 = vmatprep.subr.bf16.mxu1 %v11049_v9 }
 0x7e7   :  { %5250 = vmatpush1.bf16.msra.mxu0 %v10474_v48  ;;  %8488 = vmatpush3.bf16.msra.mxu1 %v9179_v25 }
 0x7e8   :  { %5251 = vmatprep.subr.bf16.mxu0 %v10478_v2  ;;  %8489 = vmatprep.subr.bf16.mxu1 %v11049_v9 }
 0x7eb   :  { %5252 = vmatpush1.bf16.msra.mxu0 %v10481_v1  ;;  %8490 = vmatpush3.bf16.msra.mxu1 %v9183_v60 }
 0x7ec   :  { %5484 = vmatprep.subr.bf16.mxu0 %v10289_v29  ;;  %8495 = vmatprep.subr.bf16.mxu1 %v11049_v9 }
 0x84d   :  { %v10488_v6 = vpop.f32.mrf.mxu0  ;;  %v10490_v52 = vpop.f32.mrf.mxu1 }
 0x84e   :  { %11086 = vst [vmem:[#allocation35_spill] sm:$0xff] %v10488_v6  ;;  %11087 = vst [vmem:[#allocation36_spill] sm:$0xff] %v10490_v52 }
 0x84f   :  { %v10492_v8 = vpop.f32.mrf.mxu0  ;;  %v8433_v3 = vpop.f32.mrf.mxu1 }
 0x850   :  { %11088 = vst [vmem:[#allocation37_spill] sm:$0xff] %v10492_v8 }
 0x851   :  { %v4524_v22 = vpop.f32.mrf.mxu0  ;;  %v4564_v53 = vpop.f32.mrf.mxu1 }
 0x853   :  { %v4525_v32 = vpop.f32.mrf.mxu0  ;;  %v8434_v35 = vpop.f32.mrf.mxu1 }
 0x86d   :  { %v4767_v25 = vpop.f32.mrf.mxu0  ;;  %v4808_v17 = vpop.f32.mrf.mxu1 }
 0x86f   :  { %v4769_v39 = vpop.f32.mrf.mxu0  ;;  %v8453_v11 = vpop.f32.mrf.mxu1 }
 0x871   :  { %v4771_v60 = vpop.f32.mrf.mxu0  ;;  %v4811_v1 = vpop.f32.mrf.mxu1 }
 0x873   :  { %v4772_v29 = vpop.f32.mrf.mxu0  ;;  %v8454_v2 = vpop.f32.mrf.mxu1 }
 0x88d   :  { %v5008_v48 = vpop.f32.mrf.mxu0  ;;  %v5049_v34 = vpop.f32.mrf.mxu1 }
 0x88e   :  { %v5055_v6 = vadd.f32 %v5008_v48, %v4767_v25 }
 0x88f   :  { %v5010_v50 = vpop.f32.mrf.mxu0  ;;  %v8473_v52 = vpop.f32.mrf.mxu1 }
 0x890   :  { %v7647_v43 = vmul.f32 -1.442695, %v5055_v6  ;;  %v5062_v32 = vadd.f32 %v5010_v50, %v4769_v39  ;;  %v9184_v39 = vld [vmem:[#allocation6 + $0xb0] ss:$12 sps:$4 sm:$0xff]  }
 0x891   :  { %v5012_v8 = vpop.f32.mrf.mxu0  ;;  %v5052_v3 = vpop.f32.mrf.mxu1 }
 0x892   :  { %9300 = vpow2.f32 %v7647_v43  ;;  %v7648_v35 = vmul.f32 -1.442695, %v5062_v32 }
 0x893   :  { %v5013_v22 = vpop.f32.mrf.mxu0  ;;  %v8474_v53 = vpop.f32.mrf.mxu1 }
 0x894   :  { %9302 = vpow2.f32 %v7648_v35 }
 0x89f   :  { %v9301_v47 = vpop.eup %9300 }
 0x8a0   :  { %v5059_v11 = vadd.f32 1.0, %v9301_v47 }
 0x8a1   :  { %v9303_v1 = vpop.eup %9302 }
 0x8a2   :  { %9304 = vrcp.f32 %v5059_v11  ;;  %v5066_v60 = vadd.f32 1.0, %v9303_v1 }
 0x8a4   :  { %9306 = vrcp.f32 %v5066_v60 }
 0x8af   :  { %v9305_v2 = vpop.eup %9304 }
 0x8b0   :  { %v5069_v29 = vmul.f32 %v9305_v2, %v5049_v34 }
 0x8b1   :  { %v9307_v52 = vpop.eup %9306 }
 0x8b2   :  { %v5070_v48 = vadd.f32 %v5069_v29, %v4808_v17  ;;  %v5072_v6 = vsub.f32 1.0, %v9307_v52  ;;  %v5074_v43 = vmul.f32 %v9307_v52, %v10303_v16  ;;  %v9185_v17 = vld [vmem:[#allocation6 + $0x98] ss:$12 sps:$4 sm:$0xff]   ;;  %v9186_v16 = vld [vmem:[#allocation6 + $0x80] ss:$12 sps:$4 sm:$0xff]  }
 0x8b4   :  { %9308 = vtanh.f32 %v5070_v48 }
 0x8c1   :  { %v9309_v8 = vpop.eup %9308 }
 0x8c2   :  { %v5073_v25 = vmul.f32 %v9309_v8, %v5072_v6 }
 0x8c4   :  { %v10495_v3 = vadd.f32 %v5074_v43, %v5073_v25 }
 0x8c6   :  { %v10499_v47 = vpack.c.bf16 %v10495_v3, %v10495_v3 }
 0x8c8   :  { %5270 = vmatmul.mubr.bf16.vlgmr.msra.gmra.mxu0 %v10499_v47  ;;  %8492 = vmatmul.mubr.bf16.vlgmr.msra.gmra.mxu1 %v10499_v47 }
 0x8c9   :  { %5485 = vmatpush1.bf16.msra.mxu0 %v10305_v18  ;;  %8496 = vmatpush3.bf16.msra.mxu1 %v9184_v39  ;;  %v9187_v18 = vld [vmem:[#allocation6 + $0x68] ss:$12 sps:$4 sm:$0xff]  }
 0x8ca   :  { %5486 = vmatprep.subr.bf16.mxu0 %v10311_v31  ;;  %8497 = vmatprep.subr.bf16.mxu1 %v11049_v9  ;;  %v9188_v31 = vld [vmem:[#allocation6 + $0x50] ss:$12 sps:$4 sm:$0xff]  }
 0x8cb   :  { %5516 = vmatprep.mubr.bf16.mxu0 %v11050_v38  ;;  %8511 = vmatprep.mubr.msk.bf16.mxu1 %vm9528_vm0, %v11049_v9 }
 0x8cd   :  { %5487 = vmatpush1.bf16.msra.mxu0 %v10316_v33  ;;  %8498 = vmatpush3.bf16.msra.mxu1 %v9185_v17  ;;  %v9189_v33 = vld [vmem:[#allocation6 + $0x38] ss:$12 sps:$4 sm:$0xff]  }
 0x8ce   :  { %5488 = vmatprep.subr.bf16.mxu0 %v10320_v36  ;;  %8499 = vmatprep.subr.bf16.mxu1 %v11049_v9  ;;  %v9190_v36 = vld [vmem:[#allocation6 + $0x20] ss:$12 sps:$4 sm:$0xff]  }
 0x8d1   :  { %5489 = vmatpush1.bf16.msra.mxu0 %v10326_v41  ;;  %8500 = vmatpush3.bf16.msra.mxu1 %v9186_v16  ;;  %v9191_v41 = vld [vmem:[#allocation6 + $0x8] ss:$12 sps:$4 sm:$0xff]  }
 0x8d2   :  { %5490 = vmatprep.subr.bf16.mxu0 %v10330_v54  ;;  %8501 = vmatprep.subr.bf16.mxu1 %v11049_v9  ;;  %v5323_v54 = vld [vmem:[#allocation3 + $0x1c] sm:$0xf] }
 0x8d5   :  { %5491 = vmatpush1.bf16.msra.mxu0 %v10333_v40  ;;  %8502 = vmatpush3.bf16.msra.mxu1 %v9187_v18  ;;  %v9192_v40 = vld [vmem:[#allocation8 + $0xb0] ss:$12 sps:$4 sm:$0xff]  }
 0x8d6   :  { %5492 = vmatprep.subr.bf16.mxu0 %v10337_v56  ;;  %8503 = vmatprep.subr.bf16.mxu1 %v11049_v9  ;;  %v9193_v56 = vld [vmem:[#allocation8 + $0x98] ss:$12 sps:$4 sm:$0xff]  }
 0x8d9   :  { %5493 = vmatpush1.bf16.msra.mxu0 %v10340_v5  ;;  %8504 = vmatpush3.bf16.msra.mxu1 %v9188_v31  ;;  %v9194_v5 = vld [vmem:[#allocation8 + $0x80] ss:$12 sps:$4 sm:$0xff]  }
 0x8da   :  { %5494 = vmatprep.subr.bf16.mxu0 %v10344_v20  ;;  %8505 = vmatprep.subr.bf16.mxu1 %v11049_v9  ;;  %v9195_v20 = vld [vmem:[#allocation8 + $0x68] ss:$12 sps:$4 sm:$0xff]  }
 0x8dd   :  { %5495 = vmatpush1.bf16.msra.mxu0 %v10347_v0  ;;  %8506 = vmatpush3.bf16.msra.mxu1 %v9189_v33  ;;  %v9196_v0 = vld [vmem:[#allocation8 + $0x50] ss:$12 sps:$4 sm:$0xff]  }
 0x8de   :  { %5496 = vmatprep.subr.bf16.mxu0 %v10351_v14  ;;  %8507 = vmatprep.subr.bf16.mxu1 %v11049_v9  ;;  %v9197_v14 = vld [vmem:[#allocation8 + $0x38] ss:$12 sps:$4 sm:$0xff]  }
 0x8e1   :  { %5497 = vmatpush1.bf16.msra.mxu0 %v10354_v4  ;;  %8508 = vmatpush3.bf16.msra.mxu1 %v9190_v36  ;;  %v9198_v4 = vld [vmem:[#allocation8 + $0x20] ss:$12 sps:$4 sm:$0xff]  }
 0x8e2   :  { %5498 = vmatprep.subr.bf16.mxu0 %v10358_v44  ;;  %8509 = vmatprep.subr.bf16.mxu1 %v11049_v9  ;;  %v9199_v44 = vld [vmem:[#allocation8 + $0x8] ss:$12 sps:$4 sm:$0xff]  }
 0x8e5   :  { %5499 = vmatpush1.bf16.msra.mxu0 %v10361_v49  ;;  %8510 = vmatpush3.bf16.msra.mxu1 %v9191_v41  ;;  %v11089_v49 = vld [vmem:[#allocation25_spill] sm:$0xff] }
 0x8e6   :  { %5725 = vmatprep.subr.bf16.mxu0 %v10365_v57  ;;  %8515 = vmatprep.subr.bf16.mxu1 %v11049_v9  ;;  %v11090_v57 = vld [vmem:[#allocation26_spill] sm:$0xff] }
 0x8e8   :  { %5517 = vmatmul.mubr.bf16.vlgmr.msra.gmra.mxu0 %v5323_v54  ;;  %8512 = vmatmul.mubr.bf16.vlgmr.msra.gmra.mxu1 %v5323_v54 }
 0x8e9   :  { %5726 = vmatpush1.bf16.msra.mxu0 %v10368_v15  ;;  %8516 = vmatpush3.bf16.msra.mxu1 %v9192_v40  ;;  %v11091_v15 = vld [vmem:[#allocation27_spill] sm:$0xff] }
 0x8ea   :  { %5727 = vmatprep.subr.bf16.mxu0 %v10372_v46  ;;  %8517 = vmatprep.subr.bf16.mxu1 %v11049_v9  ;;  %v11092_v46 = vld [vmem:[#allocation28_spill] sm:$0xff] }
 0x8eb   :  { %5757 = vmatprep.mubr.bf16.mxu0 %v11050_v38  ;;  %8531 = vmatprep.mubr.msk.bf16.mxu1 %vm9528_vm0, %v11049_v9 }
 0x8ed   :  { %5728 = vmatpush1.bf16.msra.mxu0 %v10375_v55  ;;  %8518 = vmatpush3.bf16.msra.mxu1 %v9193_v56  ;;  %v11093_v55 = vld [vmem:[#allocation32_spill] sm:$0xff] }
 0x8ee   :  { %5729 = vmatprep.subr.bf16.mxu0 %v10379_v21  ;;  %8519 = vmatprep.subr.bf16.mxu1 %v11049_v9  ;;  %v11094_v21 = vld [vmem:[#allocation33_spill] sm:$0xff] }
 0x8f1   :  { %5730 = vmatpush1.bf16.msra.mxu0 %v10385_v37  ;;  %8520 = vmatpush3.bf16.msra.mxu1 %v9194_v5  ;;  %v11095_v37 = vld [vmem:[#allocation34_spill] sm:$0xff] }
 0x8f2   :  { %5731 = vmatprep.subr.bf16.mxu0 %v10389_v58  ;;  %8521 = vmatprep.subr.bf16.mxu1 %v11049_v9  ;;  %v9200_v58 = vld [vmem:[#allocation6 + $0x170] ss:$12 sps:$4 sm:$0xff]  }
 0x8f5   :  { %5732 = vmatpush1.bf16.msra.mxu0 %v10392_v26  ;;  %8522 = vmatpush3.bf16.msra.mxu1 %v9195_v20  ;;  %v9201_v26 = vld [vmem:[#allocation6 + $0x158] ss:$12 sps:$4 sm:$0xff]  }
 0x8f6   :  { %5733 = vmatprep.subr.bf16.mxu0 %v10396_v19  ;;  %8523 = vmatprep.subr.bf16.mxu1 %v11049_v9  ;;  %v9202_v19 = vld [vmem:[#allocation6 + $0x140] ss:$12 sps:$4 sm:$0xff]  }
 0x8f9   :  { %5734 = vmatpush1.bf16.msra.mxu0 %v10399_v7  ;;  %8524 = vmatpush3.bf16.msra.mxu1 %v9196_v0  ;;  %v9203_v7 = vld [vmem:[#allocation6 + $0x128] ss:$12 sps:$4 sm:$0xff]  }
 0x8fa   :  { %5735 = vmatprep.subr.bf16.mxu0 %v10403_v62  ;;  %8525 = vmatprep.subr.bf16.mxu1 %v11049_v9  ;;  %v9204_v62 = vld [vmem:[#allocation6 + $0x110] ss:$12 sps:$4 sm:$0xff]  }
 0x8fd   :  { %5736 = vmatpush1.bf16.msra.mxu0 %v10406_v42  ;;  %8526 = vmatpush3.bf16.msra.mxu1 %v9197_v14  ;;  %v10580_v42 = vld [vmem:[#allocation8 + $0x16c] ss:$12 sps:$4 sm:$0xff]  }
 0x8fe   :  { %5737 = vmatprep.subr.bf16.mxu0 %v10410_v30  ;;  %8527 = vmatprep.subr.bf16.mxu1 %v11049_v9  ;;  %v9205_v30 = vld [vmem:[#allocation6 + $0xf8] ss:$12 sps:$4 sm:$0xff]  }
 0x901   :  { %5738 = vmatpush1.bf16.msra.mxu0 %v10413_v28  ;;  %8528 = vmatpush3.bf16.msra.mxu1 %v9198_v4  ;;  %v9206_v28 = vld [vmem:[#allocation6 + $0xe0] ss:$12 sps:$4 sm:$0xff]  }
 0x902   :  { %5739 = vmatprep.subr.bf16.mxu0 %v10417_v27  ;;  %8529 = vmatprep.subr.bf16.mxu1 %v11049_v9  ;;  %v9207_v27 = vld [vmem:[#allocation6 + $0xc8] ss:$12 sps:$4 sm:$0xff]  }
 0x905   :  { %5740 = vmatpush1.bf16.msra.mxu0 %v10420_v51  ;;  %8530 = vmatpush3.bf16.msra.mxu1 %v9199_v44 }
 0x906   :  { %5988 = vmatprep.subr.bf16.mxu0 %v10431_v61  ;;  %8535 = vmatprep.subr.bf16.mxu1 %v11049_v9 }
 0x908   :  { %5758 = vmatmul.mubr.bf16.vlgmr.msra.gmra.mxu0 %v10499_v47  ;;  %8532 = vmatmul.mubr.bf16.vlgmr.msra.gmra.mxu1 %v10499_v47 }
 0x909   :  { %5989 = vmatpush1.bf16.msra.mxu0 %v10433_v63  ;;  %6020 = vmatprep.mubr.bf16.mxu0 %v11050_v38 }
 0x90a   :  { %5990 = vmatprep.subr.bf16.mxu0 %v10437_v10  ;;  %8551 = vmatprep.mubr.msk.bf16.mxu1 %vm9528_vm0, %v11049_v9 }
 0x90b   :  { %8536 = vmatpush3.bf16.msra.mxu1 %v9200_v58  ;;  %v10622_v58 = vld [vmem:[#allocation8 + $0x138] ss:$12 sps:$4 sm:$0xff]  }
 0x90c   :  { %8537 = vmatprep.subr.bf16.mxu1 %v11049_v9 }
 0x90d   :  { %5991 = vmatpush1.bf16.msra.mxu0 %v10440_v59 }
 0x90e   :  { %5992 = vmatprep.subr.bf16.mxu0 %v10444_v12 }
 0x90f   :  { %8538 = vmatpush3.bf16.msra.mxu1 %v9201_v26  ;;  %v10625_v26 = vld [vmem:[#allocation8 + $0x140] ss:$12 sps:$4 sm:$0xff]  }
 0x910   :  { %8539 = vmatprep.subr.bf16.mxu1 %v11049_v9 }
 0x911   :  { %5993 = vmatpush1.bf16.msra.mxu0 %v10447_v13 }
 0x912   :  { %5994 = vmatprep.subr.bf16.mxu0 %v10451_v24 }
 0x913   :  { %8540 = vmatpush3.bf16.msra.mxu1 %v9202_v19  ;;  %v10628_v19 = vld [vmem:[#allocation8 + $0x124] ss:$12 sps:$4 sm:$0xff]  }
 0x914   :  { %8541 = vmatprep.subr.bf16.mxu1 %v11049_v9 }
 0x915   :  { %5995 = vmatpush1.bf16.msra.mxu0 %v10454_v45  ;;  %v60_v45 = vld [vmem:[%s11010_s0] sm:$0xff]  ;;  %s9529_s0 = smov [#allocation9]  }
 0x916   :  { %5996 = vmatprep.subr.bf16.mxu0 %v10460_v23  ;;  %v7154_v23 = vadd.s32 4294967295, %v60_v45  ;;  %v10665_v45 = vld [vmem:[#allocation8 + $0xe0] ss:$12 sps:$4 sm:$0xff]   ;;  %s7144_s7 = sshll.u32 %s9529_s0, 4  ;;  %s7145_s7 = int_to_ptr.vmem [resolvable:$true] %s7144_s7 }
 0x917   :  { %8542 = vmatpush3.bf16.msra.mxu1 %v9203_v7  ;;  %v10632_v7 = vld [vmem:[#allocation8 + $0x120] ss:$12 sps:$4 sm:$0xff]   ;;  %s9493_s8 = scalar_lea.vmem %s7145_s7, 128  ;;  %p9498_p2 = scmp.lt.s32.totalorder %s7145_s7, %s7145_s7 }
 0x918   :  { %8543 = vmatprep.subr.bf16.mxu1 %v11049_v9  ;;  %vm62_vm1 = vcmp.gt.s32.totalorder %v7154_v23, 0  ;;  %p9494_p1 = scmp.ne.s32.totalorder %s7145_s7, %s9493_s8  ;;  %p9499_p3 = scmp.lt.s32.totalorder %s9493_s8, %s9493_s8 }
 0x919   :  { %5997 = vmatpush1.bf16.msra.mxu0 %v11089_v49  ;;  %v63_v22 = vsel %vm62_vm1, %v7154_v23, 0  ;;  %v10668_v23 = vld [vmem:[#allocation8 + $0xc4] ss:$12 sps:$4 sm:$0xff]  }
 0x91a   :  { %5998 = vmatprep.subr.bf16.mxu0 %v11090_v57  ;;  %vm64_vm2 = vcmp.lt.s32.totalorder %v63_v22, 7  ;;  %v10602_v57 = vld [vmem:[#allocation8 + $0x168] ss:$12 sps:$4 sm:$0xff]   ;;  %p9500_p4 = por %p9499_p3, %p9498_p2 }
 0x91b   :  { %8544 = vmatpush3.bf16.msra.mxu1 %v9204_v62  ;;  %v10597_v35 = vsel %vm64_vm2, %v63_v22, 7  ;;  %v10635_v62 = vld [vmem:[#allocation8 + $0x128] ss:$12 sps:$4 sm:$0xff]  }
 0x91c   :  { %8545 = vmatprep.subr.bf16.mxu1 %v11049_v9  ;;  %vm6339_vm3 = vcmp.eq.s32.totalorder %v10597_v35, 0  ;;  %vm6452_vm4 = vcmp.eq.s32.totalorder %v10597_v35, 1  ;;  %vm6565_vm5 = vcmp.eq.s32.totalorder %v10597_v35, 2  ;;  %vm6678_vm6 = vcmp.eq.s32.totalorder %v10597_v35, 3  ;;  %p9501_p5 = pnand %p9500_p4, %p9494_p1 }
 0x91d   :  { %5999 = vmatpush1.bf16.msra.mxu0 %v11091_v15  ;;  %v6340_v60 = vsel %vm6339_vm3, 1, %v11050_v38  ;;  %v10604_v15 = vld [vmem:[#allocation8 + $0x170] ss:$12 sps:$4 sm:$0xff]   ;;  %v6453_v22 = vsel %vm6452_vm4, 1, %v11050_v38  ;;  %vm6791_vm7 = vcmp.eq.s32.totalorder %v10597_v35, 4  ;;  %vm6904_vm8 = vcmp.eq.s32.totalorder %v10597_v35, 5 }
 0x91e   :  { %6000 = vmatprep.subr.bf16.mxu0 %v11092_v46  ;;  %6342 = vperm.xlu0 %8726, %v6340_v60   ;;  %vm7017_vm9 = vcmp.eq.s32.totalorder %v10597_v35, 6  ;;  %vm7130_vm10 = vcmp.eq.s32.totalorder %v10597_v35, 7 }
 0x91f   :  { %8546 = vmatpush3.bf16.msra.mxu1 %v9205_v30  ;;  %v10638_v30 = vld [vmem:[#allocation8 + $0x10c] ss:$12 sps:$4 sm:$0xff]  }
 0x920   :  { %8547 = vmatprep.subr.bf16.mxu1 %v11049_v9 }
 0x921   :  { %6001 = vmatpush1.bf16.msra.mxu0 %v11093_v55  ;;  %v10606_v55 = vld [vmem:[#allocation8 + $0x154] ss:$12 sps:$4 sm:$0xff]  }
 0x922   :  { %6002 = vmatprep.subr.bf16.mxu0 %v11094_v21  ;;  %v10609_v21 = vld [vmem:[#allocation8 + $0x150] ss:$12 sps:$4 sm:$0xff]   ;;  %6455 = vperm.xlu0 %8726, %v6453_v22  }
 0x923   :  { %8548 = vmatpush3.bf16.msra.mxu1 %v9206_v28  ;;  %v10642_v28 = vld [vmem:[#allocation8 + $0x108] ss:$12 sps:$4 sm:$0xff]  }
 0x924   :  { %8549 = vmatprep.subr.bf16.mxu1 %v11049_v9 }
 0x925   :  { %6003 = vmatpush1.bf16.msra.mxu0 %v11095_v37  ;;  %v10612_v37 = vld [vmem:[#allocation8 + $0x158] ss:$12 sps:$4 sm:$0xff]  }
 0x926   :  { %6237 = vmatprep.subr.bf16.mxu0 %v10580_v42 }
 0x927   :  { %8550 = vmatpush3.bf16.msra.mxu1 %v9207_v27  ;;  %v10645_v27 = vld [vmem:[#allocation8 + $0x110] ss:$12 sps:$4 sm:$0xff]  }
 0x928   :  { %8555 = vmatprep.subr.bf16.mxu1 %v11049_v9 }
 0x988   :  { %v10588_v51 = vpop.f32.mrf.mxu0  ;;  %v10590_v61 = vpop.f32.mrf.mxu1 }
 0x98a   :  { %v10592_v63 = vpop.f32.mrf.mxu0  ;;  %v8493_v10 = vpop.f32.mrf.mxu1 }
 0x98b   :  { %v10648_v10 = vld [vmem:[#allocation8 + $0xf4] ss:$12 sps:$4 sm:$0xff]  }
 0x98c   :  { %v5275_v59 = vpop.f32.mrf.mxu0  ;;  %v5315_v12 = vpop.f32.mrf.mxu1 }
 0x98d   :  { %v10652_v59 = vld [vmem:[#allocation8 + $0xf0] ss:$12 sps:$4 sm:$0xff]   ;;  %v10655_v12 = vld [vmem:[#allocation8 + $0xf8] ss:$12 sps:$4 sm:$0xff]  }
 0x98e   :  { %v5276_v13 = vpop.f32.mrf.mxu0  ;;  %v8494_v24 = vpop.f32.mrf.mxu1 }
 0x98f   :  { %v10658_v13 = vld [vmem:[#allocation8 + $0xdc] ss:$12 sps:$4 sm:$0xff]   ;;  %v10662_v24 = vld [vmem:[#allocation8 + $0xd8] ss:$12 sps:$4 sm:$0xff]  }
 0x9a8   :  { %v5518_v50 = vpop.f32.mrf.mxu0  ;;  %v5559_v34 = vpop.f32.mrf.mxu1 }
 0x9aa   :  { %v5520_v53 = vpop.f32.mrf.mxu0  ;;  %v8513_v32 = vpop.f32.mrf.mxu1 }
 0x9ac   :  { %v5522_v11 = vpop.f32.mrf.mxu0  ;;  %v5562_v1 = vpop.f32.mrf.mxu1 }
 0x9ae   :  { %v5523_v2 = vpop.f32.mrf.mxu0  ;;  %v8514_v29 = vpop.f32.mrf.mxu1 }
 0x9c8   :  { %v5759_v48 = vpop.f32.mrf.mxu0  ;;  %v5800_v52 = vpop.f32.mrf.mxu1 }
 0x9c9   :  { %v5806_v6 = vadd.f32 %v5759_v48, %v5518_v50  ;;  %v10672_v50 = vld [vmem:[#allocation8 + $0xc0] ss:$12 sps:$4 sm:$0xff]  }
 0x9ca   :  { %v5761_v8 = vpop.f32.mrf.mxu0  ;;  %v8533_v25 = vpop.f32.mrf.mxu1 }
 0x9cb   :  { %v7721_v43 = vmul.f32 -1.442695, %v5806_v6  ;;  %v5813_v18 = vadd.f32 %v5761_v8, %v5520_v53  ;;  %v11096_v8 = vld [vmem:[#allocation13_spill] sm:$0xff] }
 0x9cc   :  { %v5763_v39 = vpop.f32.mrf.mxu0  ;;  %v5803_v47 = vpop.f32.mrf.mxu1 }
 0x9cd   :  { %9310 = vpow2.f32 %v7721_v43  ;;  %v7722_v31 = vmul.f32 -1.442695, %v5813_v18 }
 0x9ce   :  { %v5764_v17 = vpop.f32.mrf.mxu0  ;;  %v8534_v16 = vpop.f32.mrf.mxu1 }
 0x9cf   :  { %9312 = vpow2.f32 %v7722_v31 }
 0x9da   :  { %v9311_v33 = vpop.eup %9310 }
 0x9db   :  { %v5810_v36 = vadd.f32 1.0, %v9311_v33  ;;  %v11097_v33 = vld [vmem:[#allocation15_spill] sm:$0xff] }
 0x9dc   :  { %v9313_v41 = vpop.eup %9312 }
 0x9dd   :  { %9314 = vrcp.f32 %v5810_v36  ;;  %v5817_v54 = vadd.f32 1.0, %v9313_v41 }
 0x9df   :  { %9316 = vrcp.f32 %v5817_v54 }
 0x9ea   :  { %v9315_v40 = vpop.eup %9314 }
 0x9eb   :  { %v5820_v56 = vmul.f32 %v9315_v40, %v5800_v52 }
 0x9ec   :  { %v9317_v20 = vpop.eup %9316 }
 0x9ed   :  { %v5821_v5 = vadd.f32 %v5820_v56, %v5559_v34  ;;  %v5823_v0 = vsub.f32 1.0, %v9317_v20  ;;  %v5825_v44 = vmul.f32 %v9317_v20, %v10495_v3  ;;  %v10615_v3 = vld [vmem:[#allocation8 + $0x13c] ss:$12 sps:$4 sm:$0xff]  }
 0x9ee   :  { %v10675_v34 = vld [vmem:[#allocation8 + $0xc8] ss:$12 sps:$4 sm:$0xff]  }
 0x9ef   :  { %9318 = vtanh.f32 %v5821_v5 }
 0x9fc   :  { %v9319_v14 = vpop.eup %9318 }
 0x9fd   :  { %v5824_v4 = vmul.f32 %v9319_v14, %v5823_v0  ;;  %v11098_v14 = vld [vmem:[#allocation14_spill] sm:$0xff] }
 0x9ff   :  { %v5826_v49 = vadd.f32 %v5825_v44, %v5824_v4 }
 0xa01   :  { %v5827_v46 = vpack.c.bf16 %v5826_v49, %v5826_v49 }
 0xa03   :  { %6021 = vmatmul.mubr.bf16.vlgmr.msra.gmra.mxu0 %v5827_v46  ;;  %8552 = vmatmul.mubr.bf16.vlgmr.msra.gmra.mxu1 %v5827_v46 }
 0xa04   :  { %6238 = vmatpush1.bf16.msra.mxu0 %v10602_v57  ;;  %8556 = vmatpush3.bf16.msra.mxu1 %v10604_v15 }
 0xa05   :  { %6239 = vmatprep.subr.bf16.mxu0 %v10606_v55  ;;  %6269 = vmatprep.mubr.bf16.mxu0 %v11050_v38 }
 0xa06   :  { %8557 = vmatprep.subr.bf16.mxu1 %v11049_v9  ;;  %8571 = vmatprep.mubr.msk.bf16.mxu1 %vm9528_vm0, %v11049_v9 }
 0xa08   :  { %6240 = vmatpush1.bf16.msra.mxu0 %v10609_v21  ;;  %8558 = vmatpush3.bf16.msra.mxu1 %v10612_v37 }
 0xa09   :  { %6241 = vmatprep.subr.bf16.mxu0 %v10615_v3  ;;  %8559 = vmatprep.subr.bf16.mxu1 %v11049_v9 }
 0xa0c   :  { %6242 = vmatpush1.bf16.msra.mxu0 %v10622_v58  ;;  %8560 = vmatpush3.bf16.msra.mxu1 %v10625_v26 }
 0xa0d   :  { %6243 = vmatprep.subr.bf16.mxu0 %v10628_v19  ;;  %8561 = vmatprep.subr.bf16.mxu1 %v11049_v9 }
 0xa10   :  { %6244 = vmatpush1.bf16.msra.mxu0 %v10632_v7  ;;  %8562 = vmatpush3.bf16.msra.mxu1 %v10635_v62 }
 0xa11   :  { %6245 = vmatprep.subr.bf16.mxu0 %v10638_v30  ;;  %8563 = vmatprep.subr.bf16.mxu1 %v11049_v9 }
 0xa14   :  { %6246 = vmatpush1.bf16.msra.mxu0 %v10642_v28  ;;  %8564 = vmatpush3.bf16.msra.mxu1 %v10645_v27 }
 0xa15   :  { %6247 = vmatprep.subr.bf16.mxu0 %v10648_v10  ;;  %8565 = vmatprep.subr.bf16.mxu1 %v11049_v9 }
 0xa18   :  { %6248 = vmatpush1.bf16.msra.mxu0 %v10652_v59  ;;  %8566 = vmatpush3.bf16.msra.mxu1 %v10655_v12 }
 0xa19   :  { %6249 = vmatprep.subr.bf16.mxu0 %v10658_v13  ;;  %8567 = vmatprep.subr.bf16.mxu1 %v11049_v9 }
 0xa1c   :  { %6250 = vmatpush1.bf16.msra.mxu0 %v10662_v24  ;;  %8568 = vmatpush3.bf16.msra.mxu1 %v10665_v45 }
 0xa1d   :  { %6251 = vmatprep.subr.bf16.mxu0 %v10668_v23  ;;  %8569 = vmatprep.subr.bf16.mxu1 %v11049_v9 }
 0xa20   :  { %6252 = vmatpush1.bf16.msra.mxu0 %v10672_v50  ;;  %8570 = vmatpush3.bf16.msra.mxu1 %v10675_v34 }
 0xa21   :  { %6350 = vmatprep.subr.bf16.mxu0 %v10580_v42  ;;  %8575 = vmatprep.subr.bf16.mxu1 %v11049_v9 }
 0xa23   :  { %6270 = vmatmul.mubr.bf16.vlgmr.msra.gmra.mxu0 %v11050_v38  ;;  %8572 = vmatmul.mubr.bf16.vlgmr.msra.gmra.mxu1 %v11050_v38 }
 0xa24   :  { %6351 = vmatpush1.bf16.msra.mxu0 %v10602_v57  ;;  %8576 = vmatpush3.bf16.msra.mxu1 %v10604_v15 }
 0xa25   :  { %6352 = vmatprep.subr.bf16.mxu0 %v10606_v55  ;;  %8577 = vmatprep.subr.bf16.mxu1 %v11049_v9 }
 0xa26   :  { %6382 = vmatprep.mubr.bf16.mxu0 %v11050_v38  ;;  %8591 = vmatprep.mubr.msk.bf16.mxu1 %vm9528_vm0, %v11049_v9 }
 0xa28   :  { %6353 = vmatpush1.bf16.msra.mxu0 %v10609_v21  ;;  %8578 = vmatpush3.bf16.msra.mxu1 %v10612_v37 }
 0xa29   :  { %6354 = vmatprep.subr.bf16.mxu0 %v10615_v3  ;;  %8579 = vmatprep.subr.bf16.mxu1 %v11049_v9 }
 0xa2c   :  { %6355 = vmatpush1.bf16.msra.mxu0 %v10622_v58  ;;  %8580 = vmatpush3.bf16.msra.mxu1 %v10625_v26 }
 0xa2d   :  { %6356 = vmatprep.subr.bf16.mxu0 %v10628_v19  ;;  %8581 = vmatprep.subr.bf16.mxu1 %v11049_v9 }
 0xa30   :  { %6357 = vmatpush1.bf16.msra.mxu0 %v10632_v7  ;;  %8582 = vmatpush3.bf16.msra.mxu1 %v10635_v62 }
 0xa31   :  { %6358 = vmatprep.subr.bf16.mxu0 %v10638_v30  ;;  %8583 = vmatprep.subr.bf16.mxu1 %v11049_v9 }
 0xa34   :  { %6359 = vmatpush1.bf16.msra.mxu0 %v10642_v28  ;;  %8584 = vmatpush3.bf16.msra.mxu1 %v10645_v27 }
 0xa35   :  { %6360 = vmatprep.subr.bf16.mxu0 %v10648_v10  ;;  %8585 = vmatprep.subr.bf16.mxu1 %v11049_v9 }
 0xa38   :  { %6361 = vmatpush1.bf16.msra.mxu0 %v10652_v59  ;;  %8586 = vmatpush3.bf16.msra.mxu1 %v10655_v12 }
 0xa39   :  { %6362 = vmatprep.subr.bf16.mxu0 %v10658_v13  ;;  %8587 = vmatprep.subr.bf16.mxu1 %v11049_v9 }
 0xa3c   :  { %6363 = vmatpush1.bf16.msra.mxu0 %v10662_v24  ;;  %8588 = vmatpush3.bf16.msra.mxu1 %v10665_v45 }
 0xa3d   :  { %6364 = vmatprep.subr.bf16.mxu0 %v10668_v23  ;;  %8589 = vmatprep.subr.bf16.mxu1 %v11049_v9 }
 0xa40   :  { %6365 = vmatpush1.bf16.msra.mxu0 %v10672_v50  ;;  %8590 = vmatpush3.bf16.msra.mxu1 %v10675_v34 }
 0xa41   :  { %6463 = vmatprep.subr.bf16.mxu0 %v10580_v42  ;;  %8595 = vmatprep.subr.bf16.mxu1 %v11049_v9 }
 0xac3   :  { %v10722_v53 = vpop.f32.mrf.mxu0  ;;  %v10724_v32 = vpop.f32.mrf.mxu1 }
 0xac5   :  { %v10726_v11 = vpop.f32.mrf.mxu0  ;;  %v8553_v1 = vpop.f32.mrf.mxu1 }
 0xac7   :  { %v6026_v60 = vpop.f32.mrf.mxu0  ;;  %v6066_v2 = vpop.f32.mrf.mxu1 }
 0xac9   :  { %v6027_v29 = vpop.f32.mrf.mxu0  ;;  %v8554_v48 = vpop.f32.mrf.mxu1 }
 0xaca   :  { %v6566_v29 = vsel %vm6565_vm5, 1, %v11050_v38 }
 0xacb   :  { %6568 = vperm.xlu1 %8727, %v6566_v29   ;;  %v6679_v29 = vsel %vm6678_vm6, 1, %v11050_v38 }
 0xacf   :  { %6681 = vperm.xlu1 %8727, %v6679_v29  }
 0xae3   :  { %v6271_v52 = vpop.f32.mrf.mxu0  ;;  %v6312_v6 = vpop.f32.mrf.mxu1 }
 0xae4   :  { %v6318_v25 = vadd.f32 %v6271_v52, %v11096_v8 }
 0xae5   :  { %v6273_v43 = vpop.f32.mrf.mxu0  ;;  %v8573_v39 = vpop.f32.mrf.mxu1 }
 0xae6   :  { %v7771_v47 = vmul.f32 -1.442695, %v6318_v25  ;;  %v6325_v36 = vadd.f32 %v6273_v43, %v11097_v33 }
 0xae7   :  { %v6275_v17 = vpop.f32.mrf.mxu0  ;;  %v6315_v16 = vpop.f32.mrf.mxu1 }
 0xae8   :  { %9320 = vpow2.f32 %v7771_v47  ;;  %v7772_v41 = vmul.f32 -1.442695, %v6325_v36 }
 0xae9   :  { %v6276_v18 = vpop.f32.mrf.mxu0  ;;  %v8574_v31 = vpop.f32.mrf.mxu1 }
 0xaea   :  { %9322 = vpow2.f32 %v7772_v41  ;;  %v11100_v31 = vld [vmem:[#allocation23_spill] sm:$0xff] }
 0xaf5   :  { %v9321_v54 = vpop.eup %9320 }
 0xaf6   :  { %v6322_v40 = vadd.f32 1.0, %v9321_v54 }
 0xaf7   :  { %v9323_v56 = vpop.eup %9322 }
 0xaf8   :  { %9324 = vrcp.f32 %v6322_v40  ;;  %v6329_v5 = vadd.f32 1.0, %v9323_v56 }
 0xafa   :  { %9326 = vrcp.f32 %v6329_v5 }
 0xb05   :  { %v9325_v20 = vpop.eup %9324 }
 0xb06   :  { %v6332_v0 = vmul.f32 %v9325_v20, %v6312_v6  ;;  %v11099_v6 = vld [vmem:[#allocation21_spill] sm:$0xff] }
 0xb07   :  { %v9327_v44 = vpop.eup %9326 }
 0xb08   :  { %v6333_v4 = vadd.f32 %v6332_v0, %v11098_v14  ;;  %v6335_v49 = vsub.f32 1.0, %v9327_v44  ;;  %v6337_v1 = vmul.f32 0.0, %v9327_v44  ;;  %v11101_v0 = vld [vmem:[#allocation22_spill] sm:$0xff] }
 0xb0a   :  { %9328 = vtanh.f32 %v6333_v4 }
 0xb17   :  { %v9329_v46 = vpop.eup %9328 }
 0xb18   :  { %v6336_v22 = vmul.f32 %v9329_v46, %v6335_v49 }
 0xb1a   :  { %v10731_v60 = vadd.f32 %v6337_v1, %v6336_v22 }
 0xb1c   :  { %v6349_v2 = vpack.c.bf16 %v10731_v60, %v10731_v60 }
 0xb1e   :  { %6383 = vmatmul.mubr.bf16.vlgmr.msra.gmra.mxu0 %v6349_v2  ;;  %8592 = vmatmul.mubr.bf16.vlgmr.msra.gmra.mxu1 %v6349_v2 }
 0xb1f   :  { %6464 = vmatpush1.bf16.msra.mxu0 %v10602_v57  ;;  %8596 = vmatpush3.bf16.msra.mxu1 %v10604_v15 }
 0xb20   :  { %6465 = vmatprep.subr.bf16.mxu0 %v10606_v55  ;;  %8597 = vmatprep.subr.bf16.mxu1 %v11049_v9 }
 0xb21   :  { %6495 = vmatprep.mubr.bf16.mxu0 %v11050_v38  ;;  %8611 = vmatprep.mubr.msk.bf16.mxu1 %vm9528_vm0, %v11049_v9 }
 0xb23   :  { %6466 = vmatpush1.bf16.msra.mxu0 %v10609_v21  ;;  %8598 = vmatpush3.bf16.msra.mxu1 %v10612_v37 }
 0xb24   :  { %6467 = vmatprep.subr.bf16.mxu0 %v10615_v3  ;;  %8599 = vmatprep.subr.bf16.mxu1 %v11049_v9 }
 0xb27   :  { %6468 = vmatpush1.bf16.msra.mxu0 %v10622_v58  ;;  %8600 = vmatpush3.bf16.msra.mxu1 %v10625_v26 }
 0xb28   :  { %6469 = vmatprep.subr.bf16.mxu0 %v10628_v19  ;;  %8601 = vmatprep.subr.bf16.mxu1 %v11049_v9 }
 0xb2b   :  { %6470 = vmatpush1.bf16.msra.mxu0 %v10632_v7  ;;  %8602 = vmatpush3.bf16.msra.mxu1 %v10635_v62 }
 0xb2c   :  { %6471 = vmatprep.subr.bf16.mxu0 %v10638_v30  ;;  %8603 = vmatprep.subr.bf16.mxu1 %v11049_v9 }
 0xb2f   :  { %6472 = vmatpush1.bf16.msra.mxu0 %v10642_v28  ;;  %8604 = vmatpush3.bf16.msra.mxu1 %v10645_v27 }
 0xb30   :  { %6473 = vmatprep.subr.bf16.mxu0 %v10648_v10  ;;  %8605 = vmatprep.subr.bf16.mxu1 %v11049_v9 }
 0xb33   :  { %6474 = vmatpush1.bf16.msra.mxu0 %v10652_v59  ;;  %8606 = vmatpush3.bf16.msra.mxu1 %v10655_v12 }
 0xb34   :  { %6475 = vmatprep.subr.bf16.mxu0 %v10658_v13  ;;  %8607 = vmatprep.subr.bf16.mxu1 %v11049_v9 }
 0xb37   :  { %6476 = vmatpush1.bf16.msra.mxu0 %v10662_v24  ;;  %8608 = vmatpush3.bf16.msra.mxu1 %v10665_v45 }
 0xb38   :  { %6477 = vmatprep.subr.bf16.mxu0 %v10668_v23  ;;  %8609 = vmatprep.subr.bf16.mxu1 %v11049_v9 }
 0xb3b   :  { %6478 = vmatpush1.bf16.msra.mxu0 %v10672_v50  ;;  %8610 = vmatpush3.bf16.msra.mxu1 %v10675_v34 }
 0xb3c   :  { %6576 = vmatprep.subr.bf16.mxu0 %v10580_v42  ;;  %8615 = vmatprep.subr.bf16.mxu1 %v11049_v9 }
 0xbde   :  { %v6384_v48 = vpop.f32.mrf.mxu0  ;;  %v6425_v52 = vpop.f32.mrf.mxu1 }
 0xbdf   :  { %v6431_v8 = vadd.f32 %v6384_v48, %v11099_v6  ;;  %v11102_v6 = vld [vmem:[#allocation16_spill] sm:$0xff] }
 0xbe0   :  { %v6386_v25 = vpop.f32.mrf.mxu0  ;;  %v8593_v43 = vpop.f32.mrf.mxu1 }
 0xbe1   :  { %v7773_v39 = vmul.f32 -1.442695, %v6431_v8  ;;  %v6438_v33 = vadd.f32 %v6386_v25, %v11100_v31  ;;  %v11103_v31 = vld [vmem:[#allocation18_spill] sm:$0xff] }
 0xbe2   :  { %v6388_v47 = vpop.f32.mrf.mxu0  ;;  %v6428_v17 = vpop.f32.mrf.mxu1 }
 0xbe3   :  { %9330 = vpow2.f32 %v7773_v39  ;;  %v7774_v36 = vmul.f32 -1.442695, %v6438_v33 }
 0xbe4   :  { %v6389_v16 = vpop.f32.mrf.mxu0  ;;  %v8594_v18 = vpop.f32.mrf.mxu1 }
 0xbe5   :  { %9332 = vpow2.f32 %v7774_v36 }
 0xbf0   :  { %v9331_v41 = vpop.eup %9330 }
 0xbf1   :  { %v6435_v54 = vadd.f32 1.0, %v9331_v41 }
 0xbf2   :  { %v9333_v40 = vpop.eup %9332 }
 0xbf3   :  { %9334 = vrcp.f32 %v6435_v54  ;;  %v6442_v56 = vadd.f32 1.0, %v9333_v40 }
 0xbf5   :  { %9336 = vrcp.f32 %v6442_v56 }
 0xc00   :  { %v9335_v5 = vpop.eup %9334 }
 0xc01   :  { %v6445_v20 = vmul.f32 %v9335_v5, %v6425_v52 }
 0xc02   :  { %v9337_v4 = vpop.eup %9336 }
 0xc03   :  { %v6446_v14 = vadd.f32 %v6445_v20, %v11101_v0  ;;  %v6448_v44 = vsub.f32 1.0, %v9337_v4  ;;  %v6450_v22 = vmul.f32 %v9337_v4, %v10731_v60  ;;  %v11104_v0 = vld [vmem:[#allocation17_spill] sm:$0xff] }
 0xc05   :  { %9338 = vtanh.f32 %v6446_v14 }
 0xc12   :  { %v9339_v49 = vpop.eup %9338 }
 0xc13   :  { %v6449_v46 = vmul.f32 %v9339_v49, %v6448_v44 }
 0xc15   :  { %v10776_v1 = vadd.f32 %v6450_v22, %v6449_v46 }
 0xc17   :  { %v6462_v2 = vpack.c.bf16 %v10776_v1, %v10776_v1 }
 0xc19   :  { %6496 = vmatmul.mubr.bf16.vlgmr.msra.gmra.mxu0 %v6462_v2  ;;  %8612 = vmatmul.mubr.bf16.vlgmr.msra.gmra.mxu1 %v6462_v2 }
 0xc1a   :  { %6577 = vmatpush1.bf16.msra.mxu0 %v10602_v57  ;;  %8616 = vmatpush3.bf16.msra.mxu1 %v10604_v15 }
 0xc1b   :  { %6578 = vmatprep.subr.bf16.mxu0 %v10606_v55  ;;  %8617 = vmatprep.subr.bf16.mxu1 %v11049_v9 }
 0xc1c   :  { %6608 = vmatprep.mubr.bf16.mxu0 %v11050_v38  ;;  %8631 = vmatprep.mubr.msk.bf16.mxu1 %vm9528_vm0, %v11049_v9 }
 0xc1e   :  { %6579 = vmatpush1.bf16.msra.mxu0 %v10609_v21  ;;  %8618 = vmatpush3.bf16.msra.mxu1 %v10612_v37 }
 0xc1f   :  { %6580 = vmatprep.subr.bf16.mxu0 %v10615_v3  ;;  %8619 = vmatprep.subr.bf16.mxu1 %v11049_v9 }
 0xc22   :  { %6581 = vmatpush1.bf16.msra.mxu0 %v10622_v58  ;;  %8620 = vmatpush3.bf16.msra.mxu1 %v10625_v26 }
 0xc23   :  { %6582 = vmatprep.subr.bf16.mxu0 %v10628_v19  ;;  %8621 = vmatprep.subr.bf16.mxu1 %v11049_v9 }
 0xc26   :  { %6583 = vmatpush1.bf16.msra.mxu0 %v10632_v7  ;;  %8622 = vmatpush3.bf16.msra.mxu1 %v10635_v62 }
 0xc27   :  { %6584 = vmatprep.subr.bf16.mxu0 %v10638_v30  ;;  %8623 = vmatprep.subr.bf16.mxu1 %v11049_v9 }
 0xc2a   :  { %6585 = vmatpush1.bf16.msra.mxu0 %v10642_v28  ;;  %8624 = vmatpush3.bf16.msra.mxu1 %v10645_v27 }
 0xc2b   :  { %6586 = vmatprep.subr.bf16.mxu0 %v10648_v10  ;;  %8625 = vmatprep.subr.bf16.mxu1 %v11049_v9 }
 0xc2e   :  { %6587 = vmatpush1.bf16.msra.mxu0 %v10652_v59  ;;  %8626 = vmatpush3.bf16.msra.mxu1 %v10655_v12 }
 0xc2f   :  { %6588 = vmatprep.subr.bf16.mxu0 %v10658_v13  ;;  %8627 = vmatprep.subr.bf16.mxu1 %v11049_v9 }
 0xc32   :  { %6589 = vmatpush1.bf16.msra.mxu0 %v10662_v24  ;;  %8628 = vmatpush3.bf16.msra.mxu1 %v10665_v45 }
 0xc33   :  { %6590 = vmatprep.subr.bf16.mxu0 %v10668_v23  ;;  %8629 = vmatprep.subr.bf16.mxu1 %v11049_v9 }
 0xc36   :  { %6591 = vmatpush1.bf16.msra.mxu0 %v10672_v50  ;;  %8630 = vmatpush3.bf16.msra.mxu1 %v10675_v34 }
 0xc37   :  { %6689 = vmatprep.subr.bf16.mxu0 %v10580_v42  ;;  %8635 = vmatprep.subr.bf16.mxu1 %v11049_v9 }
 0xcd9   :  { %v6497_v48 = vpop.f32.mrf.mxu0  ;;  %v6538_v52 = vpop.f32.mrf.mxu1 }
 0xcda   :  { %v6544_v8 = vadd.f32 %v6497_v48, %v11102_v6  ;;  %v6792_v48 = vsel %vm6791_vm7, 1, %v11050_v38 }
 0xcdb   :  { %v6499_v25 = vpop.f32.mrf.mxu0  ;;  %v8613_v43 = vpop.f32.mrf.mxu1  ;;  %6794 = vperm.xlu0 %8726, %v6792_v48  }
 0xcdc   :  { %v7775_v39 = vmul.f32 -1.442695, %v6544_v8  ;;  %v6551_v33 = vadd.f32 %v6499_v25, %v11103_v31  ;;  %v11105_v8 = vld [vmem:[#allocation29_spill] sm:$0xff] }
 0xcdd   :  { %v6501_v47 = vpop.f32.mrf.mxu0  ;;  %v6541_v17 = vpop.f32.mrf.mxu1 }
 0xcde   :  { %9340 = vpow2.f32 %v7775_v39  ;;  %v7776_v36 = vmul.f32 -1.442695, %v6551_v33  ;;  %v11106_v33 = vld [vmem:[#allocation31_spill] sm:$0xff] }
 0xcdf   :  { %v6502_v16 = vpop.f32.mrf.mxu0  ;;  %v8614_v18 = vpop.f32.mrf.mxu1 }
 0xce0   :  { %9342 = vpow2.f32 %v7776_v36 }
 0xceb   :  { %v9341_v41 = vpop.eup %9340 }
 0xcec   :  { %v6548_v54 = vadd.f32 1.0, %v9341_v41 }
 0xced   :  { %v9343_v40 = vpop.eup %9342 }
 0xcee   :  { %9344 = vrcp.f32 %v6548_v54  ;;  %v6555_v56 = vadd.f32 1.0, %v9343_v40 }
 0xcf0   :  { %9346 = vrcp.f32 %v6555_v56 }
 0xcfb   :  { %v9345_v5 = vpop.eup %9344 }
 0xcfc   :  { %v6558_v20 = vmul.f32 %v9345_v5, %v6538_v52 }
 0xcfd   :  { %v9347_v4 = vpop.eup %9346 }
 0xcfe   :  { %v6559_v14 = vadd.f32 %v6558_v20, %v11104_v0  ;;  %v6561_v44 = vsub.f32 1.0, %v9347_v4  ;;  %v6563_v22 = vmul.f32 %v9347_v4, %v10776_v1 }
 0xd00   :  { %9348 = vtanh.f32 %v6559_v14  ;;  %v11107_v14 = vld [vmem:[#allocation30_spill] sm:$0xff] }
 0xd0d   :  { %v9349_v49 = vpop.eup %9348 }
 0xd0e   :  { %v6562_v46 = vmul.f32 %v9349_v49, %v6561_v44 }
 0xd10   :  { %v10821_v2 = vadd.f32 %v6563_v22, %v6562_v46 }
 0xd12   :  { %v6575_v29 = vpack.c.bf16 %v10821_v2, %v10821_v2 }
 0xd14   :  { %6609 = vmatmul.mubr.bf16.vlgmr.msra.gmra.mxu0 %v6575_v29  ;;  %8632 = vmatmul.mubr.bf16.vlgmr.msra.gmra.mxu1 %v6575_v29 }
 0xd15   :  { %6690 = vmatpush1.bf16.msra.mxu0 %v10602_v57  ;;  %8636 = vmatpush3.bf16.msra.mxu1 %v10604_v15 }
 0xd16   :  { %6691 = vmatprep.subr.bf16.mxu0 %v10606_v55  ;;  %8637 = vmatprep.subr.bf16.mxu1 %v11049_v9 }
 0xd17   :  { %6721 = vmatprep.mubr.bf16.mxu0 %v11050_v38  ;;  %8651 = vmatprep.mubr.msk.bf16.mxu1 %vm9528_vm0, %v11049_v9 }
 0xd19   :  { %6692 = vmatpush1.bf16.msra.mxu0 %v10609_v21  ;;  %8638 = vmatpush3.bf16.msra.mxu1 %v10612_v37 }
 0xd1a   :  { %6693 = vmatprep.subr.bf16.mxu0 %v10615_v3  ;;  %8639 = vmatprep.subr.bf16.mxu1 %v11049_v9 }
 0xd1d   :  { %6694 = vmatpush1.bf16.msra.mxu0 %v10622_v58  ;;  %8640 = vmatpush3.bf16.msra.mxu1 %v10625_v26 }
 0xd1e   :  { %6695 = vmatprep.subr.bf16.mxu0 %v10628_v19  ;;  %8641 = vmatprep.subr.bf16.mxu1 %v11049_v9 }
 0xd21   :  { %6696 = vmatpush1.bf16.msra.mxu0 %v10632_v7  ;;  %8642 = vmatpush3.bf16.msra.mxu1 %v10635_v62 }
 0xd22   :  { %6697 = vmatprep.subr.bf16.mxu0 %v10638_v30  ;;  %8643 = vmatprep.subr.bf16.mxu1 %v11049_v9 }
 0xd25   :  { %6698 = vmatpush1.bf16.msra.mxu0 %v10642_v28  ;;  %8644 = vmatpush3.bf16.msra.mxu1 %v10645_v27 }
 0xd26   :  { %6699 = vmatprep.subr.bf16.mxu0 %v10648_v10  ;;  %8645 = vmatprep.subr.bf16.mxu1 %v11049_v9 }
 0xd29   :  { %6700 = vmatpush1.bf16.msra.mxu0 %v10652_v59  ;;  %8646 = vmatpush3.bf16.msra.mxu1 %v10655_v12 }
 0xd2a   :  { %6701 = vmatprep.subr.bf16.mxu0 %v10658_v13  ;;  %8647 = vmatprep.subr.bf16.mxu1 %v11049_v9 }
 0xd2d   :  { %6702 = vmatpush1.bf16.msra.mxu0 %v10662_v24  ;;  %8648 = vmatpush3.bf16.msra.mxu1 %v10665_v45 }
 0xd2e   :  { %6703 = vmatprep.subr.bf16.mxu0 %v10668_v23  ;;  %8649 = vmatprep.subr.bf16.mxu1 %v11049_v9 }
 0xd31   :  { %6704 = vmatpush1.bf16.msra.mxu0 %v10672_v50  ;;  %8650 = vmatpush3.bf16.msra.mxu1 %v10675_v34 }
 0xd32   :  { %6802 = vmatprep.subr.bf16.mxu0 %v10580_v42  ;;  %8655 = vmatprep.subr.bf16.mxu1 %v11049_v9 }
 0xdd4   :  { %v6610_v52 = vpop.f32.mrf.mxu0  ;;  %v6651_v6 = vpop.f32.mrf.mxu1 }
 0xdd5   :  { %v6657_v25 = vadd.f32 %v6610_v52, %v11105_v8 }
 0xdd6   :  { %v6612_v43 = vpop.f32.mrf.mxu0  ;;  %v8633_v39 = vpop.f32.mrf.mxu1 }
 0xdd7   :  { %v7777_v47 = vmul.f32 -1.442695, %v6657_v25  ;;  %v6664_v36 = vadd.f32 %v6612_v43, %v11106_v33  ;;  %v11108_v43 = vld [vmem:[#allocation19_spill] sm:$0xff] }
 0xdd8   :  { %v6614_v17 = vpop.f32.mrf.mxu0  ;;  %v6654_v16 = vpop.f32.mrf.mxu1 }
 0xdd9   :  { %9350 = vpow2.f32 %v7777_v47  ;;  %v7778_v41 = vmul.f32 -1.442695, %v6664_v36 }
 0xdda   :  { %v6615_v18 = vpop.f32.mrf.mxu0  ;;  %v8634_v31 = vpop.f32.mrf.mxu1 }
 0xddb   :  { %9352 = vpow2.f32 %v7778_v41 }
 0xde6   :  { %v9351_v54 = vpop.eup %9350 }
 0xde7   :  { %v6661_v40 = vadd.f32 1.0, %v9351_v54 }
 0xde8   :  { %v9353_v56 = vpop.eup %9352 }
 0xde9   :  { %9354 = vrcp.f32 %v6661_v40  ;;  %v6668_v5 = vadd.f32 1.0, %v9353_v56 }
 0xdeb   :  { %9356 = vrcp.f32 %v6668_v5 }
 0xdf6   :  { %v9355_v20 = vpop.eup %9354 }
 0xdf7   :  { %v6671_v0 = vmul.f32 %v9355_v20, %v6651_v6  ;;  %v6905_v6 = vsel %vm6904_vm8, 1, %v11050_v38 }
 0xdf8   :  { %v9357_v44 = vpop.eup %9356  ;;  %6907 = vperm.xlu1 %8727, %v6905_v6  }
 0xdf9   :  { %v6672_v4 = vadd.f32 %v6671_v0, %v11107_v14  ;;  %v6674_v49 = vsub.f32 1.0, %v9357_v44  ;;  %v6676_v29 = vmul.f32 %v9357_v44, %v10821_v2 }
 0xdfb   :  { %9358 = vtanh.f32 %v6672_v4  ;;  %v11110_v4 = vld [vmem:[#allocation20_spill] sm:$0xff] }
 0xe08   :  { %v9359_v46 = vpop.eup %9358 }
 0xe09   :  { %v6675_v22 = vmul.f32 %v9359_v46, %v6674_v49 }
 0xe0b   :  { %v10866_v48 = vadd.f32 %v6676_v29, %v6675_v22 }
 0xe0d   :  { %v6688_v52 = vpack.c.bf16 %v10866_v48, %v10866_v48 }
 0xe0f   :  { %6722 = vmatmul.mubr.bf16.vlgmr.msra.gmra.mxu0 %v6688_v52  ;;  %8652 = vmatmul.mubr.bf16.vlgmr.msra.gmra.mxu1 %v6688_v52 }
 0xe10   :  { %6803 = vmatpush1.bf16.msra.mxu0 %v10602_v57  ;;  %8656 = vmatpush3.bf16.msra.mxu1 %v10604_v15 }
 0xe11   :  { %6804 = vmatprep.subr.bf16.mxu0 %v10606_v55  ;;  %8657 = vmatprep.subr.bf16.mxu1 %v11049_v9 }
 0xe12   :  { %6834 = vmatprep.mubr.bf16.mxu0 %v11050_v38  ;;  %8671 = vmatprep.mubr.msk.bf16.mxu1 %vm9528_vm0, %v11049_v9 }
 0xe14   :  { %6805 = vmatpush1.bf16.msra.mxu0 %v10609_v21  ;;  %8658 = vmatpush3.bf16.msra.mxu1 %v10612_v37 }
 0xe15   :  { %6806 = vmatprep.subr.bf16.mxu0 %v10615_v3  ;;  %8659 = vmatprep.subr.bf16.mxu1 %v11049_v9 }
 0xe18   :  { %6807 = vmatpush1.bf16.msra.mxu0 %v10622_v58  ;;  %8660 = vmatpush3.bf16.msra.mxu1 %v10625_v26 }
 0xe19   :  { %6808 = vmatprep.subr.bf16.mxu0 %v10628_v19  ;;  %8661 = vmatprep.subr.bf16.mxu1 %v11049_v9 }
 0xe1c   :  { %6809 = vmatpush1.bf16.msra.mxu0 %v10632_v7  ;;  %8662 = vmatpush3.bf16.msra.mxu1 %v10635_v62 }
 0xe1d   :  { %6810 = vmatprep.subr.bf16.mxu0 %v10638_v30  ;;  %8663 = vmatprep.subr.bf16.mxu1 %v11049_v9 }
 0xe20   :  { %6811 = vmatpush1.bf16.msra.mxu0 %v10642_v28  ;;  %8664 = vmatpush3.bf16.msra.mxu1 %v10645_v27 }
 0xe21   :  { %6812 = vmatprep.subr.bf16.mxu0 %v10648_v10  ;;  %8665 = vmatprep.subr.bf16.mxu1 %v11049_v9 }
 0xe24   :  { %6813 = vmatpush1.bf16.msra.mxu0 %v10652_v59  ;;  %8666 = vmatpush3.bf16.msra.mxu1 %v10655_v12 }
 0xe25   :  { %6814 = vmatprep.subr.bf16.mxu0 %v10658_v13  ;;  %8667 = vmatprep.subr.bf16.mxu1 %v11049_v9 }
 0xe28   :  { %6815 = vmatpush1.bf16.msra.mxu0 %v10662_v24  ;;  %8668 = vmatpush3.bf16.msra.mxu1 %v10665_v45 }
 0xe29   :  { %6816 = vmatprep.subr.bf16.mxu0 %v10668_v23  ;;  %8669 = vmatprep.subr.bf16.mxu1 %v11049_v9 }
 0xe2c   :  { %6817 = vmatpush1.bf16.msra.mxu0 %v10672_v50  ;;  %8670 = vmatpush3.bf16.msra.mxu1 %v10675_v34 }
 0xe2d   :  { %6915 = vmatprep.subr.bf16.mxu0 %v10580_v42  ;;  %8675 = vmatprep.subr.bf16.mxu1 %v11049_v9  ;;  %v11109_v42 = vld [vmem:[#allocation24_spill] sm:$0xff] }
 0xecf   :  { %v6723_v8 = vpop.f32.mrf.mxu0  ;;  %v6764_v25 = vpop.f32.mrf.mxu1 }
 0xed0   :  { %v6770_v39 = vadd.f32 %v6723_v8, %v11108_v43  ;;  %v7018_v43 = vsel %vm7017_vm9, 1, %v11050_v38 }
 0xed1   :  { %v6725_v47 = vpop.f32.mrf.mxu0  ;;  %v8653_v17 = vpop.f32.mrf.mxu1  ;;  %7020 = vperm.xlu0 %8726, %v7018_v43  }
 0xed2   :  { %v7779_v16 = vmul.f32 -1.442695, %v6770_v39  ;;  %v6777_v41 = vadd.f32 %v6725_v47, %v11109_v42  ;;  %v11111_v17 = vld [vmem:[#allocation35_spill] sm:$0xff] }
 0xed3   :  { %v6727_v18 = vpop.f32.mrf.mxu0  ;;  %v6767_v31 = vpop.f32.mrf.mxu1 }
 0xed4   :  { %9360 = vpow2.f32 %v7779_v16  ;;  %v7780_v54 = vmul.f32 -1.442695, %v6777_v41 }
 0xed5   :  { %v6728_v33 = vpop.f32.mrf.mxu0  ;;  %v8654_v36 = vpop.f32.mrf.mxu1 }
 0xed6   :  { %9362 = vpow2.f32 %v7780_v54 }
 0xee1   :  { %v9361_v40 = vpop.eup %9360 }
 0xee2   :  { %v6774_v56 = vadd.f32 1.0, %v9361_v40  ;;  %v11112_v40 = vld [vmem:[#allocation37_spill] sm:$0xff] }
 0xee3   :  { %v9363_v5 = vpop.eup %9362 }
 0xee4   :  { %9364 = vrcp.f32 %v6774_v56  ;;  %v6781_v20 = vadd.f32 1.0, %v9363_v5 }
 0xee6   :  { %9366 = vrcp.f32 %v6781_v20 }
 0xef1   :  { %v9365_v0 = vpop.eup %9364 }
 0xef2   :  { %v6784_v14 = vmul.f32 %v9365_v0, %v6764_v25  ;;  %v9432_v25 = vld [vmem:[#allocation8 + $0x16c] ss:$12 sps:$4 sm:$0xff]  }
 0xef3   :  { %v9367_v49 = vpop.eup %9366 }
 0xef4   :  { %v6785_v44 = vadd.f32 %v6784_v14, %v11110_v4  ;;  %v6787_v46 = vsub.f32 1.0, %v9367_v49  ;;  %v6789_v52 = vmul.f32 %v9367_v49, %v10866_v48 }
 0xef6   :  { %9368 = vtanh.f32 %v6785_v44 }
 0xf03   :  { %v9369_v22 = vpop.eup %9368 }
 0xf04   :  { %v6788_v29 = vmul.f32 %v9369_v22, %v6787_v46  ;;  %v11113_v46 = vld [vmem:[#allocation36_spill] sm:$0xff] }
 0xf06   :  { %v10911_v6 = vadd.f32 %v6789_v52, %v6788_v29 }
 0xf08   :  { %v6801_v8 = vpack.c.bf16 %v10911_v6, %v10911_v6 }
 0xf0a   :  { %6835 = vmatmul.mubr.bf16.vlgmr.msra.gmra.mxu0 %v6801_v8  ;;  %8672 = vmatmul.mubr.bf16.vlgmr.msra.gmra.mxu1 %v6801_v8 }
 0xf0b   :  { %6916 = vmatpush1.bf16.msra.mxu0 %v10602_v57  ;;  %8676 = vmatpush3.bf16.msra.mxu1 %v10604_v15 }
 0xf0c   :  { %6917 = vmatprep.subr.bf16.mxu0 %v10606_v55  ;;  %8677 = vmatprep.subr.bf16.mxu1 %v11049_v9 }
 0xf0d   :  { %6947 = vmatprep.mubr.bf16.mxu0 %v11050_v38  ;;  %8691 = vmatprep.mubr.msk.bf16.mxu1 %vm9528_vm0, %v11049_v9 }
 0xf0f   :  { %6918 = vmatpush1.bf16.msra.mxu0 %v10609_v21  ;;  %8678 = vmatpush3.bf16.msra.mxu1 %v10612_v37 }
 0xf10   :  { %6919 = vmatprep.subr.bf16.mxu0 %v10615_v3  ;;  %8679 = vmatprep.subr.bf16.mxu1 %v11049_v9 }
 0xf13   :  { %6920 = vmatpush1.bf16.msra.mxu0 %v10622_v58  ;;  %8680 = vmatpush3.bf16.msra.mxu1 %v10625_v26 }
 0xf14   :  { %6921 = vmatprep.subr.bf16.mxu0 %v10628_v19  ;;  %8681 = vmatprep.subr.bf16.mxu1 %v11049_v9 }
 0xf17   :  { %6922 = vmatpush1.bf16.msra.mxu0 %v10632_v7  ;;  %8682 = vmatpush3.bf16.msra.mxu1 %v10635_v62 }
 0xf18   :  { %6923 = vmatprep.subr.bf16.mxu0 %v10638_v30  ;;  %8683 = vmatprep.subr.bf16.mxu1 %v11049_v9 }
 0xf1b   :  { %6924 = vmatpush1.bf16.msra.mxu0 %v10642_v28  ;;  %8684 = vmatpush3.bf16.msra.mxu1 %v10645_v27 }
 0xf1c   :  { %6925 = vmatprep.subr.bf16.mxu0 %v10648_v10  ;;  %8685 = vmatprep.subr.bf16.mxu1 %v11049_v9 }
 0xf1f   :  { %6926 = vmatpush1.bf16.msra.mxu0 %v10652_v59  ;;  %8686 = vmatpush3.bf16.msra.mxu1 %v10655_v12 }
 0xf20   :  { %6927 = vmatprep.subr.bf16.mxu0 %v10658_v13  ;;  %8687 = vmatprep.subr.bf16.mxu1 %v11049_v9 }
 0xf23   :  { %6928 = vmatpush1.bf16.msra.mxu0 %v10662_v24  ;;  %8688 = vmatpush3.bf16.msra.mxu1 %v10665_v45 }
 0xf24   :  { %6929 = vmatprep.subr.bf16.mxu0 %v10668_v23  ;;  %8689 = vmatprep.subr.bf16.mxu1 %v11049_v9 }
 0xf27   :  { %6930 = vmatpush1.bf16.msra.mxu0 %v10672_v50  ;;  %8690 = vmatpush3.bf16.msra.mxu1 %v10675_v34 }
 0xf28   :  { %7028 = vmatprep.subr.bf16.mxu0 %v9432_v25  ;;  %8695 = vmatprep.subr.bf16.mxu1 %v11049_v9 }
 0xfca   :  { %v6836_v39 = vpop.f32.mrf.mxu0  ;;  %v6877_v47 = vpop.f32.mrf.mxu1 }
 0xfcb   :  { %v6883_v16 = vadd.f32 %v6836_v39, %v11111_v17 }
 0xfcc   :  { %v6838_v18 = vpop.f32.mrf.mxu0  ;;  %v8673_v31 = vpop.f32.mrf.mxu1 }
 0xfcd   :  { %v7781_v33 = vmul.f32 -1.442695, %v6883_v16  ;;  %v6890_v56 = vadd.f32 %v6838_v18, %v11112_v40 }
 0xfce   :  { %v6840_v36 = vpop.f32.mrf.mxu0  ;;  %v6880_v42 = vpop.f32.mrf.mxu1 }
 0xfcf   :  { %9370 = vpow2.f32 %v7781_v33  ;;  %v7782_v5 = vmul.f32 -1.442695, %v6890_v56 }
 0xfd0   :  { %v6841_v41 = vpop.f32.mrf.mxu0  ;;  %v8674_v54 = vpop.f32.mrf.mxu1 }
 0xfd1   :  { %9372 = vpow2.f32 %v7782_v5 }
 0xfdc   :  { %v9371_v20 = vpop.eup %9370 }
 0xfdd   :  { %v6887_v0 = vadd.f32 1.0, %v9371_v20 }
 0xfde   :  { %v9373_v14 = vpop.eup %9372 }
 0xfdf   :  { %9374 = vrcp.f32 %v6887_v0  ;;  %v6894_v4 = vadd.f32 1.0, %v9373_v14 }
 0xfe1   :  { %9376 = vrcp.f32 %v6894_v4 }
 0xfec   :  { %v9375_v44 = vpop.eup %9374 }
 0xfed   :  { %v6897_v49 = vmul.f32 %v9375_v44, %v6877_v47  ;;  %v6343_v44 = vpop.permute.xlu0 %6342 }
 0xfee   :  { %v9377_v29 = vpop.eup %9376  ;;  %vm6344_vm11 = vcmp.eq.s32.totalorder %v6343_v44, 1 }
 0xfef   :  { %v6898_v22 = vadd.f32 %v6897_v49, %v11113_v46  ;;  %v6900_v52 = vsub.f32 1.0, %v9377_v29  ;;  %v6902_v43 = vmul.f32 %v9377_v29, %v10911_v6  ;;  %v6569_v49 = vpop.permute.xlu1 %6568 }
 0xff0   :  { %vm6570_vm13 = vcmp.eq.s32.totalorder %v6569_v49, 1 }
 0xff1   :  { %9378 = vtanh.f32 %v6898_v22  ;;  %v6456_v46 = vpop.permute.xlu0 %6455 }
 0xff2   :  { %vm6457_vm12 = vcmp.eq.s32.totalorder %v6456_v46, 1 }
 0xff3   :  { %v6682_v22 = vpop.permute.xlu1 %6681 }
 0xff4   :  { %vm6683_vm14 = vcmp.eq.s32.totalorder %v6682_v22, 1 }
 0xff5   :  { %v6795_v29 = vpop.permute.xlu0 %6794 }
 0xff6   :  { %vm6796_vm15 = vcmp.eq.s32.totalorder %v6795_v29, 1 }
 0xffe   :  { %v9379_v8 = vpop.eup %9378 }
 0xfff   :  { %v6901_v25 = vmul.f32 %v9379_v8, %v6900_v52  ;;  %v6908_v52 = vpop.permute.xlu1 %6907  ;;  %v6345_v8 = vsel %vm6344_vm11, %v10731_v60, 0.0 }
0x1001   :  { %v10955_v39 = vadd.f32 %v6902_v43, %v6901_v25  ;;  %v7021_v25 = vpop.permute.xlu0 %7020  ;;  %v6458_v43 = vsel %vm6457_vm12, %v10776_v1, %v6345_v8 }
0x1002   :  { %vm7022_vm1 = vcmp.eq.s32.totalorder %v7021_v25, 1 }
0x1003   :  { %v6914_v17 = vpack.c.bf16 %v10955_v39, %v10955_v39 }
0x1005   :  { %6948 = vmatmul.mubr.bf16.vlgmr.msra.gmra.mxu0 %v6914_v17  ;;  %8692 = vmatmul.mubr.bf16.vlgmr.msra.gmra.mxu1 %v6914_v17 }
0x1006   :  { %7029 = vmatpush1.bf16.msra.mxu0 %v10602_v57  ;;  %8696 = vmatpush3.bf16.msra.mxu1 %v10604_v15  ;;  %v7131_v57 = vsel %vm7130_vm10, 1, %v11050_v38 }
0x1007   :  { %7030 = vmatprep.subr.bf16.mxu0 %v10606_v55  ;;  %8697 = vmatprep.subr.bf16.mxu1 %v11049_v9 }
0x1008   :  { %7060 = vmatprep.mubr.bf16.mxu0 %v11050_v38  ;;  %8711 = vmatprep.mubr.msk.bf16.mxu1 %vm9528_vm0, %v11049_v9  ;;  %vm6909_vm0 = vcmp.eq.s32.totalorder %v6908_v52, 1 }
0x1009   :  { %7133 = vperm.xlu1 %8727, %v7131_v57   ;;  %v6571_v57 = vsel %vm6570_vm13, %v10821_v2, %v6458_v43 }
0x100a   :  { %7031 = vmatpush1.bf16.msra.mxu0 %v10609_v21  ;;  %8698 = vmatpush3.bf16.msra.mxu1 %v10612_v37 }
0x100b   :  { %7032 = vmatprep.subr.bf16.mxu0 %v10615_v3  ;;  %8699 = vmatprep.subr.bf16.mxu1 %v11049_v9 }
0x100e   :  { %7033 = vmatpush1.bf16.msra.mxu0 %v10622_v58  ;;  %8700 = vmatpush3.bf16.msra.mxu1 %v10625_v26 }
0x100f   :  { %7034 = vmatprep.subr.bf16.mxu0 %v10628_v19  ;;  %8701 = vmatprep.subr.bf16.mxu1 %v11049_v9 }
0x1012   :  { %7035 = vmatpush1.bf16.msra.mxu0 %v10632_v7  ;;  %8702 = vmatpush3.bf16.msra.mxu1 %v10635_v62 }
0x1013   :  { %7036 = vmatprep.subr.bf16.mxu0 %v10638_v30  ;;  %8703 = vmatprep.subr.bf16.mxu1 %v11049_v9 }
0x1016   :  { %7037 = vmatpush1.bf16.msra.mxu0 %v10642_v28  ;;  %8704 = vmatpush3.bf16.msra.mxu1 %v10645_v27 }
0x1017   :  { %7038 = vmatprep.subr.bf16.mxu0 %v10648_v10  ;;  %8705 = vmatprep.subr.bf16.mxu1 %v11049_v9 }
0x101a   :  { %7039 = vmatpush1.bf16.msra.mxu0 %v10652_v59  ;;  %8706 = vmatpush3.bf16.msra.mxu1 %v10655_v12 }
0x101b   :  { %7040 = vmatprep.subr.bf16.mxu0 %v10658_v13  ;;  %8707 = vmatprep.subr.bf16.mxu1 %v11049_v9 }
0x101e   :  { %7041 = vmatpush1.bf16.msra.mxu0 %v10662_v24  ;;  %8708 = vmatpush3.bf16.msra.mxu1 %v10665_v45 }
0x101f   :  { %7042 = vmatprep.subr.bf16.mxu0 %v10668_v23  ;;  %8709 = vmatprep.subr.bf16.mxu1 %v11049_v9 }
0x1022   :  { %7043 = vmatpush1.bf16.msra.mxu0 %v10672_v50  ;;  %8710 = vmatpush3.bf16.msra.mxu1 %v10675_v34 }
0x10c5   :  { %v6949_v15 = vpop.f32.mrf.mxu0  ;;  %v6990_v55 = vpop.f32.mrf.mxu1 }
0x10c6   :  { %v6996_v21 = vadd.f32 %v6949_v15, %v10588_v51  ;;  %v6684_v15 = vsel %vm6683_vm14, %v10866_v48, %v6571_v57 }
0x10c7   :  { %v6951_v37 = vpop.f32.mrf.mxu0  ;;  %v8693_v3 = vpop.f32.mrf.mxu1  ;;  %v6797_v60 = vsel %vm6796_vm15, %v10911_v6, %v6684_v15 }
0x10c8   :  { %v7783_v58 = vmul.f32 -1.442695, %v6996_v21  ;;  %v7003_v62 = vadd.f32 %v6951_v37, %v10592_v63  ;;  %v7134_v37 = vpop.permute.xlu1 %7133  ;;  %v6910_v3 = vsel %vm6909_vm0, %v10955_v39, %v6797_v60 }
0x10c9   :  { %v6953_v26 = vpop.f32.mrf.mxu0  ;;  %v6993_v19 = vpop.f32.mrf.mxu1  ;;  %vm7135_vm2 = vcmp.eq.s32.totalorder %v7134_v37, 1 }
0x10ca   :  { %9380 = vpow2.f32 %v7783_v58  ;;  %v7784_v30 = vmul.f32 -1.442695, %v7003_v62 }
0x10cb   :  { %v6954_v9 = vpop.f32.mrf.mxu0  ;;  %v8694_v7 = vpop.f32.mrf.mxu1 }
0x10cc   :  { %9382 = vpow2.f32 %v7784_v30 }
0x10d7   :  { %v9381_v35 = vpop.eup %9380 }
0x10d8   :  { %v7000_v28 = vadd.f32 1.0, %v9381_v35 }
0x10d9   :  { %v9383_v38 = vpop.eup %9382 }
0x10da   :  { %9384 = vrcp.f32 %v7000_v28  ;;  %v7007_v27 = vadd.f32 1.0, %v9383_v38 }
0x10dc   :  { %9386 = vrcp.f32 %v7007_v27 }
0x10e7   :  { %v9385_v10 = vpop.eup %9384 }
0x10e8   :  { %v7010_v59 = vmul.f32 %v9385_v10, %v6990_v55 }
0x10e9   :  { %v9387_v12 = vpop.eup %9386 }
0x10ea   :  { %v7011_v51 = vadd.f32 %v7010_v59, %v10590_v61  ;;  %v7013_v13 = vsub.f32 1.0, %v9387_v12  ;;  %v7015_v23 = vmul.f32 %v9387_v12, %v10955_v39 }
0x10ec   :  { %9388 = vtanh.f32 %v7011_v51 }
0x10f9   :  { %v9389_v24 = vpop.eup %9388 }
0x10fa   :  { %v7014_v45 = vmul.f32 %v9389_v24, %v7013_v13 }
0x10fc   :  { %v7016_v63 = vadd.f32 %v7015_v23, %v7014_v45 }
0x10fe   :  { %v7027_v50 = vpack.c.bf16 %v7016_v63, %v7016_v63  ;;  %v7023_v1 = vsel %vm7022_vm1, %v7016_v63, %v6910_v3 }
0x1100   :  { %7061 = vmatmul.mubr.bf16.vlgmr.msra.gmra.mxu0 %v7027_v50  ;;  %8712 = vmatmul.mubr.bf16.vlgmr.msra.gmra.mxu1 %v7027_v50 }
0x11c0   :  { %v7062_v34 = vpop.f32.mrf.mxu0  ;;  %v7103_v47 = vpop.f32.mrf.mxu1 }
0x11c1   :  { %v7109_v16 = vadd.f32 %v7062_v34, %v10722_v53 }
0x11c2   :  { %v7064_v18 = vpop.f32.mrf.mxu0  ;;  %v8713_v31 = vpop.f32.mrf.mxu1 }
0x11c3   :  { %v7785_v33 = vmul.f32 -1.442695, %v7109_v16  ;;  %v7116_v54 = vadd.f32 %v7064_v18, %v10726_v11 }
0x11c4   :  { %v7066_v36 = vpop.f32.mrf.mxu0  ;;  %v7106_v61 = vpop.f32.mrf.mxu1 }
0x11c5   :  { %9390 = vpow2.f32 %v7785_v33  ;;  %v7786_v40 = vmul.f32 -1.442695, %v7116_v54 }
0x11c6   :  { %v7067_v42 = vpop.f32.mrf.mxu0  ;;  %v8714_v41 = vpop.f32.mrf.mxu1 }
0x11c7   :  { %9392 = vpow2.f32 %v7786_v40 }
0x11d2   :  { %v9391_v56 = vpop.eup %9390 }
0x11d3   :  { %v7113_v5 = vadd.f32 1.0, %v9391_v56 }
0x11d4   :  { %v9393_v20 = vpop.eup %9392 }
0x11d5   :  { %9394 = vrcp.f32 %v7113_v5  ;;  %v7120_v0 = vadd.f32 1.0, %v9393_v20 }
0x11d7   :  { %9396 = vrcp.f32 %v7120_v0 }
0x11e2   :  { %v9395_v14 = vpop.eup %9394 }
0x11e3   :  { %v7123_v4 = vmul.f32 %v9395_v14, %v7103_v47 }
0x11e4   :  { %v9397_v11 = vpop.eup %9396 }
0x11e5   :  { %v7124_v53 = vadd.f32 %v7123_v4, %v10724_v32  ;;  %v7126_v17 = vsub.f32 1.0, %v9397_v11  ;;  %v7128_v21 = vmul.f32 %v9397_v11, %v7016_v63 }
0x11e7   :  { %9398 = vtanh.f32 %v7124_v53 }
0x11f4   :  { %v9399_v32 = vpop.eup %9398 }
0x11f5   :  { %v7127_v55 = vmul.f32 %v9399_v32, %v7126_v17 }
0x11f7   :  { %v7129_v58 = vadd.f32 %v7128_v21, %v7127_v55 }
0x11f9   :  { %v7136_v26 = vsel %vm7135_vm2, %v7129_v58, %v7023_v1 }
0x11fa   :  { %7137 = vst [vmem:[#allocation9] sm:$0xff] %v7136_v26 }
0x11fb   :  { %9504 = shalt.err (!%p9501_p5)
}
0x11fc   :  { %7147 = dma.vmem_to_hbm [thread:$0]  %s7145_s7, 128, %s11014_s4, [#allocation5]  }
0x11fd   :  { %9517 = dma.done.wait [#allocation5], 128  }
0x11fe   :  { %9518 = vsyncadd [#allocation5], 4294967168 }
0x11ff   :  { %7151 = vsyncpa [#allocation4], 1 }
0x1200   :  { %7152 = vsyncpa [#allocation7], 1 }
0x1201   :  { %7153 = vsyncpa [#allocation5], 1 }

</bundles_post_ra>
